<compile_context>
chip_gen: v7x
topology: tpu7x:2x2x1
jax: 0.10.0
libtpu: 0.0.40
codegen_flags: <defaults>
</compile_context>

<pallas_src>
import math
from functools import partial

import jax
import jax.numpy as jnp
from jax import lax
from jax.experimental import pallas as pl
from jax.experimental.pallas import tpu as pltpu

P = 8            # in_planes
BN_EPS = 1e-5


# ----------------------------------------------------------------------------
# Fused Pallas kernel: (sum of) MXU matmuls + BatchNorm (training-mode batch
# stats computed in-kernel) + optional residual + activation.
#
# Operand order:  W_0, A_0, ..., W_{n-1}, A_{n-1}, [gamma, beta], [residual]
#   W_i : [Cout, K_i]   (K_i padded to a multiple of 8 with zeros)
#   A_i : [K_i,  M  ]   (lane-dense, M multiple of 128)
#   gamma/beta : [Cout, 1]   residual : [Cout, M]
# Output: [Cout, M] f32.
# ----------------------------------------------------------------------------
def _fused_layer_kernel(*refs, n_mm, has_bn, has_res, act, inv_m, eps):
    out_ref = refs[-1]
    idx = 0
    acc = None
    for _ in range(n_mm):
        w = refs[idx][...]          # [Cout, K_i]
        a = refs[idx + 1][...]      # [K_i, M]
        part = jnp.dot(w, a, preferred_element_type=jnp.float32)
        acc = part if acc is None else acc + part
        idx += 2

    if has_bn:
        gamma = refs[idx][...]      # [Cout, 1]  -> lane broadcast
        beta = refs[idx + 1][...]   # [Cout, 1]
        idx += 2
        # Training-mode BatchNorm2d: biased batch stats over N*H*W (= lanes).
        mean = jnp.sum(acc, axis=1, keepdims=True) * inv_m
        centered = acc - mean
        var = jnp.sum(centered * centered, axis=1, keepdims=True) * inv_m
        acc = centered * (gamma * lax.rsqrt(var + eps)) + beta

    if has_res:                     # BasicBlock: BN -> += shortcut -> act
        acc = acc + refs[idx][...]
        idx += 1

    if act == "relu":
        acc = jnp.maximum(acc, 0.0)
    elif act == "sigmoid":
        acc = jax.nn.sigmoid(acc)
    # act == "none": identity
    out_ref[...] = acc


def _round_up(x, m):
    return ((x + m - 1) // m) * m


def fused_layer(mm_pairs, gamma=None, beta=None, residual=None, act="relu",
                eps=BN_EPS):
    """One gridless pallas_call computing  act(BN(sum_i W_i @ A_i) + residual).

    mm_pairs : list of (W [Cout, K_i], A [K_i, M]) sharing Cout and M.
    gamma/beta : [Cout] BN affine params; None => no BatchNorm (head).
    residual   : optional [Cout, M], added after BN, before activation.
    Returns [Cout, M] float32.
    """
    cout = mm_pairs[0][0].shape[0]
    m = mm_pairs[0][1].shape[1]
    cp = _round_up(cout, 8)          # pad Cout for the head (1 -> 8) only

    operands = []
    for w, a in mm_pairs:
        assert w.shape[0] == cout and a.shape[1] == m
        k = w.shape[1]
        kp = _round_up(k, 8)         # zero-pad the contraction dim (harmless)
        operands.append(jnp.pad(w.astype(jnp.float32),
                                ((0, cp - cout), (0, kp - k))))
        operands.append(jnp.pad(a.astype(jnp.float32),
                                ((0, kp - k), (0, 0))))

    has_bn = gamma is not None
    if has_bn:
        g = jnp.pad(gamma.astype(jnp.float32).reshape(cout, 1),
                    ((0, cp - cout), (0, 0)), constant_values=1.0)
        b = jnp.pad(beta.astype(jnp.float32).reshape(cout, 1),
                    ((0, cp - cout), (0, 0)))
        operands += [g, b]

    has_res = residual is not None
    if has_res:
        operands.append(jnp.pad(residual.astype(jnp.float32),
                                ((0, cp - cout), (0, 0))))

    kernel = partial(_fused_layer_kernel, n_mm=len(mm_pairs), has_bn=has_bn,
                     has_res=has_res, act=act, inv_m=1.0 / m, eps=eps)
    out = pl.pallas_call(
        kernel,
        out_shape=jax.ShapeDtypeStruct((cp, m), jnp.float32),
        # Gridless: every operand is a single whole-array block in VMEM.
        in_specs=[pl.BlockSpec(memory_space=pltpu.MemorySpace.VMEM)
                  for _ in operands],
        out_specs=pl.BlockSpec(memory_space=pltpu.MemorySpace.VMEM),
    )(*operands)
    return out[:cout] if cp != cout else out


# ----------------------------------------------------------------------------
# Host-side glue: transposed im2col / weight reshapes (XLA-fused under jit).
# Activations are carried as [C, N, H, W] on the host and flattened to the
# lane-dense [C, M] view at each kernel boundary.
# ----------------------------------------------------------------------------
def _im2col_t(x, stride=1):
    """x: [C, N, H, W] -> A [9*C, N*Ho*Wo], rows ordered (dy, dx, c)."""
    c, n, h, w = x.shape
    ho = (h + 2 - 3) // stride + 1
    wo = (w + 2 - 3) // stride + 1
    xp = jnp.pad(x, ((0, 0), (0, 0), (1, 1), (1, 1)))
    rows = []
    for dy in range(3):
        for dx in range(3):
            rows.append(xp[:, :, dy::stride, dx::stride][:, :, :ho, :wo])
    a = jnp.concatenate(rows, axis=0).reshape(9 * c, n * ho * wo)
    return a, (n, ho, wo)


def _w3x3_t(w):
    """torch [Cout, Cin, 3, 3] -> [Cout, 9*Cin] matching _im2col_t rows."""
    cout, cin = w.shape[0], w.shape[1]
    return jnp.transpose(w, (0, 2, 3, 1)).reshape(cout, 9 * cin)


def conv3x3_bn_act(x, w, gamma=None, beta=None, residual=None, act="relu",
                   stride=1, extra=None):
    """Fused 3x3 conv (pad=1, no bias) + BN + act (+residual).

    x: [Cin, N, H, W]; w: torch-layout [Cout, Cin, 3, 3].
    extra: optional (x2, w2) second conv accumulated into the same output —
    used to implement the DecodeBlock concat without materializing it.
    """
    a, (n, ho, wo) = _im2col_t(x, stride)
    pairs = [(_w3x3_t(w), a)]
    if extra is not None:
        x2, w2 = extra
        a2, _ = _im2col_t(x2, stride)
        pairs.append((_w3x3_t(w2), a2))
    res2 = None if residual is None else residual.reshape(residual.shape[0], -1)
    out = fused_layer(pairs, gamma, beta, res2, act)
    return out.reshape(-1, n, ho, wo)


def conv1x1_bn_act(x, w, gamma, beta, act="none", stride=1):
    """Fused 1x1 conv (no bias) + BN + act.  x: [Cin, N, H, W]."""
    if stride > 1:
        x = x[:, :, ::stride, ::stride]
    c, n, h, wd = x.shape
    a = x.reshape(c, n * h * wd)
    w2 = w.reshape(w.shape[0], c)
    out = fused_layer([(w2, a)], gamma, beta, None, act)
    return out.reshape(-1, n, h, wd)


def upsample2x(x):
    # nn.Upsample(scale_factor=2), default mode='nearest'; x: [C, N, H, W]
    return jnp.repeat(jnp.repeat(x, 2, axis=2), 2, axis=3)


# ----------------------------------------------------------------------------
# Parameters (deterministic init: kaiming-normal conv, gamma=1 / beta=0 BN)
# ----------------------------------------------------------------------------
def init_params(seed=42):
    key = jax.random.PRNGKey(seed)
    keys = iter(jax.random.split(key, 64))

    def kconv(cout, cin, k):
        fan_in = cin * k * k
        std = math.sqrt(2.0 / fan_in)   # kaiming_normal_, fan_in, gain=sqrt(2)
        return jax.random.normal(next(keys), (cout, cin, k, k), jnp.float32) * std

    def bn(c):
        return (jnp.ones((c,), jnp.float32), jnp.zeros((c,), jnp.float32))

    return {
        # Encoder stem
        "enc_conv1": kconv(P, 3, 3), "enc_bn1": bn(P),
        # layer0: BasicBlock(P -> P, stride 1, identity shortcut)
        "l0_conv1": kconv(P, P, 3), "l0_bn1": bn(P),
        "l0_conv2": kconv(P, P, 3), "l0_bn2": bn(P),
        # layer1: BasicBlock(P -> 2P, stride 2, option 'B' shortcut)
        "l1_conv1": kconv(2 * P, P, 3), "l1_bn1": bn(2 * P),
        "l1_conv2": kconv(2 * P, 2 * P, 3), "l1_bn2": bn(2 * P),
        "l1_sc_conv": kconv(2 * P, P, 1), "l1_sc_bn": bn(2 * P),
        # center
        "center_conv": kconv(4 * P, 2 * P, 3), "center_bn": bn(4 * P),
        # decoders (x_planes, y_planes, planes) = (4P,2P,2P), (2P,P,P), (P,P,P)
        "dec0": {"conv1": kconv(2 * P, 4 * P, 3), "bn1": bn(2 * P),
                 "conv2": kconv(2 * P, 4 * P, 3), "bn2": bn(2 * P)},
        "dec1": {"conv1": kconv(P, 2 * P, 3), "bn1": bn(P),
                 "conv2": kconv(P, 2 * P, 3), "bn2": bn(P)},
        "dec2": {"conv1": kconv(P, P, 3), "bn1": bn(P),
                 "conv2": kconv(P, 2 * P, 3), "bn2": bn(P)},
        # head: Conv2d(P -> 1, 3x3, no bias) + Sigmoid
        "head_conv": kconv(1, P, 3),
    }


# ----------------------------------------------------------------------------
# HyperUnet forward (num_blocks=[1,1], n_divs=1, use_se=False)
# 14 fused pallas_calls total (one per conv layer).
# ----------------------------------------------------------------------------
def hyper_unet_forward(x_nchw, params):
    x = jnp.transpose(x_nchw, (1, 0, 2, 3)).astype(jnp.float32)  # -> [C,N,H,W]

    # ----- Encoder (ResNet, num_classes=0 -> feature pyramid) -----
    out0 = conv3x3_bn_act(x, params["enc_conv1"], *params["enc_bn1"],
                          act="relu")                               # [P, N,16,16]

    # layer0: BasicBlock stride 1, identity shortcut
    h = conv3x3_bn_act(out0, params["l0_conv1"], *params["l0_bn1"], act="relu")
    out1 = conv3x3_bn_act(h, params["l0_conv2"], *params["l0_bn2"],
                          residual=out0, act="relu")                # [P, N,16,16]

    # layer1: BasicBlock stride 2, option 'B' (1x1 conv + BN) shortcut
    h = conv3x3_bn_act(out1, params["l1_conv1"], *params["l1_bn1"],
                       act="relu", stride=2)
    sc = conv1x1_bn_act(out1, params["l1_sc_conv"], *params["l1_sc_bn"],
                        act="none", stride=2)
    out2 = conv3x3_bn_act(h, params["l1_conv2"], *params["l1_bn2"],
                          residual=sc, act="relu")                  # [2P, N,8,8]

    features = [out2, out1, out0]   # feature_sizes = [2P, P, P]

    # ----- Center -----
    xdec = conv3x3_bn_act(out2, params["center_conv"], *params["center_bn"],
                          act="relu")                               # [4P, N,8,8]

    # ----- Decoders -----
    for idx, y in enumerate(features):
        p = params["dec%d" % idx]
        xi = xdec
        if idx != 0:                    # scale_factor=2 (nearest) else identity
            xi = upsample2x(xi)
        xi = conv3x3_bn_act(xi, p["conv1"], *p["bn1"], act="relu")
        hy, wy = y.shape[2], y.shape[3]
        xi = xi[:, :, :hy, :wy]         # crop x[:, :, :hy, :wy]
        # Concatenate([xi, y], channel dim) feeding conv2, implemented as two
        # accumulated matmuls with the conv2 weight split along Cin.
        c_xi = xi.shape[0]
        w2 = p["conv2"]
        xdec = conv3x3_bn_act(xi, w2[:, :c_xi], *p["bn2"], act="relu",
                              extra=(y, w2[:, c_xi:]))

    # ----- Head: Conv2d(P -> 1, 3x3) with sigmoid fused in the epilogue -----
    out = conv3x3_bn_act(xdec, params["head_conv"], act="sigmoid")  # [1,N,16,16]
    return jnp.transpose(out, (1, 0, 2, 3))                         # -> NCHW


# ----------------------------------------------------------------------------
if __name__ == "__main__":
    key = jax.random.PRNGKey(0)
    x = jax.random.normal(key, (2, 3, 16, 16), jnp.float32)   # NCHW like torch
    params = init_params()
    fwd = jax.jit(hyper_unet_forward)
    out = jax.block_until_ready(fwd(x, params))
    assert out.shape == (2, 1, 16, 16), out.shape
    assert bool(jnp.all(jnp.isfinite(out)))
    assert bool(jnp.all((out >= 0.0) & (out <= 1.0)))          # sigmoid head
    print("KERNEL_OK")
</pallas_src>

<mosaic_0001>
module attributes {stable_mosaic.version = 11 : i64} {
  func.func @_fused_layer_kernel(%arg0: memref<8x32xf32, #tpu.memory_space<vmem>>, %arg1: memref<32x512xf32, #tpu.memory_space<vmem>>, %arg2: memref<8x1xf32, #tpu.memory_space<vmem>>, %arg3: memref<8x1xf32, #tpu.memory_space<vmem>>, %arg4: memref<8x512xf32, #tpu.memory_space<vmem>>) attributes {dimension_semantics = [], scalar_prefetch = 0 : i64, scratch_operands = 0 : i64, tpu.core_type = #tpu.core_type<tc>} {
    %c0 = arith.constant 0 : index
    %c0_0 = arith.constant 0 : index
    %0 = vector.load %arg0[%c0, %c0_0] : memref<8x32xf32, #tpu.memory_space<vmem>>, vector<8x32xf32>
    %c0_1 = arith.constant 0 : index
    %c0_2 = arith.constant 0 : index
    %1 = vector.load %arg1[%c0_1, %c0_2] : memref<32x512xf32, #tpu.memory_space<vmem>>, vector<32x512xf32>
    %cst = arith.constant dense<0.000000e+00> : vector<8x512xf32>
    %2 = tpu.matmul %0, %1, %cst {dimension_numbers = #tpu.dot_dimension_numbers<[1], [0], [0], [1], [0, 0, 1, 1], [], []>} : vector<8x32xf32>, vector<32x512xf32>, vector<8x512xf32> -> vector<8x512xf32>
    %c0_3 = arith.constant 0 : index
    %c0_4 = arith.constant 0 : index
    %3 = vector.load %arg2[%c0_3, %c0_4] : memref<8x1xf32, #tpu.memory_space<vmem>>, vector<8x1xf32>
    %c0_5 = arith.constant 0 : index
    %c0_6 = arith.constant 0 : index
    %4 = vector.load %arg3[%c0_5, %c0_6] : memref<8x1xf32, #tpu.memory_space<vmem>>, vector<8x1xf32>
    %cst_7 = arith.constant dense<0.000000e+00> : vector<8xf32>
    %5 = vector.multi_reduction <add>, %2, %cst_7 [1] : vector<8x512xf32> to vector<8xf32>
    %6 = vector.shape_cast %5 : vector<8xf32> to vector<8x1xf32>
    %cst_8 = arith.constant 0.001953125 : f32
    %7 = vector.broadcast %cst_8 : f32 to vector<8x1xf32>
    %8 = arith.mulf %6, %7 : vector<8x1xf32>
    %9 = vector.broadcast %8 : vector<8x1xf32> to vector<8x512xf32>
    %10 = arith.subf %2, %9 : vector<8x512xf32>
    %11 = arith.mulf %10, %10 : vector<8x512xf32>
    %cst_9 = arith.constant dense<0.000000e+00> : vector<8xf32>
    %12 = vector.multi_reduction <add>, %11, %cst_9 [1] : vector<8x512xf32> to vector<8xf32>
    %13 = vector.shape_cast %12 : vector<8xf32> to vector<8x1xf32>
    %cst_10 = arith.constant 0.001953125 : f32
    %14 = vector.broadcast %cst_10 : f32 to vector<8x1xf32>
    %15 = arith.mulf %13, %14 : vector<8x1xf32>
    %cst_11 = arith.constant 9.99999974E-6 : f32
    %16 = vector.broadcast %cst_11 : f32 to vector<8x1xf32>
    %17 = arith.addf %15, %16 : vector<8x1xf32>
    %18 = math.rsqrt %17 : vector<8x1xf32>
    %19 = arith.mulf %3, %18 : vector<8x1xf32>
    %20 = vector.broadcast %19 : vector<8x1xf32> to vector<8x512xf32>
    %21 = arith.mulf %10, %20 : vector<8x512xf32>
    %22 = vector.broadcast %4 : vector<8x1xf32> to vector<8x512xf32>
    %23 = arith.addf %21, %22 : vector<8x512xf32>
    %cst_12 = arith.constant 0.000000e+00 : f32
    %24 = vector.broadcast %cst_12 : f32 to vector<8x512xf32>
    %25 = arith.maximumf %23, %24 : vector<8x512xf32>
    %c0_13 = arith.constant 0 : index
    %c0_14 = arith.constant 0 : index
    %26 = vector.load %arg4[%c0_13, %c0_14] : memref<8x512xf32, #tpu.memory_space<vmem>>, vector<8x512xf32>
    tpu.vector_store %arg4[%c0_13, %c0_14], %25 {strides = array<i32>} : memref<8x512xf32, #tpu.memory_space<vmem>>, vector<8x512xf32>,
    return
  }
}

module attributes {stable_mosaic.version = 11 : i64} {
  func.func @_fused_layer_kernel(%arg0: memref<8x72xf32, #tpu.memory_space<vmem>>, %arg1: memref<72x512xf32, #tpu.memory_space<vmem>>, %arg2: memref<8x1xf32, #tpu.memory_space<vmem>>, %arg3: memref<8x1xf32, #tpu.memory_space<vmem>>, %arg4: memref<8x512xf32, #tpu.memory_space<vmem>>) attributes {dimension_semantics = [], scalar_prefetch = 0 : i64, scratch_operands = 0 : i64, tpu.core_type = #tpu.core_type<tc>} {
    %c0 = arith.constant 0 : index
    %c0_0 = arith.constant 0 : index
    %0 = vector.load %arg0[%c0, %c0_0] : memref<8x72xf32, #tpu.memory_space<vmem>>, vector<8x72xf32>
    %c0_1 = arith.constant 0 : index
    %c0_2 = arith.constant 0 : index
    %1 = vector.load %arg1[%c0_1, %c0_2] : memref<72x512xf32, #tpu.memory_space<vmem>>, vector<72x512xf32>
    %cst = arith.constant dense<0.000000e+00> : vector<8x512xf32>
    %2 = tpu.matmul %0, %1, %cst {dimension_numbers = #tpu.dot_dimension_numbers<[1], [0], [0], [1], [0, 0, 1, 1], [], []>} : vector<8x72xf32>, vector<72x512xf32>, vector<8x512xf32> -> vector<8x512xf32>
    %c0_3 = arith.constant 0 : index
    %c0_4 = arith.constant 0 : index
    %3 = vector.load %arg2[%c0_3, %c0_4] : memref<8x1xf32, #tpu.memory_space<vmem>>, vector<8x1xf32>
    %c0_5 = arith.constant 0 : index
    %c0_6 = arith.constant 0 : index
    %4 = vector.load %arg3[%c0_5, %c0_6] : memref<8x1xf32, #tpu.memory_space<vmem>>, vector<8x1xf32>
    %cst_7 = arith.constant dense<0.000000e+00> : vector<8xf32>
    %5 = vector.multi_reduction <add>, %2, %cst_7 [1] : vector<8x512xf32> to vector<8xf32>
    %6 = vector.shape_cast %5 : vector<8xf32> to vector<8x1xf32>
    %cst_8 = arith.constant 0.001953125 : f32
    %7 = vector.broadcast %cst_8 : f32 to vector<8x1xf32>
    %8 = arith.mulf %6, %7 : vector<8x1xf32>
    %9 = vector.broadcast %8 : vector<8x1xf32> to vector<8x512xf32>
    %10 = arith.subf %2, %9 : vector<8x512xf32>
    %11 = arith.mulf %10, %10 : vector<8x512xf32>
    %cst_9 = arith.constant dense<0.000000e+00> : vector<8xf32>
    %12 = vector.multi_reduction <add>, %11, %cst_9 [1] : vector<8x512xf32> to vector<8xf32>
    %13 = vector.shape_cast %12 : vector<8xf32> to vector<8x1xf32>
    %cst_10 = arith.constant 0.001953125 : f32
    %14 = vector.broadcast %cst_10 : f32 to vector<8x1xf32>
    %15 = arith.mulf %13, %14 : vector<8x1xf32>
    %cst_11 = arith.constant 9.99999974E-6 : f32
    %16 = vector.broadcast %cst_11 : f32 to vector<8x1xf32>
    %17 = arith.addf %15, %16 : vector<8x1xf32>
    %18 = math.rsqrt %17 : vector<8x1xf32>
    %19 = arith.mulf %3, %18 : vector<8x1xf32>
    %20 = vector.broadcast %19 : vector<8x1xf32> to vector<8x512xf32>
    %21 = arith.mulf %10, %20 : vector<8x512xf32>
    %22 = vector.broadcast %4 : vector<8x1xf32> to vector<8x512xf32>
    %23 = arith.addf %21, %22 : vector<8x512xf32>
    %cst_12 = arith.constant 0.000000e+00 : f32
    %24 = vector.broadcast %cst_12 : f32 to vector<8x512xf32>
    %25 = arith.maximumf %23, %24 : vector<8x512xf32>
    %c0_13 = arith.constant 0 : index
    %c0_14 = arith.constant 0 : index
    %26 = vector.load %arg4[%c0_13, %c0_14] : memref<8x512xf32, #tpu.memory_space<vmem>>, vector<8x512xf32>
    tpu.vector_store %arg4[%c0_13, %c0_14], %25 {strides = array<i32>} : memref<8x512xf32, #tpu.memory_space<vmem>>, vector<8x512xf32>,
    return
  }
}

module attributes {stable_mosaic.version = 11 : i64} {
  func.func @_fused_layer_kernel(%arg0: memref<8x72xf32, #tpu.memory_space<vmem>>, %arg1: memref<72x512xf32, #tpu.memory_space<vmem>>, %arg2: memref<8x1xf32, #tpu.memory_space<vmem>>, %arg3: memref<8x1xf32, #tpu.memory_space<vmem>>, %arg4: memref<8x512xf32, #tpu.memory_space<vmem>>, %arg5: memref<8x512xf32, #tpu.memory_space<vmem>>) attributes {dimension_semantics = [], scalar_prefetch = 0 : i64, scratch_operands = 0 : i64, tpu.core_type = #tpu.core_type<tc>} {
    %c0 = arith.constant 0 : index
    %c0_0 = arith.constant 0 : index
    %0 = vector.load %arg0[%c0, %c0_0] : memref<8x72xf32, #tpu.memory_space<vmem>>, vector<8x72xf32>
    %c0_1 = arith.constant 0 : index
    %c0_2 = arith.constant 0 : index
    %1 = vector.load %arg1[%c0_1, %c0_2] : memref<72x512xf32, #tpu.memory_space<vmem>>, vector<72x512xf32>
    %cst = arith.constant dense<0.000000e+00> : vector<8x512xf32>
    %2 = tpu.matmul %0, %1, %cst {dimension_numbers = #tpu.dot_dimension_numbers<[1], [0], [0], [1], [0, 0, 1, 1], [], []>} : vector<8x72xf32>, vector<72x512xf32>, vector<8x512xf32> -> vector<8x512xf32>
    %c0_3 = arith.constant 0 : index
    %c0_4 = arith.constant 0 : index
    %3 = vector.load %arg2[%c0_3, %c0_4] : memref<8x1xf32, #tpu.memory_space<vmem>>, vector<8x1xf32>
    %c0_5 = arith.constant 0 : index
    %c0_6 = arith.constant 0 : index
    %4 = vector.load %arg3[%c0_5, %c0_6] : memref<8x1xf32, #tpu.memory_space<vmem>>, vector<8x1xf32>
    %cst_7 = arith.constant dense<0.000000e+00> : vector<8xf32>
    %5 = vector.multi_reduction <add>, %2, %cst_7 [1] : vector<8x512xf32> to vector<8xf32>
    %6 = vector.shape_cast %5 : vector<8xf32> to vector<8x1xf32>
    %cst_8 = arith.constant 0.001953125 : f32
    %7 = vector.broadcast %cst_8 : f32 to vector<8x1xf32>
    %8 = arith.mulf %6, %7 : vector<8x1xf32>
    %9 = vector.broadcast %8 : vector<8x1xf32> to vector<8x512xf32>
    %10 = arith.subf %2, %9 : vector<8x512xf32>
    %11 = arith.mulf %10, %10 : vector<8x512xf32>
    %cst_9 = arith.constant dense<0.000000e+00> : vector<8xf32>
    %12 = vector.multi_reduction <add>, %11, %cst_9 [1] : vector<8x512xf32> to vector<8xf32>
    %13 = vector.shape_cast %12 : vector<8xf32> to vector<8x1xf32>
    %cst_10 = arith.constant 0.001953125 : f32
    %14 = vector.broadcast %cst_10 : f32 to vector<8x1xf32>
    %15 = arith.mulf %13, %14 : vector<8x1xf32>
    %cst_11 = arith.constant 9.99999974E-6 : f32
    %16 = vector.broadcast %cst_11 : f32 to vector<8x1xf32>
    %17 = arith.addf %15, %16 : vector<8x1xf32>
    %18 = math.rsqrt %17 : vector<8x1xf32>
    %19 = arith.mulf %3, %18 : vector<8x1xf32>
    %20 = vector.broadcast %19 : vector<8x1xf32> to vector<8x512xf32>
    %21 = arith.mulf %10, %20 : vector<8x512xf32>
    %22 = vector.broadcast %4 : vector<8x1xf32> to vector<8x512xf32>
    %23 = arith.addf %21, %22 : vector<8x512xf32>
    %c0_12 = arith.constant 0 : index
    %c0_13 = arith.constant 0 : index
    %24 = vector.load %arg4[%c0_12, %c0_13] : memref<8x512xf32, #tpu.memory_space<vmem>>, vector<8x512xf32>
    %25 = arith.addf %23, %24 : vector<8x512xf32>
    %cst_14 = arith.constant 0.000000e+00 : f32
    %26 = vector.broadcast %cst_14 : f32 to vector<8x512xf32>
    %27 = arith.maximumf %25, %26 : vector<8x512xf32>
    %c0_15 = arith.constant 0 : index
    %c0_16 = arith.constant 0 : index
    %28 = vector.load %arg5[%c0_15, %c0_16] : memref<8x512xf32, #tpu.memory_space<vmem>>, vector<8x512xf32>
    tpu.vector_store %arg5[%c0_15, %c0_16], %27 {strides = array<i32>} : memref<8x512xf32, #tpu.memory_space<vmem>>, vector<8x512xf32>,
    return
  }
}

module attributes {stable_mosaic.version = 11 : i64} {
  func.func @_fused_layer_kernel(%arg0: memref<16x8xf32, #tpu.memory_space<vmem>>, %arg1: memref<8x128xf32, #tpu.memory_space<vmem>>, %arg2: memref<16x1xf32, #tpu.memory_space<vmem>>, %arg3: memref<16x1xf32, #tpu.memory_space<vmem>>, %arg4: memref<16x128xf32, #tpu.memory_space<vmem>>) attributes {dimension_semantics = [], scalar_prefetch = 0 : i64, scratch_operands = 0 : i64, tpu.core_type = #tpu.core_type<tc>} {
    %c0 = arith.constant 0 : index
    %c0_0 = arith.constant 0 : index
    %0 = vector.load %arg0[%c0, %c0_0] : memref<16x8xf32, #tpu.memory_space<vmem>>, vector<16x8xf32>
    %c0_1 = arith.constant 0 : index
    %c0_2 = arith.constant 0 : index
    %1 = vector.load %arg1[%c0_1, %c0_2] : memref<8x128xf32, #tpu.memory_space<vmem>>, vector<8x128xf32>
    %cst = arith.constant dense<0.000000e+00> : vector<16x128xf32>
    %2 = tpu.matmul %0, %1, %cst {dimension_numbers = #tpu.dot_dimension_numbers<[1], [0], [0], [1], [0, 0, 1, 1], [], []>} : vector<16x8xf32>, vector<8x128xf32>, vector<16x128xf32> -> vector<16x128xf32>
    %c0_3 = arith.constant 0 : index
    %c0_4 = arith.constant 0 : index
    %3 = vector.load %arg2[%c0_3, %c0_4] : memref<16x1xf32, #tpu.memory_space<vmem>>, vector<16x1xf32>
    %c0_5 = arith.constant 0 : index
    %c0_6 = arith.constant 0 : index
    %4 = vector.load %arg3[%c0_5, %c0_6] : memref<16x1xf32, #tpu.memory_space<vmem>>, vector<16x1xf32>
    %cst_7 = arith.constant dense<0.000000e+00> : vector<16xf32>
    %5 = vector.multi_reduction <add>, %2, %cst_7 [1] : vector<16x128xf32> to vector<16xf32>
    %6 = vector.shape_cast %5 : vector<16xf32> to vector<16x1xf32>
    %cst_8 = arith.constant 7.812500e-03 : f32
    %7 = vector.broadcast %cst_8 : f32 to vector<16x1xf32>
    %8 = arith.mulf %6, %7 : vector<16x1xf32>
    %9 = vector.broadcast %8 : vector<16x1xf32> to vector<16x128xf32>
    %10 = arith.subf %2, %9 : vector<16x128xf32>
    %11 = arith.mulf %10, %10 : vector<16x128xf32>
    %cst_9 = arith.constant dense<0.000000e+00> : vector<16xf32>
    %12 = vector.multi_reduction <add>, %11, %cst_9 [1] : vector<16x128xf32> to vector<16xf32>
    %13 = vector.shape_cast %12 : vector<16xf32> to vector<16x1xf32>
    %cst_10 = arith.constant 7.812500e-03 : f32
    %14 = vector.broadcast %cst_10 : f32 to vector<16x1xf32>
    %15 = arith.mulf %13, %14 : vector<16x1xf32>
    %cst_11 = arith.constant 9.99999974E-6 : f32
    %16 = vector.broadcast %cst_11 : f32 to vector<16x1xf32>
    %17 = arith.addf %15, %16 : vector<16x1xf32>
    %18 = math.rsqrt %17 : vector<16x1xf32>
    %19 = arith.mulf %3, %18 : vector<16x1xf32>
    %20 = vector.broadcast %19 : vector<16x1xf32> to vector<16x128xf32>
    %21 = arith.mulf %10, %20 : vector<16x128xf32>
    %22 = vector.broadcast %4 : vector<16x1xf32> to vector<16x128xf32>
    %23 = arith.addf %21, %22 : vector<16x128xf32>
    %c0_12 = arith.constant 0 : index
    %c0_13 = arith.constant 0 : index
    %24 = vector.load %arg4[%c0_12, %c0_13] : memref<16x128xf32, #tpu.memory_space<vmem>>, vector<16x128xf32>
    tpu.vector_store %arg4[%c0_12, %c0_13], %23 {strides = array<i32>} : memref<16x128xf32, #tpu.memory_space<vmem>>, vector<16x128xf32>,
    return
  }
}

module attributes {stable_mosaic.version = 11 : i64} {
  func.func @_fused_layer_kernel(%arg0: memref<16x72xf32, #tpu.memory_space<vmem>>, %arg1: memref<72x128xf32, #tpu.memory_space<vmem>>, %arg2: memref<16x1xf32, #tpu.memory_space<vmem>>, %arg3: memref<16x1xf32, #tpu.memory_space<vmem>>, %arg4: memref<16x128xf32, #tpu.memory_space<vmem>>) attributes {dimension_semantics = [], scalar_prefetch = 0 : i64, scratch_operands = 0 : i64, tpu.core_type = #tpu.core_type<tc>} {
    %c0 = arith.constant 0 : index
    %c0_0 = arith.constant 0 : index
    %0 = vector.load %arg0[%c0, %c0_0] : memref<16x72xf32, #tpu.memory_space<vmem>>, vector<16x72xf32>
    %c0_1 = arith.constant 0 : index
    %c0_2 = arith.constant 0 : index
    %1 = vector.load %arg1[%c0_1, %c0_2] : memref<72x128xf32, #tpu.memory_space<vmem>>, vector<72x128xf32>
    %cst = arith.constant dense<0.000000e+00> : vector<16x128xf32>
    %2 = tpu.matmul %0, %1, %cst {dimension_numbers = #tpu.dot_dimension_numbers<[1], [0], [0], [1], [0, 0, 1, 1], [], []>} : vector<16x72xf32>, vector<72x128xf32>, vector<16x128xf32> -> vector<16x128xf32>
    %c0_3 = arith.constant 0 : index
    %c0_4 = arith.constant 0 : index
    %3 = vector.load %arg2[%c0_3, %c0_4] : memref<16x1xf32, #tpu.memory_space<vmem>>, vector<16x1xf32>
    %c0_5 = arith.constant 0 : index
    %c0_6 = arith.constant 0 : index
    %4 = vector.load %arg3[%c0_5, %c0_6] : memref<16x1xf32, #tpu.memory_space<vmem>>, vector<16x1xf32>
    %cst_7 = arith.constant dense<0.000000e+00> : vector<16xf32>
    %5 = vector.multi_reduction <add>, %2, %cst_7 [1] : vector<16x128xf32> to vector<16xf32>
    %6 = vector.shape_cast %5 : vector<16xf32> to vector<16x1xf32>
    %cst_8 = arith.constant 7.812500e-03 : f32
    %7 = vector.broadcast %cst_8 : f32 to vector<16x1xf32>
    %8 = arith.mulf %6, %7 : vector<16x1xf32>
    %9 = vector.broadcast %8 : vector<16x1xf32> to vector<16x128xf32>
    %10 = arith.subf %2, %9 : vector<16x128xf32>
    %11 = arith.mulf %10, %10 : vector<16x128xf32>
    %cst_9 = arith.constant dense<0.000000e+00> : vector<16xf32>
    %12 = vector.multi_reduction <add>, %11, %cst_9 [1] : vector<16x128xf32> to vector<16xf32>
    %13 = vector.shape_cast %12 : vector<16xf32> to vector<16x1xf32>
    %cst_10 = arith.constant 7.812500e-03 : f32
    %14 = vector.broadcast %cst_10 : f32 to vector<16x1xf32>
    %15 = arith.mulf %13, %14 : vector<16x1xf32>
    %cst_11 = arith.constant 9.99999974E-6 : f32
    %16 = vector.broadcast %cst_11 : f32 to vector<16x1xf32>
    %17 = arith.addf %15, %16 : vector<16x1xf32>
    %18 = math.rsqrt %17 : vector<16x1xf32>
    %19 = arith.mulf %3, %18 : vector<16x1xf32>
    %20 = vector.broadcast %19 : vector<16x1xf32> to vector<16x128xf32>
    %21 = arith.mulf %10, %20 : vector<16x128xf32>
    %22 = vector.broadcast %4 : vector<16x1xf32> to vector<16x128xf32>
    %23 = arith.addf %21, %22 : vector<16x128xf32>
    %cst_12 = arith.constant 0.000000e+00 : f32
    %24 = vector.broadcast %cst_12 : f32 to vector<16x128xf32>
    %25 = arith.maximumf %23, %24 : vector<16x128xf32>
    %c0_13 = arith.constant 0 : index
    %c0_14 = arith.constant 0 : index
    %26 = vector.load %arg4[%c0_13, %c0_14] : memref<16x128xf32, #tpu.memory_space<vmem>>, vector<16x128xf32>
    tpu.vector_store %arg4[%c0_13, %c0_14], %25 {strides = array<i32>} : memref<16x128xf32, #tpu.memory_space<vmem>>, vector<16x128xf32>,
    return
  }
}

module attributes {stable_mosaic.version = 11 : i64} {
  func.func @_fused_layer_kernel(%arg0: memref<16x144xf32, #tpu.memory_space<vmem>>, %arg1: memref<144x128xf32, #tpu.memory_space<vmem>>, %arg2: memref<16x1xf32, #tpu.memory_space<vmem>>, %arg3: memref<16x1xf32, #tpu.memory_space<vmem>>, %arg4: memref<16x128xf32, #tpu.memory_space<vmem>>, %arg5: memref<16x128xf32, #tpu.memory_space<vmem>>) attributes {dimension_semantics = [], scalar_prefetch = 0 : i64, scratch_operands = 0 : i64, tpu.core_type = #tpu.core_type<tc>} {
    %c0 = arith.constant 0 : index
    %c0_0 = arith.constant 0 : index
    %0 = vector.load %arg0[%c0, %c0_0] : memref<16x144xf32, #tpu.memory_space<vmem>>, vector<16x144xf32>
    %c0_1 = arith.constant 0 : index
    %c0_2 = arith.constant 0 : index
    %1 = vector.load %arg1[%c0_1, %c0_2] : memref<144x128xf32, #tpu.memory_space<vmem>>, vector<144x128xf32>
    %cst = arith.constant dense<0.000000e+00> : vector<16x128xf32>
    %2 = tpu.matmul %0, %1, %cst {dimension_numbers = #tpu.dot_dimension_numbers<[1], [0], [0], [1], [0, 0, 1, 1], [], []>} : vector<16x144xf32>, vector<144x128xf32>, vector<16x128xf32> -> vector<16x128xf32>
    %c0_3 = arith.constant 0 : index
    %c0_4 = arith.constant 0 : index
    %3 = vector.load %arg2[%c0_3, %c0_4] : memref<16x1xf32, #tpu.memory_space<vmem>>, vector<16x1xf32>
    %c0_5 = arith.constant 0 : index
    %c0_6 = arith.constant 0 : index
    %4 = vector.load %arg3[%c0_5, %c0_6] : memref<16x1xf32, #tpu.memory_space<vmem>>, vector<16x1xf32>
    %cst_7 = arith.constant dense<0.000000e+00> : vector<16xf32>
    %5 = vector.multi_reduction <add>, %2, %cst_7 [1] : vector<16x128xf32> to vector<16xf32>
    %6 = vector.shape_cast %5 : vector<16xf32> to vector<16x1xf32>
    %cst_8 = arith.constant 7.812500e-03 : f32
    %7 = vector.broadcast %cst_8 : f32 to vector<16x1xf32>
    %8 = arith.mulf %6, %7 : vector<16x1xf32>
    %9 = vector.broadcast %8 : vector<16x1xf32> to vector<16x128xf32>
    %10 = arith.subf %2, %9 : vector<16x128xf32>
    %11 = arith.mulf %10, %10 : vector<16x128xf32>
    %cst_9 = arith.constant dense<0.000000e+00> : vector<16xf32>
    %12 = vector.multi_reduction <add>, %11, %cst_9 [1] : vector<16x128xf32> to vector<16xf32>
    %13 = vector.shape_cast %12 : vector<16xf32> to vector<16x1xf32>
    %cst_10 = arith.constant 7.812500e-03 : f32
    %14 = vector.broadcast %cst_10 : f32 to vector<16x1xf32>
    %15 = arith.mulf %13, %14 : vector<16x1xf32>
    %cst_11 = arith.constant 9.99999974E-6 : f32
    %16 = vector.broadcast %cst_11 : f32 to vector<16x1xf32>
    %17 = arith.addf %15, %16 : vector<16x1xf32>
    %18 = math.rsqrt %17 : vector<16x1xf32>
    %19 = arith.mulf %3, %18 : vector<16x1xf32>
    %20 = vector.broadcast %19 : vector<16x1xf32> to vector<16x128xf32>
    %21 = arith.mulf %10, %20 : vector<16x128xf32>
    %22 = vector.broadcast %4 : vector<16x1xf32> to vector<16x128xf32>
    %23 = arith.addf %21, %22 : vector<16x128xf32>
    %c0_12 = arith.constant 0 : index
    %c0_13 = arith.constant 0 : index
    %24 = vector.load %arg4[%c0_12, %c0_13] : memref<16x128xf32, #tpu.memory_space<vmem>>, vector<16x128xf32>
    %25 = arith.addf %23, %24 : vector<16x128xf32>
    %cst_14 = arith.constant 0.000000e+00 : f32
    %26 = vector.broadcast %cst_14 : f32 to vector<16x128xf32>
    %27 = arith.maximumf %25, %26 : vector<16x128xf32>
    %c0_15 = arith.constant 0 : index
    %c0_16 = arith.constant 0 : index
    %28 = vector.load %arg5[%c0_15, %c0_16] : memref<16x128xf32, #tpu.memory_space<vmem>>, vector<16x128xf32>
    tpu.vector_store %arg5[%c0_15, %c0_16], %27 {strides = array<i32>} : memref<16x128xf32, #tpu.memory_space<vmem>>, vector<16x128xf32>,
    return
  }
}

module attributes {stable_mosaic.version = 11 : i64} {
  func.func @_fused_layer_kernel(%arg0: memref<32x144xf32, #tpu.memory_space<vmem>>, %arg1: memref<144x128xf32, #tpu.memory_space<vmem>>, %arg2: memref<32x1xf32, #tpu.memory_space<vmem>>, %arg3: memref<32x1xf32, #tpu.memory_space<vmem>>, %arg4: memref<32x128xf32, #tpu.memory_space<vmem>>) attributes {dimension_semantics = [], scalar_prefetch = 0 : i64, scratch_operands = 0 : i64, tpu.core_type = #tpu.core_type<tc>} {
    %c0 = arith.constant 0 : index
    %c0_0 = arith.constant 0 : index
    %0 = vector.load %arg0[%c0, %c0_0] : memref<32x144xf32, #tpu.memory_space<vmem>>, vector<32x144xf32>
    %c0_1 = arith.constant 0 : index
    %c0_2 = arith.constant 0 : index
    %1 = vector.load %arg1[%c0_1, %c0_2] : memref<144x128xf32, #tpu.memory_space<vmem>>, vector<144x128xf32>
    %cst = arith.constant dense<0.000000e+00> : vector<32x128xf32>
    %2 = tpu.matmul %0, %1, %cst {dimension_numbers = #tpu.dot_dimension_numbers<[1], [0], [0], [1], [0, 0, 1, 1], [], []>} : vector<32x144xf32>, vector<144x128xf32>, vector<32x128xf32> -> vector<32x128xf32>
    %c0_3 = arith.constant 0 : index
    %c0_4 = arith.constant 0 : index
    %3 = vector.load %arg2[%c0_3, %c0_4] : memref<32x1xf32, #tpu.memory_space<vmem>>, vector<32x1xf32>
    %c0_5 = arith.constant 0 : index
    %c0_6 = arith.constant 0 : index
    %4 = vector.load %arg3[%c0_5, %c0_6] : memref<32x1xf32, #tpu.memory_space<vmem>>, vector<32x1xf32>
    %cst_7 = arith.constant dense<0.000000e+00> : vector<32xf32>
    %5 = vector.multi_reduction <add>, %2, %cst_7 [1] : vector<32x128xf32> to vector<32xf32>
    %6 = vector.shape_cast %5 : vector<32xf32> to vector<32x1xf32>
    %cst_8 = arith.constant 7.812500e-03 : f32
    %7 = vector.broadcast %cst_8 : f32 to vector<32x1xf32>
    %8 = arith.mulf %6, %7 : vector<32x1xf32>
    %9 = vector.broadcast %8 : vector<32x1xf32> to vector<32x128xf32>
    %10 = arith.subf %2, %9 : vector<32x128xf32>
    %11 = arith.mulf %10, %10 : vector<32x128xf32>
    %cst_9 = arith.constant dense<0.000000e+00> : vector<32xf32>
    %12 = vector.multi_reduction <add>, %11, %cst_9 [1] : vector<32x128xf32> to vector<32xf32>
    %13 = vector.shape_cast %12 : vector<32xf32> to vector<32x1xf32>
    %cst_10 = arith.constant 7.812500e-03 : f32
    %14 = vector.broadcast %cst_10 : f32 to vector<32x1xf32>
    %15 = arith.mulf %13, %14 : vector<32x1xf32>
    %cst_11 = arith.constant 9.99999974E-6 : f32
    %16 = vector.broadcast %cst_11 : f32 to vector<32x1xf32>
    %17 = arith.addf %15, %16 : vector<32x1xf32>
    %18 = math.rsqrt %17 : vector<32x1xf32>
    %19 = arith.mulf %3, %18 : vector<32x1xf32>
    %20 = vector.broadcast %19 : vector<32x1xf32> to vector<32x128xf32>
    %21 = arith.mulf %10, %20 : vector<32x128xf32>
    %22 = vector.broadcast %4 : vector<32x1xf32> to vector<32x128xf32>
    %23 = arith.addf %21, %22 : vector<32x128xf32>
    %cst_12 = arith.constant 0.000000e+00 : f32
    %24 = vector.broadcast %cst_12 : f32 to vector<32x128xf32>
    %25 = arith.maximumf %23, %24 : vector<32x128xf32>
    %c0_13 = arith.constant 0 : index
    %c0_14 = arith.constant 0 : index
    %26 = vector.load %arg4[%c0_13, %c0_14] : memref<32x128xf32, #tpu.memory_space<vmem>>, vector<32x128xf32>
    tpu.vector_store %arg4[%c0_13, %c0_14], %25 {strides = array<i32>} : memref<32x128xf32, #tpu.memory_space<vmem>>, vector<32x128xf32>,
    return
  }
}

module attributes {stable_mosaic.version = 11 : i64} {
  func.func @_fused_layer_kernel(%arg0: memref<16x144xf32, #tpu.memory_space<vmem>>, %arg1: memref<144x128xf32, #tpu.memory_space<vmem>>, %arg2: memref<16x144xf32, #tpu.memory_space<vmem>>, %arg3: memref<144x128xf32, #tpu.memory_space<vmem>>, %arg4: memref<16x1xf32, #tpu.memory_space<vmem>>, %arg5: memref<16x1xf32, #tpu.memory_space<vmem>>, %arg6: memref<16x128xf32, #tpu.memory_space<vmem>>) attributes {dimension_semantics = [], scalar_prefetch = 0 : i64, scratch_operands = 0 : i64, tpu.core_type = #tpu.core_type<tc>} {
    %c0 = arith.constant 0 : index
    %c0_0 = arith.constant 0 : index
    %0 = vector.load %arg0[%c0, %c0_0] : memref<16x144xf32, #tpu.memory_space<vmem>>, vector<16x144xf32>
    %c0_1 = arith.constant 0 : index
    %c0_2 = arith.constant 0 : index
    %1 = vector.load %arg1[%c0_1, %c0_2] : memref<144x128xf32, #tpu.memory_space<vmem>>, vector<144x128xf32>
    %cst = arith.constant dense<0.000000e+00> : vector<16x128xf32>
    %2 = tpu.matmul %0, %1, %cst {dimension_numbers = #tpu.dot_dimension_numbers<[1], [0], [0], [1], [0, 0, 1, 1], [], []>} : vector<16x144xf32>, vector<144x128xf32>, vector<16x128xf32> -> vector<16x128xf32>
    %c0_3 = arith.constant 0 : index
    %c0_4 = arith.constant 0 : index
    %3 = vector.load %arg2[%c0_3, %c0_4] : memref<16x144xf32, #tpu.memory_space<vmem>>, vector<16x144xf32>
    %c0_5 = arith.constant 0 : index
    %c0_6 = arith.constant 0 : index
    %4 = vector.load %arg3[%c0_5, %c0_6] : memref<144x128xf32, #tpu.memory_space<vmem>>, vector<144x128xf32>
    %cst_7 = arith.constant dense<0.000000e+00> : vector<16x128xf32>
    %5 = tpu.matmul %3, %4, %cst_7 {dimension_numbers = #tpu.dot_dimension_numbers<[1], [0], [0], [1], [0, 0, 1, 1], [], []>} : vector<16x144xf32>, vector<144x128xf32>, vector<16x128xf32> -> vector<16x128xf32>
    %6 = arith.addf %2, %5 : vector<16x128xf32>
    %c0_8 = arith.constant 0 : index
    %c0_9 = arith.constant 0 : index
    %7 = vector.load %arg4[%c0_8, %c0_9] : memref<16x1xf32, #tpu.memory_space<vmem>>, vector<16x1xf32>
    %c0_10 = arith.constant 0 : index
    %c0_11 = arith.constant 0 : index
    %8 = vector.load %arg5[%c0_10, %c0_11] : memref<16x1xf32, #tpu.memory_space<vmem>>, vector<16x1xf32>
    %cst_12 = arith.constant dense<0.000000e+00> : vector<16xf32>
    %9 = vector.multi_reduction <add>, %6, %cst_12 [1] : vector<16x128xf32> to vector<16xf32>
    %10 = vector.shape_cast %9 : vector<16xf32> to vector<16x1xf32>
    %cst_13 = arith.constant 7.812500e-03 : f32
    %11 = vector.broadcast %cst_13 : f32 to vector<16x1xf32>
    %12 = arith.mulf %10, %11 : vector<16x1xf32>
    %13 = vector.broadcast %12 : vector<16x1xf32> to vector<16x128xf32>
    %14 = arith.subf %6, %13 : vector<16x128xf32>
    %15 = arith.mulf %14, %14 : vector<16x128xf32>
    %cst_14 = arith.constant dense<0.000000e+00> : vector<16xf32>
    %16 = vector.multi_reduction <add>, %15, %cst_14 [1] : vector<16x128xf32> to vector<16xf32>
    %17 = vector.shape_cast %16 : vector<16xf32> to vector<16x1xf32>
    %cst_15 = arith.constant 7.812500e-03 : f32
    %18 = vector.broadcast %cst_15 : f32 to vector<16x1xf32>
    %19 = arith.mulf %17, %18 : vector<16x1xf32>
    %cst_16 = arith.constant 9.99999974E-6 : f32
    %20 = vector.broadcast %cst_16 : f32 to vector<16x1xf32>
    %21 = arith.addf %19, %20 : vector<16x1xf32>
    %22 = math.rsqrt %21 : vector<16x1xf32>
    %23 = arith.mulf %7, %22 : vector<16x1xf32>
    %24 = vector.broadcast %23 : vector<16x1xf32> to vector<16x128xf32>
    %25 = arith.mulf %14, %24 : vector<16x128xf32>
    %26 = vector.broadcast %8 : vector<16x1xf32> to vector<16x128xf32>
    %27 = arith.addf %25, %26 : vector<16x128xf32>
    %cst_17 = arith.constant 0.000000e+00 : f32
    %28 = vector.broadcast %cst_17 : f32 to vector<16x128xf32>
    %29 = arith.maximumf %27, %28 : vector<16x128xf32>
    %c0_18 = arith.constant 0 : index
    %c0_19 = arith.constant 0 : index
    %30 = vector.load %arg6[%c0_18, %c0_19] : memref<16x128xf32, #tpu.memory_space<vmem>>, vector<16x128xf32>
    tpu.vector_store %arg6[%c0_18, %c0_19], %29 {strides = array<i32>} : memref<16x128xf32, #tpu.memory_space<vmem>>, vector<16x128xf32>,
    return
  }
}

module attributes {stable_mosaic.version = 11 : i64} {
  func.func @_fused_layer_kernel(%arg0: memref<16x288xf32, #tpu.memory_space<vmem>>, %arg1: memref<288x128xf32, #tpu.memory_space<vmem>>, %arg2: memref<16x1xf32, #tpu.memory_space<vmem>>, %arg3: memref<16x1xf32, #tpu.memory_space<vmem>>, %arg4: memref<16x128xf32, #tpu.memory_space<vmem>>) attributes {dimension_semantics = [], scalar_prefetch = 0 : i64, scratch_operands = 0 : i64, tpu.core_type = #tpu.core_type<tc>} {
    %c0 = arith.constant 0 : index
    %c0_0 = arith.constant 0 : index
    %0 = vector.load %arg0[%c0, %c0_0] : memref<16x288xf32, #tpu.memory_space<vmem>>, vector<16x288xf32>
    %c0_1 = arith.constant 0 : index
    %c0_2 = arith.constant 0 : index
    %1 = vector.load %arg1[%c0_1, %c0_2] : memref<288x128xf32, #tpu.memory_space<vmem>>, vector<288x128xf32>
    %cst = arith.constant dense<0.000000e+00> : vector<16x128xf32>
    %2 = tpu.matmul %0, %1, %cst {dimension_numbers = #tpu.dot_dimension_numbers<[1], [0], [0], [1], [0, 0, 1, 1], [], []>} : vector<16x288xf32>, vector<288x128xf32>, vector<16x128xf32> -> vector<16x128xf32>
    %c0_3 = arith.constant 0 : index
    %c0_4 = arith.constant 0 : index
    %3 = vector.load %arg2[%c0_3, %c0_4] : memref<16x1xf32, #tpu.memory_space<vmem>>, vector<16x1xf32>
    %c0_5 = arith.constant 0 : index
    %c0_6 = arith.constant 0 : index
    %4 = vector.load %arg3[%c0_5, %c0_6] : memref<16x1xf32, #tpu.memory_space<vmem>>, vector<16x1xf32>
    %cst_7 = arith.constant dense<0.000000e+00> : vector<16xf32>
    %5 = vector.multi_reduction <add>, %2, %cst_7 [1] : vector<16x128xf32> to vector<16xf32>
    %6 = vector.shape_cast %5 : vector<16xf32> to vector<16x1xf32>
    %cst_8 = arith.constant 7.812500e-03 : f32
    %7 = vector.broadcast %cst_8 : f32 to vector<16x1xf32>
    %8 = arith.mulf %6, %7 : vector<16x1xf32>
    %9 = vector.broadcast %8 : vector<16x1xf32> to vector<16x128xf32>
    %10 = arith.subf %2, %9 : vector<16x128xf32>
    %11 = arith.mulf %10, %10 : vector<16x128xf32>
    %cst_9 = arith.constant dense<0.000000e+00> : vector<16xf32>
    %12 = vector.multi_reduction <add>, %11, %cst_9 [1] : vector<16x128xf32> to vector<16xf32>
    %13 = vector.shape_cast %12 : vector<16xf32> to vector<16x1xf32>
    %cst_10 = arith.constant 7.812500e-03 : f32
    %14 = vector.broadcast %cst_10 : f32 to vector<16x1xf32>
    %15 = arith.mulf %13, %14 : vector<16x1xf32>
    %cst_11 = arith.constant 9.99999974E-6 : f32
    %16 = vector.broadcast %cst_11 : f32 to vector<16x1xf32>
    %17 = arith.addf %15, %16 : vector<16x1xf32>
    %18 = math.rsqrt %17 : vector<16x1xf32>
    %19 = arith.mulf %3, %18 : vector<16x1xf32>
    %20 = vector.broadcast %19 : vector<16x1xf32> to vector<16x128xf32>
    %21 = arith.mulf %10, %20 : vector<16x128xf32>
    %22 = vector.broadcast %4 : vector<16x1xf32> to vector<16x128xf32>
    %23 = arith.addf %21, %22 : vector<16x128xf32>
    %cst_12 = arith.constant 0.000000e+00 : f32
    %24 = vector.broadcast %cst_12 : f32 to vector<16x128xf32>
    %25 = arith.maximumf %23, %24 : vector<16x128xf32>
    %c0_13 = arith.constant 0 : index
    %c0_14 = arith.constant 0 : index
    %26 = vector.load %arg4[%c0_13, %c0_14] : memref<16x128xf32, #tpu.memory_space<vmem>>, vector<16x128xf32>
    tpu.vector_store %arg4[%c0_13, %c0_14], %25 {strides = array<i32>} : memref<16x128xf32, #tpu.memory_space<vmem>>, vector<16x128xf32>,
    return
  }
}

module attributes {stable_mosaic.version = 11 : i64} {
  func.func @_fused_layer_kernel(%arg0: memref<8x144xf32, #tpu.memory_space<vmem>>, %arg1: memref<144x512xf32, #tpu.memory_space<vmem>>, %arg2: memref<8x1xf32, #tpu.memory_space<vmem>>, %arg3: memref<8x1xf32, #tpu.memory_space<vmem>>, %arg4: memref<8x512xf32, #tpu.memory_space<vmem>>) attributes {dimension_semantics = [], scalar_prefetch = 0 : i64, scratch_operands = 0 : i64, tpu.core_type = #tpu.core_type<tc>} {
    %c0 = arith.constant 0 : index
    %c0_0 = arith.constant 0 : index
    %0 = vector.load %arg0[%c0, %c0_0] : memref<8x144xf32, #tpu.memory_space<vmem>>, vector<8x144xf32>
    %c0_1 = arith.constant 0 : index
    %c0_2 = arith.constant 0 : index
    %1 = vector.load %arg1[%c0_1, %c0_2] : memref<144x512xf32, #tpu.memory_space<vmem>>, vector<144x512xf32>
    %cst = arith.constant dense<0.000000e+00> : vector<8x512xf32>
    %2 = tpu.matmul %0, %1, %cst {dimension_numbers = #tpu.dot_dimension_numbers<[1], [0], [0], [1], [0, 0, 1, 1], [], []>} : vector<8x144xf32>, vector<144x512xf32>, vector<8x512xf32> -> vector<8x512xf32>
    %c0_3 = arith.constant 0 : index
    %c0_4 = arith.constant 0 : index
    %3 = vector.load %arg2[%c0_3, %c0_4] : memref<8x1xf32, #tpu.memory_space<vmem>>, vector<8x1xf32>
    %c0_5 = arith.constant 0 : index
    %c0_6 = arith.constant 0 : index
    %4 = vector.load %arg3[%c0_5, %c0_6] : memref<8x1xf32, #tpu.memory_space<vmem>>, vector<8x1xf32>
    %cst_7 = arith.constant dense<0.000000e+00> : vector<8xf32>
    %5 = vector.multi_reduction <add>, %2, %cst_7 [1] : vector<8x512xf32> to vector<8xf32>
    %6 = vector.shape_cast %5 : vector<8xf32> to vector<8x1xf32>
    %cst_8 = arith.constant 0.001953125 : f32
    %7 = vector.broadcast %cst_8 : f32 to vector<8x1xf32>
    %8 = arith.mulf %6, %7 : vector<8x1xf32>
    %9 = vector.broadcast %8 : vector<8x1xf32> to vector<8x512xf32>
    %10 = arith.subf %2, %9 : vector<8x512xf32>
    %11 = arith.mulf %10, %10 : vector<8x512xf32>
    %cst_9 = arith.constant dense<0.000000e+00> : vector<8xf32>
    %12 = vector.multi_reduction <add>, %11, %cst_9 [1] : vector<8x512xf32> to vector<8xf32>
    %13 = vector.shape_cast %12 : vector<8xf32> to vector<8x1xf32>
    %cst_10 = arith.constant 0.001953125 : f32
    %14 = vector.broadcast %cst_10 : f32 to vector<8x1xf32>
    %15 = arith.mulf %13, %14 : vector<8x1xf32>
    %cst_11 = arith.constant 9.99999974E-6 : f32
    %16 = vector.broadcast %cst_11 : f32 to vector<8x1xf32>
    %17 = arith.addf %15, %16 : vector<8x1xf32>
    %18 = math.rsqrt %17 : vector<8x1xf32>
    %19 = arith.mulf %3, %18 : vector<8x1xf32>
    %20 = vector.broadcast %19 : vector<8x1xf32> to vector<8x512xf32>
    %21 = arith.mulf %10, %20 : vector<8x512xf32>
    %22 = vector.broadcast %4 : vector<8x1xf32> to vector<8x512xf32>
    %23 = arith.addf %21, %22 : vector<8x512xf32>
    %cst_12 = arith.constant 0.000000e+00 : f32
    %24 = vector.broadcast %cst_12 : f32 to vector<8x512xf32>
    %25 = arith.maximumf %23, %24 : vector<8x512xf32>
    %c0_13 = arith.constant 0 : index
    %c0_14 = arith.constant 0 : index
    %26 = vector.load %arg4[%c0_13, %c0_14] : memref<8x512xf32, #tpu.memory_space<vmem>>, vector<8x512xf32>
    tpu.vector_store %arg4[%c0_13, %c0_14], %25 {strides = array<i32>} : memref<8x512xf32, #tpu.memory_space<vmem>>, vector<8x512xf32>,
    return
  }
}

module attributes {stable_mosaic.version = 11 : i64} {
  func.func @_fused_layer_kernel(%arg0: memref<8x72xf32, #tpu.memory_space<vmem>>, %arg1: memref<72x512xf32, #tpu.memory_space<vmem>>, %arg2: memref<8x72xf32, #tpu.memory_space<vmem>>, %arg3: memref<72x512xf32, #tpu.memory_space<vmem>>, %arg4: memref<8x1xf32, #tpu.memory_space<vmem>>, %arg5: memref<8x1xf32, #tpu.memory_space<vmem>>, %arg6: memref<8x512xf32, #tpu.memory_space<vmem>>) attributes {dimension_semantics = [], scalar_prefetch = 0 : i64, scratch_operands = 0 : i64, tpu.core_type = #tpu.core_type<tc>} {
    %c0 = arith.constant 0 : index
    %c0_0 = arith.constant 0 : index
    %0 = vector.load %arg0[%c0, %c0_0] : memref<8x72xf32, #tpu.memory_space<vmem>>, vector<8x72xf32>
    %c0_1 = arith.constant 0 : index
    %c0_2 = arith.constant 0 : index
    %1 = vector.load %arg1[%c0_1, %c0_2] : memref<72x512xf32, #tpu.memory_space<vmem>>, vector<72x512xf32>
    %cst = arith.constant dense<0.000000e+00> : vector<8x512xf32>
    %2 = tpu.matmul %0, %1, %cst {dimension_numbers = #tpu.dot_dimension_numbers<[1], [0], [0], [1], [0, 0, 1, 1], [], []>} : vector<8x72xf32>, vector<72x512xf32>, vector<8x512xf32> -> vector<8x512xf32>
    %c0_3 = arith.constant 0 : index
    %c0_4 = arith.constant 0 : index
    %3 = vector.load %arg2[%c0_3, %c0_4] : memref<8x72xf32, #tpu.memory_space<vmem>>, vector<8x72xf32>
    %c0_5 = arith.constant 0 : index
    %c0_6 = arith.constant 0 : index
    %4 = vector.load %arg3[%c0_5, %c0_6] : memref<72x512xf32, #tpu.memory_space<vmem>>, vector<72x512xf32>
    %cst_7 = arith.constant dense<0.000000e+00> : vector<8x512xf32>
    %5 = tpu.matmul %3, %4, %cst_7 {dimension_numbers = #tpu.dot_dimension_numbers<[1], [0], [0], [1], [0, 0, 1, 1], [], []>} : vector<8x72xf32>, vector<72x512xf32>, vector<8x512xf32> -> vector<8x512xf32>
    %6 = arith.addf %2, %5 : vector<8x512xf32>
    %c0_8 = arith.constant 0 : index
    %c0_9 = arith.constant 0 : index
    %7 = vector.load %arg4[%c0_8, %c0_9] : memref<8x1xf32, #tpu.memory_space<vmem>>, vector<8x1xf32>
    %c0_10 = arith.constant 0 : index
    %c0_11 = arith.constant 0 : index
    %8 = vector.load %arg5[%c0_10, %c0_11] : memref<8x1xf32, #tpu.memory_space<vmem>>, vector<8x1xf32>
    %cst_12 = arith.constant dense<0.000000e+00> : vector<8xf32>
    %9 = vector.multi_reduction <add>, %6, %cst_12 [1] : vector<8x512xf32> to vector<8xf32>
    %10 = vector.shape_cast %9 : vector<8xf32> to vector<8x1xf32>
    %cst_13 = arith.constant 0.001953125 : f32
    %11 = vector.broadcast %cst_13 : f32 to vector<8x1xf32>
    %12 = arith.mulf %10, %11 : vector<8x1xf32>
    %13 = vector.broadcast %12 : vector<8x1xf32> to vector<8x512xf32>
    %14 = arith.subf %6, %13 : vector<8x512xf32>
    %15 = arith.mulf %14, %14 : vector<8x512xf32>
    %cst_14 = arith.constant dense<0.000000e+00> : vector<8xf32>
    %16 = vector.multi_reduction <add>, %15, %cst_14 [1] : vector<8x512xf32> to vector<8xf32>
    %17 = vector.shape_cast %16 : vector<8xf32> to vector<8x1xf32>
    %cst_15 = arith.constant 0.001953125 : f32
    %18 = vector.broadcast %cst_15 : f32 to vector<8x1xf32>
    %19 = arith.mulf %17, %18 : vector<8x1xf32>
    %cst_16 = arith.constant 9.99999974E-6 : f32
    %20 = vector.broadcast %cst_16 : f32 to vector<8x1xf32>
    %21 = arith.addf %19, %20 : vector<8x1xf32>
    %22 = math.rsqrt %21 : vector<8x1xf32>
    %23 = arith.mulf %7, %22 : vector<8x1xf32>
    %24 = vector.broadcast %23 : vector<8x1xf32> to vector<8x512xf32>
    %25 = arith.mulf %14, %24 : vector<8x512xf32>
    %26 = vector.broadcast %8 : vector<8x1xf32> to vector<8x512xf32>
    %27 = arith.addf %25, %26 : vector<8x512xf32>
    %cst_17 = arith.constant 0.000000e+00 : f32
    %28 = vector.broadcast %cst_17 : f32 to vector<8x512xf32>
    %29 = arith.maximumf %27, %28 : vector<8x512xf32>
    %c0_18 = arith.constant 0 : index
    %c0_19 = arith.constant 0 : index
    %30 = vector.load %arg6[%c0_18, %c0_19] : memref<8x512xf32, #tpu.memory_space<vmem>>, vector<8x512xf32>
    tpu.vector_store %arg6[%c0_18, %c0_19], %29 {strides = array<i32>} : memref<8x512xf32, #tpu.memory_space<vmem>>, vector<8x512xf32>,
    return
  }
}

module attributes {stable_mosaic.version = 11 : i64} {
  func.func @_fused_layer_kernel(%arg0: memref<8x72xf32, #tpu.memory_space<vmem>>, %arg1: memref<72x2048xf32, #tpu.memory_space<vmem>>, %arg2: memref<8x1xf32, #tpu.memory_space<vmem>>, %arg3: memref<8x1xf32, #tpu.memory_space<vmem>>, %arg4: memref<8x2048xf32, #tpu.memory_space<vmem>>) attributes {dimension_semantics = [], scalar_prefetch = 0 : i64, scratch_operands = 0 : i64, tpu.core_type = #tpu.core_type<tc>} {
    %c0 = arith.constant 0 : index
    %c0_0 = arith.constant 0 : index
    %0 = vector.load %arg0[%c0, %c0_0] : memref<8x72xf32, #tpu.memory_space<vmem>>, vector<8x72xf32>
    %c0_1 = arith.constant 0 : index
    %c0_2 = arith.constant 0 : index
    %1 = vector.load %arg1[%c0_1, %c0_2] : memref<72x2048xf32, #tpu.memory_space<vmem>>, vector<72x2048xf32>
    %cst = arith.constant dense<0.000000e+00> : vector<8x2048xf32>
    %2 = tpu.matmul %0, %1, %cst {dimension_numbers = #tpu.dot_dimension_numbers<[1], [0], [0], [1], [0, 0, 1, 1], [], []>} : vector<8x72xf32>, vector<72x2048xf32>, vector<8x2048xf32> -> vector<8x2048xf32>
    %c0_3 = arith.constant 0 : index
    %c0_4 = arith.constant 0 : index
    %3 = vector.load %arg2[%c0_3, %c0_4] : memref<8x1xf32, #tpu.memory_space<vmem>>, vector<8x1xf32>
    %c0_5 = arith.constant 0 : index
    %c0_6 = arith.constant 0 : index
    %4 = vector.load %arg3[%c0_5, %c0_6] : memref<8x1xf32, #tpu.memory_space<vmem>>, vector<8x1xf32>
    %cst_7 = arith.constant dense<0.000000e+00> : vector<8xf32>
    %5 = vector.multi_reduction <add>, %2, %cst_7 [1] : vector<8x2048xf32> to vector<8xf32>
    %6 = vector.shape_cast %5 : vector<8xf32> to vector<8x1xf32>
    %cst_8 = arith.constant 4.8828125E-4 : f32
    %7 = vector.broadcast %cst_8 : f32 to vector<8x1xf32>
    %8 = arith.mulf %6, %7 : vector<8x1xf32>
    %9 = vector.broadcast %8 : vector<8x1xf32> to vector<8x2048xf32>
    %10 = arith.subf %2, %9 : vector<8x2048xf32>
    %11 = arith.mulf %10, %10 : vector<8x2048xf32>
    %cst_9 = arith.constant dense<0.000000e+00> : vector<8xf32>
    %12 = vector.multi_reduction <add>, %11, %cst_9 [1] : vector<8x2048xf32> to vector<8xf32>
    %13 = vector.shape_cast %12 : vector<8xf32> to vector<8x1xf32>
    %cst_10 = arith.constant 4.8828125E-4 : f32
    %14 = vector.broadcast %cst_10 : f32 to vector<8x1xf32>
    %15 = arith.mulf %13, %14 : vector<8x1xf32>
    %cst_11 = arith.constant 9.99999974E-6 : f32
    %16 = vector.broadcast %cst_11 : f32 to vector<8x1xf32>
    %17 = arith.addf %15, %16 : vector<8x1xf32>
    %18 = math.rsqrt %17 : vector<8x1xf32>
    %19 = arith.mulf %3, %18 : vector<8x1xf32>
    %20 = vector.broadcast %19 : vector<8x1xf32> to vector<8x2048xf32>
    %21 = arith.mulf %10, %20 : vector<8x2048xf32>
    %22 = vector.broadcast %4 : vector<8x1xf32> to vector<8x2048xf32>
    %23 = arith.addf %21, %22 : vector<8x2048xf32>
    %cst_12 = arith.constant 0.000000e+00 : f32
    %24 = vector.broadcast %cst_12 : f32 to vector<8x2048xf32>
    %25 = arith.maximumf %23, %24 : vector<8x2048xf32>
    %c0_13 = arith.constant 0 : index
    %c0_14 = arith.constant 0 : index
    %26 = vector.load %arg4[%c0_13, %c0_14] : memref<8x2048xf32, #tpu.memory_space<vmem>>, vector<8x2048xf32>
    tpu.vector_store %arg4[%c0_13, %c0_14], %25 {strides = array<i32>} : memref<8x2048xf32, #tpu.memory_space<vmem>>, vector<8x2048xf32>,
    return
  }
}

module attributes {stable_mosaic.version = 11 : i64} {
  func.func @_fused_layer_kernel(%arg0: memref<8x72xf32, #tpu.memory_space<vmem>>, %arg1: memref<72x512xf32, #tpu.memory_space<vmem>>, %arg2: memref<8x512xf32, #tpu.memory_space<vmem>>) attributes {dimension_semantics = [], scalar_prefetch = 0 : i64, scratch_operands = 0 : i64, tpu.core_type = #tpu.core_type<tc>} {
    %c0 = arith.constant 0 : index
    %c0_0 = arith.constant 0 : index
    %0 = vector.load %arg0[%c0, %c0_0] : memref<8x72xf32, #tpu.memory_space<vmem>>, vector<8x72xf32>
    %c0_1 = arith.constant 0 : index
    %c0_2 = arith.constant 0 : index
    %1 = vector.load %arg1[%c0_1, %c0_2] : memref<72x512xf32, #tpu.memory_space<vmem>>, vector<72x512xf32>
    %cst = arith.constant dense<0.000000e+00> : vector<8x512xf32>
    %2 = tpu.matmul %0, %1, %cst {dimension_numbers = #tpu.dot_dimension_numbers<[1], [0], [0], [1], [0, 0, 1, 1], [], []>} : vector<8x72xf32>, vector<72x512xf32>, vector<8x512xf32> -> vector<8x512xf32>
    %3 = arith.negf %2 : vector<8x512xf32>
    %4 = math.exp %3 : vector<8x512xf32>
    %cst_3 = arith.constant 1.000000e+00 : f32
    %5 = vector.broadcast %cst_3 : f32 to vector<8x512xf32>
    %6 = arith.addf %5, %4 : vector<8x512xf32>
    %7 = arith.divf %5, %6 : vector<8x512xf32>
    %c0_4 = arith.constant 0 : index
    %c0_5 = arith.constant 0 : index
    %8 = vector.load %arg2[%c0_4, %c0_5] : memref<8x512xf32, #tpu.memory_space<vmem>>, vector<8x512xf32>
    tpu.vector_store %arg2[%c0_4, %c0_5], %7 {strides = array<i32>} : memref<8x512xf32, #tpu.memory_space<vmem>>, vector<8x512xf32>,
    return
  }
}

</mosaic_0001>

<bundles_post_ra>
// kernel: hyper_unet_forward.14
= control target key start
LH: loop header
LB: loop body
LE: loop exit
PB: predicated region body
PF: predicated region fallthrough
CT: control target
= control target key end

     0   :  { %v259_v3 = vmov 0.0   ;;  %vm34_vm0 = vcmask 261120   ;;  %v260_v46 = vmov 0   ;;  %s355_s1 = inlined_call_operand.vmem [shape: f32[32,512], index: 1, kind: input, shape index: {}]   ;;  %s356_s0 = inlined_call_operand.vmem [shape: f32[8,32], index: 0, kind: input, shape index: {}]   ;;  %s357_s2 = inlined_call_operand.vmem [shape: f32[8,1], index: 2, kind: input, shape index: {}]   ;;  %s358_s3 = inlined_call_operand.vmem [shape: f32[8,1], index: 3, kind: input, shape index: {}]   ;;  %s359_s4 = inlined_call_operand.vmem [shape: f32[8,512], index: 4, kind: output, shape index: {}]  }
   0x1   :  { %v19_v0 = vld [vmem:[%s355_s1 + $0x8] sm:$0xff]  ;;  %v18_v2 = vld [vmem:[%s355_s1] sm:$0xff]  ;;  %102 = vmatprep.mubr.f32.mxu0 %v259_v3  ;;  %173 = vmatprep.mubr.f32.mxu1 %v259_v3  ;;  %v21_v6 = vld [vmem:[%s355_s1 + $0x18] sm:$0xff] }
   0x2   :  { %v23_v1 = vld [vmem:[%s355_s1 + $0x28] sm:$0xff]  ;;  %v22_v5 = vld [vmem:[%s355_s1 + $0x20] sm:$0xff]  ;;  %v25_v7 = vld [vmem:[%s355_s1 + $0x38] sm:$0xff]  ;;  %255 = vset.pattern.permute.xlu1 %v260_v46  ;;  %256 = vset.pattern.permute.xlu0 %v260_v46 }
   0x3   :  { %v237_v4 = vpack.c.bf16 %v23_v1, %v19_v0  ;;  %v239_v8 = vpack.c.bf16 %v22_v5, %v18_v2  ;;  %v245_v9 = vpack.c.bf16 %v25_v7, %v21_v6  ;;  %v20_v10 = vld [vmem:[%s355_s1 + $0x10] sm:$0xff]  ;;  %v27_v12 = vld [vmem:[%s355_s1 + $0x48] sm:$0xff]  ;;  %v26_v15 = vld [vmem:[%s355_s1 + $0x40] sm:$0xff] }
   0x4   :  { %v24_v11 = vld [vmem:[%s355_s1 + $0x30] sm:$0xff]  ;;  %v31_v14 = vld [vmem:[%s355_s1 + $0x68] sm:$0xff]  ;;  %v30_v16 = vld [vmem:[%s355_s1 + $0x60] sm:$0xff] }
   0x5   :  { %238 = vmatprep.subr.bf16.mxu0 %v237_v4  ;;  %v247_v13 = vpack.c.bf16 %v24_v11, %v20_v10  ;;  %246 = vmatprep.subr.bf16.mxu1 %v245_v9  ;;  %v241_v17 = vpack.c.bf16 %v31_v14, %v27_v12  ;;  %v243_v18 = vpack.c.bf16 %v30_v16, %v26_v15  ;;  %v29_v19 = vld [vmem:[%s355_s1 + $0x58] sm:$0xff]  ;;  %v28_v21 = vld [vmem:[%s355_s1 + $0x50] sm:$0xff]  ;;  %v17_v25 = vld [vmem:[%s356_s0] sm:$0xff] }
   0x6   :  { %240 = vmatpush1.bf16.msra.mxu0 %v239_v8  ;;  %v33_v20 = vld [vmem:[%s355_s1 + $0x78] sm:$0xff]  ;;  %v32_v23 = vld [vmem:[%s355_s1 + $0x70] sm:$0xff]  ;;  %v180_v50 = vld [vmem:[%s357_s2] sm:$0xff] }
   0x7   :  { %248 = vmatpush1.bf16.msra.mxu1 %v247_v13  ;;  %v249_v22 = vpack.c.bf16 %v33_v20, %v29_v19  ;;  %242 = vmatprep.subr.bf16.mxu0 %v241_v17  ;;  %v251_v24 = vpack.c.bf16 %v32_v23, %v28_v21  ;;  %v181_v53 = vld [vmem:[%s358_s3] sm:$0xff] }
   0x9   :  { %250 = vmatprep.subr.bf16.mxu1 %v249_v22 }
   0xa   :  { %244 = vmatpush1.bf16.msra.mxu0 %v243_v18 }
   0xb   :  { %252 = vmatpush1.bf16.msra.mxu1 %v251_v24 }
   0xd   :  { %235 = vmatmul.mubr.msk.f32.vlgmr.msra.gmra.mrb[0].mxu0 %vm34_vm0, %v17_v25 }
   0xe   :  { %236 = vmatmul.mubr.msk.f32.vlgmr.msra.gmra.mrb[0].mxu1 %vm34_vm0, %v17_v25 }
  0xe0   :  { %v104_v26 = vpop.f32.mrb[0].mxu0 }
  0xe1   :  { %v106_v27 = vpop.f32.mrb[1].mxu0  ;;  %v175_v28 = vpop.f32.mrb[0].mxu1 }
  0xe2   :  { %v182_v29 = vadd.f32 %v106_v27, %v104_v26  ;;  %v177_v30 = vpop.f32.mrb[1].mxu1 }
  0xe4   :  { %v183_v31 = vadd.f32 %v182_v29, %v175_v28 }
  0xe6   :  { %v184_v32 = vadd.f32 %v183_v31, %v177_v30 }
  0xe8   :  { %185 = vadd.xlane.f32.xlu0 %v184_v32 }
 0x175   :  { %v186_v33 = vpop.xlane.xlu0 %185 }
 0x176   :  { %v187_v34 = vmul.f32 0.001953125, %v186_v33 }
 0x178   :  { %v188_v35 = vsub.f32 %v104_v26, %v187_v34  ;;  %v189_v36 = vsub.f32 %v106_v27, %v187_v34  ;;  %v190_v37 = vsub.f32 %v175_v28, %v187_v34  ;;  %v191_v38 = vsub.f32 %v177_v30, %v187_v34 }
 0x17a   :  { %v192_v39 = vmul.f32 %v188_v35, %v188_v35  ;;  %v193_v40 = vmul.f32 %v189_v36, %v189_v36  ;;  %v194_v41 = vmul.f32 %v190_v37, %v190_v37  ;;  %v195_v43 = vmul.f32 %v191_v38, %v191_v38 }
 0x17c   :  { %v196_v42 = vadd.f32 %v193_v40, %v192_v39 }
 0x17e   :  { %v197_v44 = vadd.f32 %v196_v42, %v194_v41 }
 0x180   :  { %v198_v45 = vadd.f32 %v197_v44, %v195_v43 }
 0x182   :  { %199 = vadd.xlane.f32.xlu0 %v198_v45 }
 0x20f   :  { %v200_v47 = vpop.xlane.xlu0 %199 }
 0x210   :  { %v201_v48 = vmul.f32 0.001953125, %v200_v47 }
 0x212   :  { %v202_v49 = vadd.f32 1e-05, %v201_v48 }
 0x214   :  { %257 = vrsqrt.f32 %v202_v49 }
 0x21e   :  { %v258_v51 = vpop.eup %257 }
 0x21f   :  { %v204_v52 = vmul.f32 %v258_v51, %v180_v50 }
 0x221   :  { %207 = vperm.xlu1 %255, %v204_v52  }
 0x225   :  { %216 = vperm.xlu1 %255, %v181_v53  }
 0x2a0   :  { %v208_v54 = vpop.permute.xlu1 %207 }
 0x2a1   :  { %v210_v55 = vmul.f32 %v208_v54, %v188_v35  ;;  %v211_v56 = vmul.f32 %v208_v54, %v189_v36  ;;  %v212_v57 = vmul.f32 %v208_v54, %v190_v37  ;;  %v213_v58 = vmul.f32 %v208_v54, %v191_v38 }
 0x2a4   :  { %v217_v59 = vpop.permute.xlu1 %216 }
 0x2a5   :  { %v219_v60 = vadd.f32 %v217_v59, %v210_v55  ;;  %v220_v61 = vadd.f32 %v217_v59, %v211_v56  ;;  %v221_v62 = vadd.f32 %v217_v59, %v212_v57  ;;  %v222_v63 = vadd.f32 %v217_v59, %v213_v58 }
 0x2a7   :  { %v223_v0 = vmax.f32 %v219_v60, 0.0  ;;  %v224_v1 = vmax.f32 %v220_v61, 0.0  ;;  %v225_v2 = vmax.f32 %v221_v62, 0.0  ;;  %v226_v3 = vmax.f32 %v222_v63, 0.0 }
 0x2a9   :  { %227 = vst [vmem:[%s359_s4] sm:$0xff] %v223_v0  ;;  %228 = vst [vmem:[%s359_s4 + $0x8] sm:$0xff] %v224_v1 }
 0x2aa   :  { %229 = vst [vmem:[%s359_s4 + $0x10] sm:$0xff] %v225_v2  ;;  %230 = vst [vmem:[%s359_s4 + $0x18] sm:$0xff] %v226_v3 }

// kernel: hyper_unet_forward.15
= control target key start
LH: loop header
LB: loop body
LE: loop exit
PB: predicated region body
PF: predicated region fallthrough
CT: control target
= control target key end

     0   :  { %v295_v3 = vmov 0.0   ;;  %vm54_vm0 = vcmask 588800   ;;  %s451_s1 = inlined_call_operand.vmem [shape: f32[72,512], index: 1, kind: input, shape index: {}]   ;;  %s452_s0 = inlined_call_operand.vmem [shape: f32[8,72], index: 0, kind: input, shape index: {}]   ;;  %s453_s2 = inlined_call_operand.vmem [shape: f32[8,1], index: 2, kind: input, shape index: {}]   ;;  %s454_s3 = inlined_call_operand.vmem [shape: f32[8,1], index: 3, kind: input, shape index: {}]   ;;  %s455_s4 = inlined_call_operand.vmem [shape: f32[8,512], index: 4, kind: output, shape index: {}]  }
   0x1   :  { %v19_v0 = vld [vmem:[%s451_s1 + $0x8] sm:$0xff]  ;;  %v18_v2 = vld [vmem:[%s451_s1] sm:$0xff]  ;;  %122 = vmatprep.mubr.f32.mxu0 %v295_v3  ;;  %193 = vmatprep.mubr.f32.mxu1 %v295_v3  ;;  %v21_v6 = vld [vmem:[%s451_s1 + $0x18] sm:$0xff] }
   0x2   :  { %v23_v1 = vld [vmem:[%s451_s1 + $0x28] sm:$0xff]  ;;  %v22_v5 = vld [vmem:[%s451_s1 + $0x20] sm:$0xff]  ;;  %v25_v7 = vld [vmem:[%s451_s1 + $0x38] sm:$0xff] }
   0x3   :  { %v257_v4 = vpack.c.bf16 %v23_v1, %v19_v0  ;;  %v259_v8 = vpack.c.bf16 %v22_v5, %v18_v2  ;;  %v273_v9 = vpack.c.bf16 %v25_v7, %v21_v6  ;;  %v20_v10 = vld [vmem:[%s451_s1 + $0x10] sm:$0xff]  ;;  %v27_v12 = vld [vmem:[%s451_s1 + $0x48] sm:$0xff]  ;;  %v26_v15 = vld [vmem:[%s451_s1 + $0x40] sm:$0xff] }
   0x4   :  { %v24_v11 = vld [vmem:[%s451_s1 + $0x30] sm:$0xff]  ;;  %v31_v14 = vld [vmem:[%s451_s1 + $0x68] sm:$0xff]  ;;  %v30_v16 = vld [vmem:[%s451_s1 + $0x60] sm:$0xff] }
   0x5   :  { %258 = vmatprep.subr.bf16.mxu0 %v257_v4  ;;  %v275_v13 = vpack.c.bf16 %v24_v11, %v20_v10  ;;  %274 = vmatprep.subr.bf16.mxu1 %v273_v9  ;;  %v261_v17 = vpack.c.bf16 %v31_v14, %v27_v12  ;;  %v263_v18 = vpack.c.bf16 %v30_v16, %v26_v15  ;;  %v29_v19 = vld [vmem:[%s451_s1 + $0x58] sm:$0xff]  ;;  %v28_v21 = vld [vmem:[%s451_s1 + $0x50] sm:$0xff]  ;;  %v35_v24 = vld [vmem:[%s451_s1 + $0x88] sm:$0xff]  ;;  %v296_v10 = vmov 0  }
   0x6   :  { %260 = vmatpush1.bf16.msra.mxu0 %v259_v8  ;;  %v33_v20 = vld [vmem:[%s451_s1 + $0x78] sm:$0xff]  ;;  %v32_v23 = vld [vmem:[%s451_s1 + $0x70] sm:$0xff]  ;;  %v39_v25 = vld [vmem:[%s451_s1 + $0xa8] sm:$0xff]  ;;  %291 = vset.pattern.permute.xlu1 %v296_v10 }
   0x7   :  { %276 = vmatpush1.bf16.msra.mxu1 %v275_v13  ;;  %v277_v22 = vpack.c.bf16 %v33_v20, %v29_v19  ;;  %262 = vmatprep.subr.bf16.mxu0 %v261_v17  ;;  %v279_v26 = vpack.c.bf16 %v32_v23, %v28_v21  ;;  %v265_v27 = vpack.c.bf16 %v39_v25, %v35_v24  ;;  %v34_v28 = vld [vmem:[%s451_s1 + $0x80] sm:$0xff]  ;;  %v37_v30 = vld [vmem:[%s451_s1 + $0x98] sm:$0xff]  ;;  %v36_v32 = vld [vmem:[%s451_s1 + $0x90] sm:$0xff] }
   0x8   :  { %v38_v29 = vld [vmem:[%s451_s1 + $0xa0] sm:$0xff]  ;;  %v41_v31 = vld [vmem:[%s451_s1 + $0xb8] sm:$0xff]  ;;  %v40_v33 = vld [vmem:[%s451_s1 + $0xb0] sm:$0xff]  ;;  %292 = vset.pattern.permute.xlu0 %v296_v10 }
   0x9   :  { %278 = vmatprep.subr.bf16.mxu1 %v277_v22  ;;  %v267_v34 = vpack.c.bf16 %v38_v29, %v34_v28  ;;  %v281_v35 = vpack.c.bf16 %v41_v31, %v37_v30  ;;  %v43_v36 = vld [vmem:[%s451_s1 + $0xc8] sm:$0xff]  ;;  %v42_v38 = vld [vmem:[%s451_s1 + $0xc0] sm:$0xff]  ;;  %v283_v39 = vpack.c.bf16 %v40_v33, %v36_v32  ;;  %v45_v42 = vld [vmem:[%s451_s1 + $0xd8] sm:$0xff] }
   0xa   :  { %264 = vmatpush1.bf16.msra.mxu0 %v263_v18  ;;  %v47_v37 = vld [vmem:[%s451_s1 + $0xe8] sm:$0xff]  ;;  %v46_v41 = vld [vmem:[%s451_s1 + $0xe0] sm:$0xff]  ;;  %v49_v43 = vld [vmem:[%s451_s1 + $0xf8] sm:$0xff] }
   0xb   :  { %280 = vmatpush1.bf16.msra.mxu1 %v279_v26  ;;  %266 = vmatprep.subr.bf16.mxu0 %v265_v27  ;;  %v269_v40 = vpack.c.bf16 %v47_v37, %v43_v36  ;;  %v285_v44 = vpack.c.bf16 %v49_v43, %v45_v42  ;;  %v44_v45 = vld [vmem:[%s451_s1 + $0xd0] sm:$0xff]  ;;  %v271_v47 = vpack.c.bf16 %v46_v41, %v42_v38  ;;  %v51_v49 = vld [vmem:[%s451_s1 + $0x108] sm:$0xff]  ;;  %v53_v50 = vld [vmem:[%s451_s1 + $0x118] sm:$0xff] }
   0xc   :  { %282 = vmatprep.subr.bf16.mxu1 %v281_v35  ;;  %v48_v46 = vld [vmem:[%s451_s1 + $0xf0] sm:$0xff]  ;;  %v50_v51 = vld [vmem:[%s451_s1 + $0x100] sm:$0xff] }
   0xd   :  { %v287_v48 = vpack.c.bf16 %v48_v46, %v44_v45  ;;  %v17_v52 = vld [vmem:[%s452_s0] sm:$0xff]  ;;  %v52_v53 = vld [vmem:[%s451_s1 + $0x110] sm:$0xff] }
   0xe   :  { %268 = vmatpush1.bf16.msra.mxu0 %v267_v34  ;;  %v200_v14 = vld [vmem:[%s453_s2] sm:$0xff] }
   0xf   :  { %284 = vmatpush1.bf16.msra.mxu1 %v283_v39  ;;  %270 = vmatprep.subr.bf16.mxu0 %v269_v40  ;;  %v201_v17 = vld [vmem:[%s454_s3] sm:$0xff] }
  0x10   :  { %286 = vmatprep.subr.bf16.mxu1 %v285_v44 }
  0x12   :  { %272 = vmatpush1.bf16.msra.mxu0 %v271_v47 }
  0x13   :  { %288 = vmatpush1.bf16.msra.mxu1 %v287_v48  ;;  %74 = vmatprep.subr.mxu0 %v51_v49 }
  0x14   :  { %145 = vmatprep.subr.mxu1 %v53_v50 }
  0x16   :  { %75 = vmatpush1.msra.mxu0 %v50_v51 }
  0x17   :  { %255 = vmatmul.mubr.msk.f32.vlgmr.msra.gmra.mrb[0].mxu0 %vm54_vm0, %v17_v52  ;;  %146 = vmatpush1.msra.mxu1 %v52_v53 }
  0x18   :  { %256 = vmatmul.mubr.msk.f32.vlgmr.msra.gmra.mrb[0].mxu1 %vm54_vm0, %v17_v52 }
  0xea   :  { %v124_v54 = vpop.f32.mrb[0].mxu0 }
  0xeb   :  { %v126_v55 = vpop.f32.mrb[1].mxu0  ;;  %v195_v56 = vpop.f32.mrb[0].mxu1 }
  0xec   :  { %v202_v57 = vadd.f32 %v126_v55, %v124_v54  ;;  %v197_v58 = vpop.f32.mrb[1].mxu1 }
  0xee   :  { %v203_v59 = vadd.f32 %v202_v57, %v195_v56 }
  0xf0   :  { %v204_v60 = vadd.f32 %v203_v59, %v197_v58 }
  0xf2   :  { %205 = vadd.xlane.f32.xlu0 %v204_v60 }
 0x17f   :  { %v206_v61 = vpop.xlane.xlu0 %205 }
 0x180   :  { %v207_v62 = vmul.f32 0.001953125, %v206_v61 }
 0x182   :  { %v208_v63 = vsub.f32 %v124_v54, %v207_v62  ;;  %v209_v0 = vsub.f32 %v126_v55, %v207_v62  ;;  %v210_v1 = vsub.f32 %v195_v56, %v207_v62  ;;  %v211_v2 = vsub.f32 %v197_v58, %v207_v62 }
 0x184   :  { %v212_v3 = vmul.f32 %v208_v63, %v208_v63  ;;  %v213_v4 = vmul.f32 %v209_v0, %v209_v0  ;;  %v214_v5 = vmul.f32 %v210_v1, %v210_v1  ;;  %v215_v7 = vmul.f32 %v211_v2, %v211_v2 }
 0x186   :  { %v216_v6 = vadd.f32 %v213_v4, %v212_v3 }
 0x188   :  { %v217_v8 = vadd.f32 %v216_v6, %v214_v5 }
 0x18a   :  { %v218_v9 = vadd.f32 %v217_v8, %v215_v7 }
 0x18c   :  { %219 = vadd.xlane.f32.xlu0 %v218_v9 }
 0x219   :  { %v220_v11 = vpop.xlane.xlu0 %219 }
 0x21a   :  { %v221_v12 = vmul.f32 0.001953125, %v220_v11 }
 0x21c   :  { %v222_v13 = vadd.f32 1e-05, %v221_v12 }
 0x21e   :  { %293 = vrsqrt.f32 %v222_v13 }
 0x228   :  { %v294_v15 = vpop.eup %293 }
 0x229   :  { %v224_v16 = vmul.f32 %v294_v15, %v200_v14 }
 0x22b   :  { %227 = vperm.xlu1 %291, %v224_v16  }
 0x22f   :  { %236 = vperm.xlu1 %291, %v201_v17  }
 0x2aa   :  { %v228_v18 = vpop.permute.xlu1 %227 }
 0x2ab   :  { %v230_v19 = vmul.f32 %v228_v18, %v208_v63  ;;  %v231_v20 = vmul.f32 %v228_v18, %v209_v0  ;;  %v232_v21 = vmul.f32 %v228_v18, %v210_v1  ;;  %v233_v22 = vmul.f32 %v228_v18, %v211_v2 }
 0x2ae   :  { %v237_v23 = vpop.permute.xlu1 %236 }
 0x2af   :  { %v239_v24 = vadd.f32 %v237_v23, %v230_v19  ;;  %v240_v25 = vadd.f32 %v237_v23, %v231_v20  ;;  %v241_v26 = vadd.f32 %v237_v23, %v232_v21  ;;  %v242_v27 = vadd.f32 %v237_v23, %v233_v22 }
 0x2b1   :  { %v243_v28 = vmax.f32 %v239_v24, 0.0  ;;  %v244_v29 = vmax.f32 %v240_v25, 0.0  ;;  %v245_v30 = vmax.f32 %v241_v26, 0.0  ;;  %v246_v31 = vmax.f32 %v242_v27, 0.0 }
 0x2b3   :  { %247 = vst [vmem:[%s455_s4] sm:$0xff] %v243_v28  ;;  %248 = vst [vmem:[%s455_s4 + $0x8] sm:$0xff] %v244_v29 }
 0x2b4   :  { %249 = vst [vmem:[%s455_s4 + $0x10] sm:$0xff] %v245_v30  ;;  %250 = vst [vmem:[%s455_s4 + $0x18] sm:$0xff] %v246_v31 }

// kernel: hyper_unet_forward.16
= control target key start
LH: loop header
LB: loop body
LE: loop exit
PB: predicated region body
PF: predicated region fallthrough
CT: control target
= control target key end

     0   :  { %v306_v3 = vmov 0.0   ;;  %vm57_vm0 = vcmask 588800   ;;  %s479_s1 = inlined_call_operand.vmem [shape: f32[72,512], index: 1, kind: input, shape index: {}]   ;;  %s480_s0 = inlined_call_operand.vmem [shape: f32[8,72], index: 0, kind: input, shape index: {}]   ;;  %s481_s2 = inlined_call_operand.vmem [shape: f32[8,1], index: 2, kind: input, shape index: {}]   ;;  %s482_s3 = inlined_call_operand.vmem [shape: f32[8,1], index: 3, kind: input, shape index: {}]   ;;  %s483_s4 = inlined_call_operand.vmem [shape: f32[8,512], index: 4, kind: input, shape index: {}]   ;;  %s484_s5 = inlined_call_operand.vmem [shape: f32[8,512], index: 5, kind: output, shape index: {}]  }
   0x1   :  { %v22_v0 = vld [vmem:[%s479_s1 + $0x8] sm:$0xff]  ;;  %v21_v2 = vld [vmem:[%s479_s1] sm:$0xff]  ;;  %125 = vmatprep.mubr.f32.mxu0 %v306_v3  ;;  %196 = vmatprep.mubr.f32.mxu1 %v306_v3  ;;  %v24_v6 = vld [vmem:[%s479_s1 + $0x18] sm:$0xff] }
   0x2   :  { %v26_v1 = vld [vmem:[%s479_s1 + $0x28] sm:$0xff]  ;;  %v25_v5 = vld [vmem:[%s479_s1 + $0x20] sm:$0xff]  ;;  %v28_v7 = vld [vmem:[%s479_s1 + $0x38] sm:$0xff] }
   0x3   :  { %v268_v4 = vpack.c.bf16 %v26_v1, %v22_v0  ;;  %v270_v8 = vpack.c.bf16 %v25_v5, %v21_v2  ;;  %v284_v9 = vpack.c.bf16 %v28_v7, %v24_v6  ;;  %v23_v10 = vld [vmem:[%s479_s1 + $0x10] sm:$0xff]  ;;  %v30_v12 = vld [vmem:[%s479_s1 + $0x48] sm:$0xff]  ;;  %v29_v15 = vld [vmem:[%s479_s1 + $0x40] sm:$0xff] }
   0x4   :  { %v27_v11 = vld [vmem:[%s479_s1 + $0x30] sm:$0xff]  ;;  %v34_v14 = vld [vmem:[%s479_s1 + $0x68] sm:$0xff]  ;;  %v33_v16 = vld [vmem:[%s479_s1 + $0x60] sm:$0xff] }
   0x5   :  { %269 = vmatprep.subr.bf16.mxu0 %v268_v4  ;;  %v286_v13 = vpack.c.bf16 %v27_v11, %v23_v10  ;;  %285 = vmatprep.subr.bf16.mxu1 %v284_v9  ;;  %v272_v17 = vpack.c.bf16 %v34_v14, %v30_v12  ;;  %v274_v18 = vpack.c.bf16 %v33_v16, %v29_v15  ;;  %v32_v19 = vld [vmem:[%s479_s1 + $0x58] sm:$0xff]  ;;  %v31_v21 = vld [vmem:[%s479_s1 + $0x50] sm:$0xff]  ;;  %v38_v24 = vld [vmem:[%s479_s1 + $0x88] sm:$0xff]  ;;  %v307_v10 = vmov 0  }
   0x6   :  { %271 = vmatpush1.bf16.msra.mxu0 %v270_v8  ;;  %v36_v20 = vld [vmem:[%s479_s1 + $0x78] sm:$0xff]  ;;  %v35_v23 = vld [vmem:[%s479_s1 + $0x70] sm:$0xff]  ;;  %v42_v25 = vld [vmem:[%s479_s1 + $0xa8] sm:$0xff]  ;;  %302 = vset.pattern.permute.xlu1 %v307_v10 }
   0x7   :  { %287 = vmatpush1.bf16.msra.mxu1 %v286_v13  ;;  %v288_v22 = vpack.c.bf16 %v36_v20, %v32_v19  ;;  %273 = vmatprep.subr.bf16.mxu0 %v272_v17  ;;  %v290_v26 = vpack.c.bf16 %v35_v23, %v31_v21  ;;  %v276_v27 = vpack.c.bf16 %v42_v25, %v38_v24  ;;  %v37_v28 = vld [vmem:[%s479_s1 + $0x80] sm:$0xff]  ;;  %v40_v30 = vld [vmem:[%s479_s1 + $0x98] sm:$0xff]  ;;  %v39_v32 = vld [vmem:[%s479_s1 + $0x90] sm:$0xff] }
   0x8   :  { %v41_v29 = vld [vmem:[%s479_s1 + $0xa0] sm:$0xff]  ;;  %v44_v31 = vld [vmem:[%s479_s1 + $0xb8] sm:$0xff]  ;;  %v43_v33 = vld [vmem:[%s479_s1 + $0xb0] sm:$0xff]  ;;  %303 = vset.pattern.permute.xlu0 %v307_v10 }
   0x9   :  { %289 = vmatprep.subr.bf16.mxu1 %v288_v22  ;;  %v278_v34 = vpack.c.bf16 %v41_v29, %v37_v28  ;;  %v292_v35 = vpack.c.bf16 %v44_v31, %v40_v30  ;;  %v46_v36 = vld [vmem:[%s479_s1 + $0xc8] sm:$0xff]  ;;  %v45_v38 = vld [vmem:[%s479_s1 + $0xc0] sm:$0xff]  ;;  %v294_v39 = vpack.c.bf16 %v43_v33, %v39_v32  ;;  %v48_v42 = vld [vmem:[%s479_s1 + $0xd8] sm:$0xff] }
   0xa   :  { %275 = vmatpush1.bf16.msra.mxu0 %v274_v18  ;;  %v50_v37 = vld [vmem:[%s479_s1 + $0xe8] sm:$0xff]  ;;  %v49_v41 = vld [vmem:[%s479_s1 + $0xe0] sm:$0xff]  ;;  %v52_v43 = vld [vmem:[%s479_s1 + $0xf8] sm:$0xff] }
   0xb   :  { %291 = vmatpush1.bf16.msra.mxu1 %v290_v26  ;;  %277 = vmatprep.subr.bf16.mxu0 %v276_v27  ;;  %v280_v40 = vpack.c.bf16 %v50_v37, %v46_v36  ;;  %v296_v44 = vpack.c.bf16 %v52_v43, %v48_v42  ;;  %v47_v45 = vld [vmem:[%s479_s1 + $0xd0] sm:$0xff]  ;;  %v282_v47 = vpack.c.bf16 %v49_v41, %v45_v38  ;;  %v54_v49 = vld [vmem:[%s479_s1 + $0x108] sm:$0xff]  ;;  %v56_v50 = vld [vmem:[%s479_s1 + $0x118] sm:$0xff] }
   0xc   :  { %293 = vmatprep.subr.bf16.mxu1 %v292_v35  ;;  %v51_v46 = vld [vmem:[%s479_s1 + $0xf0] sm:$0xff]  ;;  %v53_v51 = vld [vmem:[%s479_s1 + $0x100] sm:$0xff]  ;;  %v247_v24 = vld [vmem:[%s483_s4 + $0x8] sm:$0xff] }
   0xd   :  { %v298_v48 = vpack.c.bf16 %v51_v46, %v47_v45  ;;  %v20_v52 = vld [vmem:[%s480_s0] sm:$0xff]  ;;  %v55_v53 = vld [vmem:[%s479_s1 + $0x110] sm:$0xff]  ;;  %v249_v26 = vld [vmem:[%s483_s4 + $0x18] sm:$0xff] }
   0xe   :  { %279 = vmatpush1.bf16.msra.mxu0 %v278_v34  ;;  %v203_v14 = vld [vmem:[%s481_s2] sm:$0xff]  ;;  %v248_v25 = vld [vmem:[%s483_s4 + $0x10] sm:$0xff] }
   0xf   :  { %295 = vmatpush1.bf16.msra.mxu1 %v294_v39  ;;  %281 = vmatprep.subr.bf16.mxu0 %v280_v40  ;;  %v204_v17 = vld [vmem:[%s482_s3] sm:$0xff] }
  0x10   :  { %297 = vmatprep.subr.bf16.mxu1 %v296_v44  ;;  %v246_v23 = vld [vmem:[%s483_s4] sm:$0xff] }
  0x12   :  { %283 = vmatpush1.bf16.msra.mxu0 %v282_v47 }
  0x13   :  { %299 = vmatpush1.bf16.msra.mxu1 %v298_v48  ;;  %77 = vmatprep.subr.mxu0 %v54_v49 }
  0x14   :  { %148 = vmatprep.subr.mxu1 %v56_v50 }
  0x16   :  { %78 = vmatpush1.msra.mxu0 %v53_v51 }
  0x17   :  { %266 = vmatmul.mubr.msk.f32.vlgmr.msra.gmra.mrb[0].mxu0 %vm57_vm0, %v20_v52  ;;  %149 = vmatpush1.msra.mxu1 %v55_v53 }
  0x18   :  { %267 = vmatmul.mubr.msk.f32.vlgmr.msra.gmra.mrb[0].mxu1 %vm57_vm0, %v20_v52 }
  0xea   :  { %v127_v54 = vpop.f32.mrb[0].mxu0 }
  0xeb   :  { %v129_v55 = vpop.f32.mrb[1].mxu0  ;;  %v198_v56 = vpop.f32.mrb[0].mxu1 }
  0xec   :  { %v205_v57 = vadd.f32 %v129_v55, %v127_v54  ;;  %v200_v58 = vpop.f32.mrb[1].mxu1 }
  0xee   :  { %v206_v59 = vadd.f32 %v205_v57, %v198_v56 }
  0xf0   :  { %v207_v60 = vadd.f32 %v206_v59, %v200_v58 }
  0xf2   :  { %208 = vadd.xlane.f32.xlu0 %v207_v60 }
 0x17f   :  { %v209_v61 = vpop.xlane.xlu0 %208 }
 0x180   :  { %v210_v62 = vmul.f32 0.001953125, %v209_v61 }
 0x182   :  { %v211_v63 = vsub.f32 %v127_v54, %v210_v62  ;;  %v212_v0 = vsub.f32 %v129_v55, %v210_v62  ;;  %v213_v1 = vsub.f32 %v198_v56, %v210_v62  ;;  %v214_v2 = vsub.f32 %v200_v58, %v210_v62 }
 0x184   :  { %v215_v3 = vmul.f32 %v211_v63, %v211_v63  ;;  %v216_v4 = vmul.f32 %v212_v0, %v212_v0  ;;  %v217_v5 = vmul.f32 %v213_v1, %v213_v1  ;;  %v218_v7 = vmul.f32 %v214_v2, %v214_v2 }
 0x186   :  { %v219_v6 = vadd.f32 %v216_v4, %v215_v3 }
 0x188   :  { %v220_v8 = vadd.f32 %v219_v6, %v217_v5 }
 0x18a   :  { %v221_v9 = vadd.f32 %v220_v8, %v218_v7 }
 0x18c   :  { %222 = vadd.xlane.f32.xlu0 %v221_v9 }
 0x219   :  { %v223_v11 = vpop.xlane.xlu0 %222 }
 0x21a   :  { %v224_v12 = vmul.f32 0.001953125, %v223_v11 }
 0x21c   :  { %v225_v13 = vadd.f32 1e-05, %v224_v12 }
 0x21e   :  { %304 = vrsqrt.f32 %v225_v13 }
 0x228   :  { %v305_v15 = vpop.eup %304 }
 0x229   :  { %v227_v16 = vmul.f32 %v305_v15, %v203_v14 }
 0x22b   :  { %230 = vperm.xlu1 %302, %v227_v16  }
 0x22f   :  { %239 = vperm.xlu1 %302, %v204_v17  }
 0x2aa   :  { %v231_v18 = vpop.permute.xlu1 %230 }
 0x2ab   :  { %v233_v19 = vmul.f32 %v231_v18, %v211_v63  ;;  %v234_v20 = vmul.f32 %v231_v18, %v212_v0  ;;  %v235_v21 = vmul.f32 %v231_v18, %v213_v1  ;;  %v236_v22 = vmul.f32 %v231_v18, %v214_v2 }
 0x2ae   :  { %v240_v27 = vpop.permute.xlu1 %239 }
 0x2af   :  { %v242_v28 = vadd.f32 %v240_v27, %v233_v19  ;;  %v243_v29 = vadd.f32 %v240_v27, %v234_v20  ;;  %v244_v30 = vadd.f32 %v240_v27, %v235_v21  ;;  %v245_v31 = vadd.f32 %v240_v27, %v236_v22 }
 0x2b1   :  { %v250_v32 = vadd.f32 %v246_v23, %v242_v28  ;;  %v251_v33 = vadd.f32 %v247_v24, %v243_v29  ;;  %v252_v34 = vadd.f32 %v248_v25, %v244_v30  ;;  %v253_v35 = vadd.f32 %v249_v26, %v245_v31 }
 0x2b3   :  { %v254_v36 = vmax.f32 %v250_v32, 0.0  ;;  %v255_v37 = vmax.f32 %v251_v33, 0.0  ;;  %v256_v38 = vmax.f32 %v252_v34, 0.0  ;;  %v257_v39 = vmax.f32 %v253_v35, 0.0 }
 0x2b5   :  { %258 = vst [vmem:[%s484_s5] sm:$0xff] %v254_v36  ;;  %259 = vst [vmem:[%s484_s5 + $0x8] sm:$0xff] %v255_v37 }
 0x2b6   :  { %260 = vst [vmem:[%s484_s5 + $0x10] sm:$0xff] %v256_v38  ;;  %261 = vst [vmem:[%s484_s5 + $0x18] sm:$0xff] %v257_v39 }

// kernel: hyper_unet_forward.18
= control target key start
LH: loop header
LB: loop body
LE: loop exit
PB: predicated region body
PF: predicated region fallthrough
CT: control target
= control target key end

     0   :  { %vm20_vm0 = vcmask 64512   ;;  %v175_v13 = vmov 0   ;;  %s228_s1 = inlined_call_operand.vmem [shape: f32[8,128], index: 1, kind: input, shape index: {}]   ;;  %s229_s0 = inlined_call_operand.vmem [shape: f32[16,8], index: 0, kind: input, shape index: {}]   ;;  %s230_s2 = inlined_call_operand.vmem [shape: f32[16,1], index: 2, kind: input, shape index: {}]   ;;  %s231_s3 = inlined_call_operand.vmem [shape: f32[16,1], index: 3, kind: input, shape index: {}]   ;;  %s232_s4 = inlined_call_operand.vmem [shape: f32[16,128], index: 4, kind: output, shape index: {}]  }
   0x1   :  { %v19_v0 = vld [vmem:[%s228_s1] sm:$0xff]  ;;  %v18_v2 = vld [vmem:[%s229_s0 + $0x8] sm:$0xff]  ;;  %169 = vset.pattern.permute.xlu0 %v175_v13  ;;  %170 = vset.pattern.permute.xlu1 %v175_v13 }
   0x2   :  { %v17_v1 = vld [vmem:[%s229_s0] sm:$0xff]  ;;  %163 = vmatprep.subr.mxu0 %v19_v0  ;;  %v103_v23 = vld [vmem:[%s230_s2 + $0x8] sm:$0xff] }
   0x3   :  { %165 = vmatprep.mubr.msk.f32.mxu0 %vm20_vm0, %v17_v1  ;;  %164 = vmatpush3.msra.mxu0 %v19_v0  ;;  %v102_v20 = vld [vmem:[%s230_s2] sm:$0xff]  ;;  %v105_v27 = vld [vmem:[%s231_s3 + $0x8] sm:$0xff] }
   0x4   :  { %166 = vmatmul.mubr.msk.f32.vlgmr.msra.gmra.mrb[0].mxu0 %vm20_vm0, %v18_v2  ;;  %v104_v26 = vld [vmem:[%s231_s3] sm:$0xff] }
  0xd7   :  { %v167_v3 = vpop.f32.mrb[0].mxu0 }
  0xd8   :  { %v93_v4 = vpop.f32.mrb[1].mxu0 }
  0xd9   :  { %106 = vadd.xlane.f32.xlu0 %v93_v4 }
  0xdd   :  { %108 = vadd.xlane.f32.xlu0 %v167_v3 }
 0x166   :  { %v107_v5 = vpop.xlane.xlu0 %106 }
 0x167   :  { %v110_v6 = vmul.f32 0.0078125, %v107_v5 }
 0x169   :  { %v112_v7 = vsub.f32 %v93_v4, %v110_v6 }
 0x16a   :  { %v109_v8 = vpop.xlane.xlu0 %108 }
 0x16b   :  { %v111_v9 = vmul.f32 0.0078125, %v109_v8  ;;  %v114_v10 = vmul.f32 %v112_v7, %v112_v7 }
 0x16d   :  { %v113_v11 = vsub.f32 %v167_v3, %v111_v9  ;;  %116 = vadd.xlane.f32.xlu1 %v114_v10 }
 0x16f   :  { %v115_v12 = vmul.f32 %v113_v11, %v113_v11 }
 0x171   :  { %118 = vadd.xlane.f32.xlu1 %v115_v12 }
 0x1fa   :  { %v117_v14 = vpop.xlane.xlu1 %116 }
 0x1fb   :  { %v120_v15 = vmul.f32 0.0078125, %v117_v14 }
 0x1fd   :  { %v122_v16 = vadd.f32 1e-05, %v120_v15 }
 0x1fe   :  { %v119_v17 = vpop.xlane.xlu1 %118 }
 0x1ff   :  { %171 = vrsqrt.f32 %v122_v16  ;;  %v121_v18 = vmul.f32 0.0078125, %v119_v17 }
 0x201   :  { %v123_v19 = vadd.f32 1e-05, %v121_v18 }
 0x203   :  { %173 = vrsqrt.f32 %v123_v19 }
 0x209   :  { %v172_v21 = vpop.eup %171 }
 0x20a   :  { %v126_v22 = vmul.f32 %v172_v21, %v102_v20 }
 0x20c   :  { %130 = vperm.xlu0 %169, %v126_v22  }
 0x20d   :  { %v174_v24 = vpop.eup %173 }
 0x20e   :  { %v127_v25 = vmul.f32 %v174_v24, %v103_v23 }
 0x210   :  { %135 = vperm.xlu1 %170, %v127_v25  }
 0x214   :  { %142 = vperm.xlu1 %170, %v104_v26  }
 0x218   :  { %147 = vperm.xlu1 %170, %v105_v27  }
 0x28b   :  { %v131_v28 = vpop.permute.xlu0 %130 }
 0x28c   :  { %v138_v30 = vmul.f32 %v131_v28, %v112_v7 }
 0x28f   :  { %v136_v29 = vpop.permute.xlu1 %135 }
 0x290   :  { %v139_v33 = vmul.f32 %v136_v29, %v113_v11 }
 0x293   :  { %v143_v31 = vpop.permute.xlu1 %142 }
 0x294   :  { %v150_v32 = vadd.f32 %v143_v31, %v138_v30 }
 0x296   :  { %152 = vst [vmem:[%s232_s4] sm:$0xff] %v150_v32 }
 0x297   :  { %v148_v34 = vpop.permute.xlu1 %147 }
 0x298   :  { %v151_v35 = vadd.f32 %v148_v34, %v139_v33 }
 0x29a   :  { %153 = vst [vmem:[%s232_s4 + $0x8] sm:$0xff] %v151_v35 }

// kernel: hyper_unet_forward.17
= control target key start
LH: loop header
LB: loop body
LE: loop exit
PB: predicated region body
PF: predicated region fallthrough
CT: control target
= control target key end

     0   :  { %vm28_vm0 = vcmask 588800   ;;  %v225_v25 = vmov 0   ;;  %s304_s1 = inlined_call_operand.vmem [shape: f32[72,128], index: 1, kind: input, shape index: {}]   ;;  %s305_s0 = inlined_call_operand.vmem [shape: f32[16,72], index: 0, kind: input, shape index: {}]   ;;  %s306_s2 = inlined_call_operand.vmem [shape: f32[16,1], index: 2, kind: input, shape index: {}]   ;;  %s307_s3 = inlined_call_operand.vmem [shape: f32[16,1], index: 3, kind: input, shape index: {}]   ;;  %s308_s4 = inlined_call_operand.vmem [shape: f32[16,128], index: 4, kind: output, shape index: {}]  }
   0x1   :  { %v19_v0 = vld [vmem:[%s304_s1] sm:$0xff]  ;;  %v20_v1 = vld [vmem:[%s304_s1 + $0x8] sm:$0xff]  ;;  %v21_v2 = vld [vmem:[%s304_s1 + $0x10] sm:$0xff]  ;;  %219 = vset.pattern.permute.xlu0 %v225_v25  ;;  %220 = vset.pattern.permute.xlu1 %v225_v25 }
   0x2   :  { %v202_v3 = vpack.c.bf16 %v20_v1, %v19_v0  ;;  %v22_v4 = vld [vmem:[%s304_s1 + $0x18] sm:$0xff]  ;;  %v23_v6 = vld [vmem:[%s304_s1 + $0x20] sm:$0xff]  ;;  %v24_v7 = vld [vmem:[%s304_s1 + $0x28] sm:$0xff] }
   0x3   :  { %v206_v5 = vpack.c.bf16 %v22_v4, %v21_v2  ;;  %v17_v8 = vld [vmem:[%s305_s0] sm:$0xff]  ;;  %v210_v9 = vpack.c.bf16 %v24_v7, %v23_v6  ;;  %v25_v10 = vld [vmem:[%s304_s1 + $0x30] sm:$0xff]  ;;  %v26_v11 = vld [vmem:[%s304_s1 + $0x38] sm:$0xff] }
   0x4   :  { %203 = vmatprep.subr.bf16.mxu0 %v202_v3  ;;  %199 = vmatprep.mubr.msk.f32.mxu0 %vm28_vm0, %v17_v8  ;;  %v214_v12 = vpack.c.bf16 %v26_v11, %v25_v10  ;;  %v27_v13 = vld [vmem:[%s304_s1 + $0x40] sm:$0xff]  ;;  %v18_v14 = vld [vmem:[%s305_s0 + $0x8] sm:$0xff] }
   0x5   :  { %205 = vmatpush3.bf16.msra.mxu0 %v202_v3  ;;  %v110_v32 = vld [vmem:[%s306_s2] sm:$0xff]  ;;  %v111_v35 = vld [vmem:[%s306_s2 + $0x8] sm:$0xff] }
   0x6   :  { %207 = vmatprep.subr.bf16.mxu0 %v206_v5  ;;  %v112_v38 = vld [vmem:[%s307_s3] sm:$0xff]  ;;  %v113_v39 = vld [vmem:[%s307_s3 + $0x8] sm:$0xff] }
   0x9   :  { %209 = vmatpush3.bf16.msra.mxu0 %v206_v5 }
   0xa   :  { %211 = vmatprep.subr.bf16.mxu0 %v210_v9 }
   0xd   :  { %213 = vmatpush3.bf16.msra.mxu0 %v210_v9 }
   0xe   :  { %215 = vmatprep.subr.bf16.mxu0 %v214_v12 }
  0x11   :  { %217 = vmatpush3.bf16.msra.mxu0 %v214_v12 }
  0x12   :  { %197 = vmatprep.subr.mxu0 %v27_v13 }
  0x15   :  { %198 = vmatpush3.msra.mxu0 %v27_v13 }
  0x16   :  { %200 = vmatmul.mubr.msk.f32.vlgmr.msra.gmra.mrb[0].mxu0 %vm28_vm0, %v18_v14 }
  0xe9   :  { %v201_v15 = vpop.f32.mrb[0].mxu0 }
  0xea   :  { %v101_v16 = vpop.f32.mrb[1].mxu0 }
  0xeb   :  { %114 = vadd.xlane.f32.xlu0 %v101_v16 }
  0xef   :  { %116 = vadd.xlane.f32.xlu0 %v201_v15 }
 0x178   :  { %v115_v17 = vpop.xlane.xlu0 %114 }
 0x179   :  { %v118_v18 = vmul.f32 0.0078125, %v115_v17 }
 0x17b   :  { %v120_v19 = vsub.f32 %v101_v16, %v118_v18 }
 0x17c   :  { %v117_v20 = vpop.xlane.xlu0 %116 }
 0x17d   :  { %v119_v21 = vmul.f32 0.0078125, %v117_v20  ;;  %v122_v22 = vmul.f32 %v120_v19, %v120_v19 }
 0x17f   :  { %v121_v23 = vsub.f32 %v201_v15, %v119_v21  ;;  %124 = vadd.xlane.f32.xlu1 %v122_v22 }
 0x181   :  { %v123_v24 = vmul.f32 %v121_v23, %v121_v23 }
 0x183   :  { %126 = vadd.xlane.f32.xlu1 %v123_v24 }
 0x20c   :  { %v125_v26 = vpop.xlane.xlu1 %124 }
 0x20d   :  { %v128_v27 = vmul.f32 0.0078125, %v125_v26 }
 0x20f   :  { %v130_v28 = vadd.f32 1e-05, %v128_v27 }
 0x210   :  { %v127_v29 = vpop.xlane.xlu1 %126 }
 0x211   :  { %221 = vrsqrt.f32 %v130_v28  ;;  %v129_v30 = vmul.f32 0.0078125, %v127_v29 }
 0x213   :  { %v131_v31 = vadd.f32 1e-05, %v129_v30 }
 0x215   :  { %223 = vrsqrt.f32 %v131_v31 }
 0x21b   :  { %v222_v33 = vpop.eup %221 }
 0x21c   :  { %v134_v34 = vmul.f32 %v222_v33, %v110_v32 }
 0x21e   :  { %138 = vperm.xlu0 %219, %v134_v34  }
 0x21f   :  { %v224_v36 = vpop.eup %223 }
 0x220   :  { %v135_v37 = vmul.f32 %v224_v36, %v111_v35 }
 0x222   :  { %143 = vperm.xlu1 %220, %v135_v37  }
 0x226   :  { %150 = vperm.xlu1 %220, %v112_v38  }
 0x22a   :  { %155 = vperm.xlu1 %220, %v113_v39  }
 0x29d   :  { %v139_v40 = vpop.permute.xlu0 %138 }
 0x29e   :  { %v146_v42 = vmul.f32 %v139_v40, %v120_v19 }
 0x2a1   :  { %v144_v41 = vpop.permute.xlu1 %143 }
 0x2a2   :  { %v147_v45 = vmul.f32 %v144_v41, %v121_v23 }
 0x2a5   :  { %v151_v43 = vpop.permute.xlu1 %150 }
 0x2a6   :  { %v158_v44 = vadd.f32 %v151_v43, %v146_v42 }
 0x2a8   :  { %v160_v46 = vmax.f32 %v158_v44, 0.0 }
 0x2a9   :  { %v156_v47 = vpop.permute.xlu1 %155 }
 0x2aa   :  { %162 = vst [vmem:[%s308_s4] sm:$0xff] %v160_v46  ;;  %v159_v48 = vadd.f32 %v156_v47, %v147_v45 }
 0x2ac   :  { %v161_v49 = vmax.f32 %v159_v48, 0.0 }
 0x2ae   :  { %163 = vst [vmem:[%s308_s4 + $0x8] sm:$0xff] %v161_v49 }

// kernel: hyper_unet_forward.19
= control target key start
LH: loop header
LB: loop body
LE: loop exit
PB: predicated region body
PF: predicated region fallthrough
CT: control target
= control target key end

     0   :  { %v241_v0 = vmov 0.0|0.0   ;;  %vm42_vm0 = vcmask 130048   ;;  %v242_v44 = vmov 0   ;;  %s381_s1 = inlined_call_operand.vmem [shape: f32[144,128], index: 1, kind: input, shape index: {}]   ;;  %s382_s0 = inlined_call_operand.vmem [shape: f32[16,144], index: 0, kind: input, shape index: {}]   ;;  %s383_s3 = inlined_call_operand.vmem [shape: f32[16,1], index: 3, kind: input, shape index: {}]   ;;  %s384_s2 = inlined_call_operand.vmem [shape: f32[16,1], index: 2, kind: input, shape index: {}]   ;;  %s385_s4 = inlined_call_operand.vmem [shape: f32[16,128], index: 4, kind: input, shape index: {}]   ;;  %s386_s5 = inlined_call_operand.vmem [shape: f32[16,128], index: 5, kind: output, shape index: {}]  }
   0x1   :  { %188 = vmatprep.subr.bf16.mxu0 %v241_v0  ;;  %v24_v1 = vld [vmem:[%s381_s1] sm:$0xff]  ;;  %v25_v2 = vld [vmem:[%s381_s1 + $0x8] sm:$0xff]  ;;  %215 = vmatprep.subr.bf16.mxu1 %v241_v0  ;;  %v26_v3 = vld [vmem:[%s381_s1 + $0x10] sm:$0xff] }
   0x2   :  { %v189_v4 = vpack.c.bf16 %v25_v2, %v24_v1  ;;  %v27_v5 = vld [vmem:[%s381_s1 + $0x18] sm:$0xff]  ;;  %v28_v7 = vld [vmem:[%s381_s1 + $0x20] sm:$0xff]  ;;  %v29_v8 = vld [vmem:[%s381_s1 + $0x28] sm:$0xff]  ;;  %236 = vset.pattern.permute.xlu1 %v242_v44  ;;  %235 = vset.pattern.permute.xlu0 %v242_v44 }
   0x3   :  { %v192_v6 = vpack.c.bf16 %v27_v5, %v26_v3  ;;  %v21_v9 = vld [vmem:[%s382_s0 + $0x8] sm:$0xff]  ;;  %v23_v10 = vld [vmem:[%s382_s0 + $0x18] sm:$0xff]  ;;  %v195_v11 = vpack.c.bf16 %v29_v8, %v28_v7  ;;  %v30_v12 = vld [vmem:[%s381_s1 + $0x30] sm:$0xff] }
   0x4   :  { %190 = vmatpush1.bf16.msra.mxu0 %v189_v4  ;;  %224 = vmatpush1.bf16.msra.mxu1 %v189_v4  ;;  %v31_v13 = vld [vmem:[%s381_s1 + $0x38] sm:$0xff]  ;;  %v32_v15 = vld [vmem:[%s381_s1 + $0x40] sm:$0xff]  ;;  %v33_v16 = vld [vmem:[%s381_s1 + $0x48] sm:$0xff] }
   0x5   :  { %191 = vmatprep.subr.bf16.mxu0 %v241_v0  ;;  %216 = vmatprep.subr.bf16.mxu1 %v241_v0  ;;  %v198_v14 = vpack.c.bf16 %v31_v13, %v30_v12  ;;  %v201_v17 = vpack.c.bf16 %v33_v16, %v32_v15  ;;  %v34_v18 = vld [vmem:[%s381_s1 + $0x50] sm:$0xff]  ;;  %v35_v19 = vld [vmem:[%s381_s1 + $0x58] sm:$0xff]  ;;  %v36_v21 = vld [vmem:[%s381_s1 + $0x60] sm:$0xff] }
   0x6   :  { %186 = vmatprep.mubr.msk.f32.mxu0 %vm42_vm0, %v21_v9  ;;  %187 = vmatprep.mubr.msk.f32.mxu1 %vm42_vm0, %v23_v10  ;;  %v204_v20 = vpack.c.bf16 %v35_v19, %v34_v18  ;;  %v37_v22 = vld [vmem:[%s381_s1 + $0x68] sm:$0xff]  ;;  %v38_v24 = vld [vmem:[%s381_s1 + $0x70] sm:$0xff]  ;;  %v39_v25 = vld [vmem:[%s381_s1 + $0x78] sm:$0xff] }
   0x7   :  { %v207_v23 = vpack.c.bf16 %v37_v22, %v36_v21  ;;  %v210_v26 = vpack.c.bf16 %v39_v25, %v38_v24  ;;  %v40_v27 = vld [vmem:[%s381_s1 + $0x80] sm:$0xff]  ;;  %v41_v28 = vld [vmem:[%s381_s1 + $0x88] sm:$0xff]  ;;  %v22_v31 = vld [vmem:[%s382_s0 + $0x10] sm:$0xff] }
   0x8   :  { %193 = vmatpush1.bf16.msra.mxu0 %v192_v6  ;;  %225 = vmatpush1.bf16.msra.mxu1 %v192_v6  ;;  %v213_v29 = vpack.c.bf16 %v41_v28, %v40_v27  ;;  %v20_v30 = vld [vmem:[%s382_s0] sm:$0xff]  ;;  %v125_v55 = vld [vmem:[%s384_s2 + $0x8] sm:$0xff] }
   0x9   :  { %194 = vmatprep.subr.bf16.mxu0 %v241_v0  ;;  %217 = vmatprep.subr.bf16.mxu1 %v241_v0  ;;  %v126_v45 = vld [vmem:[%s383_s3] sm:$0xff]  ;;  %v127_v58 = vld [vmem:[%s383_s3 + $0x8] sm:$0xff] }
   0xa   :  { %v124_v52 = vld [vmem:[%s384_s2] sm:$0xff]  ;;  %v175_v4 = vld [vmem:[%s385_s4 + $0x8] sm:$0xff] }
   0xb   :  { %v174_v62 = vld [vmem:[%s385_s4] sm:$0xff] }
   0xc   :  { %196 = vmatpush1.bf16.msra.mxu0 %v195_v11  ;;  %226 = vmatpush1.bf16.msra.mxu1 %v195_v11 }
   0xd   :  { %197 = vmatprep.subr.bf16.mxu0 %v241_v0  ;;  %218 = vmatprep.subr.bf16.mxu1 %v241_v0 }
  0x10   :  { %199 = vmatpush1.bf16.msra.mxu0 %v198_v14  ;;  %227 = vmatpush1.bf16.msra.mxu1 %v198_v14 }
  0x11   :  { %200 = vmatprep.subr.bf16.mxu0 %v241_v0  ;;  %219 = vmatprep.subr.bf16.mxu1 %v241_v0 }
  0x14   :  { %202 = vmatpush1.bf16.msra.mxu0 %v201_v17  ;;  %228 = vmatpush1.bf16.msra.mxu1 %v201_v17 }
  0x15   :  { %203 = vmatprep.subr.bf16.mxu0 %v241_v0  ;;  %220 = vmatprep.subr.bf16.mxu1 %v241_v0 }
  0x18   :  { %205 = vmatpush1.bf16.msra.mxu0 %v204_v20  ;;  %229 = vmatpush1.bf16.msra.mxu1 %v204_v20 }
  0x19   :  { %206 = vmatprep.subr.bf16.mxu0 %v241_v0  ;;  %221 = vmatprep.subr.bf16.mxu1 %v241_v0 }
  0x1c   :  { %208 = vmatpush1.bf16.msra.mxu0 %v207_v23  ;;  %230 = vmatpush1.bf16.msra.mxu1 %v207_v23 }
  0x1d   :  { %209 = vmatprep.subr.bf16.mxu0 %v241_v0  ;;  %222 = vmatprep.subr.bf16.mxu1 %v241_v0 }
  0x20   :  { %211 = vmatpush1.bf16.msra.mxu0 %v210_v26  ;;  %231 = vmatpush1.bf16.msra.mxu1 %v210_v26 }
  0x21   :  { %212 = vmatprep.subr.bf16.mxu0 %v241_v0  ;;  %223 = vmatprep.subr.bf16.mxu1 %v241_v0 }
  0x24   :  { %214 = vmatpush1.bf16.msra.mxu0 %v213_v29  ;;  %232 = vmatpush1.bf16.msra.mxu1 %v213_v29 }
  0x27   :  { %114 = vmatmul.mubr.f32.vlgmr.msra.gmra.mrb[0].mxu0 %v20_v30  ;;  %119 = vmatmul.mubr.f32.vlgmr.msra.gmra.mrb[0].mxu1 %v22_v31 }
  0xfa   :  { %v115_v32 = vpop.f32.mrb[0].mxu0  ;;  %v120_v33 = vpop.f32.mrb[0].mxu1 }
  0xfb   :  { %128 = vadd.xlane.f32.xlu0 %v115_v32  ;;  %v117_v34 = vpop.f32.mrb[1].mxu0  ;;  %v122_v35 = vpop.f32.mrb[1].mxu1 }
  0xff   :  { %130 = vadd.xlane.f32.xlu0 %v120_v33 }
 0x188   :  { %v129_v36 = vpop.xlane.xlu0 %128 }
 0x189   :  { %v132_v37 = vmul.f32 0.0078125, %v129_v36 }
 0x18b   :  { %v134_v38 = vsub.f32 %v115_v32, %v132_v37 }
 0x18c   :  { %v131_v39 = vpop.xlane.xlu0 %130 }
 0x18d   :  { %v133_v40 = vmul.f32 0.0078125, %v131_v39  ;;  %v136_v41 = vmul.f32 %v134_v38, %v134_v38 }
 0x18f   :  { %v135_v42 = vsub.f32 %v120_v33, %v133_v40  ;;  %138 = vadd.xlane.f32.xlu1 %v136_v41 }
 0x191   :  { %v137_v43 = vmul.f32 %v135_v42, %v135_v42 }
 0x193   :  { %140 = vadd.xlane.f32.xlu1 %v137_v43 }
 0x1a4   :  { %164 = vperm.xlu1 %236, %v126_v45  }
 0x21c   :  { %v139_v46 = vpop.xlane.xlu1 %138 }
 0x21d   :  { %v142_v47 = vmul.f32 0.0078125, %v139_v46 }
 0x21f   :  { %v144_v48 = vadd.f32 1e-05, %v142_v47 }
 0x220   :  { %v141_v49 = vpop.xlane.xlu1 %140 }
 0x221   :  { %237 = vrsqrt.f32 %v144_v48  ;;  %v143_v50 = vmul.f32 0.0078125, %v141_v49 }
 0x223   :  { %v145_v51 = vadd.f32 1e-05, %v143_v50 }
 0x224   :  { %v165_v59 = vpop.permute.xlu1 %164 }
 0x225   :  { %239 = vrsqrt.f32 %v145_v51 }
 0x22b   :  { %v238_v53 = vpop.eup %237 }
 0x22c   :  { %v148_v54 = vmul.f32 %v238_v53, %v124_v52 }
 0x22e   :  { %152 = vperm.xlu0 %235, %v148_v54  }
 0x22f   :  { %v240_v56 = vpop.eup %239 }
 0x230   :  { %v149_v57 = vmul.f32 %v240_v56, %v125_v55 }
 0x232   :  { %157 = vperm.xlu1 %236, %v149_v57  }
 0x236   :  { %169 = vperm.xlu1 %236, %v127_v58  }
 0x2ad   :  { %v153_v60 = vpop.permute.xlu0 %152 }
 0x2ae   :  { %v160_v61 = vmul.f32 %v153_v60, %v134_v38 }
 0x2b0   :  { %v172_v63 = vadd.f32 %v165_v59, %v160_v61 }
 0x2b1   :  { %v158_v0 = vpop.permute.xlu1 %157 }
 0x2b2   :  { %v176_v1 = vadd.f32 %v174_v62, %v172_v63  ;;  %v161_v3 = vmul.f32 %v158_v0, %v135_v42 }
 0x2b4   :  { %v178_v2 = vmax.f32 %v176_v1, 0.0 }
 0x2b5   :  { %v170_v5 = vpop.permute.xlu1 %169 }
 0x2b6   :  { %v173_v6 = vadd.f32 %v170_v5, %v161_v3  ;;  %180 = vst [vmem:[%s386_s5] sm:$0xff] %v178_v2 }
 0x2b8   :  { %v177_v7 = vadd.f32 %v175_v4, %v173_v6 }
 0x2ba   :  { %v179_v8 = vmax.f32 %v177_v7, 0.0 }
 0x2bc   :  { %181 = vst [vmem:[%s386_s5 + $0x8] sm:$0xff] %v179_v8 }

// kernel: hyper_unet_forward.20
= control target key start
LH: loop header
LB: loop body
LE: loop exit
PB: predicated region body
PF: predicated region fallthrough
CT: control target
= control target key end

     0   :  { %v314_v0 = vmov 0.0|0.0   ;;  %vm43_vm0 = vcmask 130048   ;;  %v315_v60 = vmov 0   ;;  %s497_s1 = inlined_call_operand.vmem [shape: f32[144,128], index: 1, kind: input, shape index: {}]   ;;  %s498_s0 = inlined_call_operand.vmem [shape: f32[32,144], index: 0, kind: input, shape index: {}]   ;;  %s499_s3 = inlined_call_operand.vmem [shape: f32[32,1], index: 3, kind: input, shape index: {}]   ;;  %s500_s2 = inlined_call_operand.vmem [shape: f32[32,1], index: 2, kind: input, shape index: {}]   ;;  %s501_s4 = inlined_call_operand.vmem [shape: f32[32,128], index: 4, kind: output, shape index: {}]  }
   0x1   :  { %257 = vmatprep.subr.bf16.mxu0 %v314_v0  ;;  %284 = vmatprep.subr.bf16.mxu1 %v314_v0  ;;  %v25_v1 = vld [vmem:[%s497_s1] sm:$0xff]  ;;  %v26_v2 = vld [vmem:[%s497_s1 + $0x8] sm:$0xff]  ;;  %v27_v3 = vld [vmem:[%s497_s1 + $0x10] sm:$0xff] }
   0x2   :  { %v258_v4 = vpack.c.bf16 %v26_v2, %v25_v1  ;;  %v28_v5 = vld [vmem:[%s497_s1 + $0x18] sm:$0xff]  ;;  %v29_v7 = vld [vmem:[%s497_s1 + $0x20] sm:$0xff]  ;;  %v30_v8 = vld [vmem:[%s497_s1 + $0x28] sm:$0xff]  ;;  %305 = vset.pattern.permute.xlu1 %v315_v60  ;;  %304 = vset.pattern.permute.xlu0 %v315_v60 }
   0x3   :  { %v261_v6 = vpack.c.bf16 %v28_v5, %v27_v3  ;;  %v18_v9 = vld [vmem:[%s498_s0 + $0x8] sm:$0xff]  ;;  %v264_v11 = vpack.c.bf16 %v30_v8, %v29_v7  ;;  %v31_v12 = vld [vmem:[%s497_s1 + $0x30] sm:$0xff]  ;;  %v32_v13 = vld [vmem:[%s497_s1 + $0x38] sm:$0xff] }
   0x4   :  { %259 = vmatpush1.bf16.msra.mxu0 %v258_v4  ;;  %293 = vmatpush1.bf16.msra.mxu1 %v258_v4  ;;  %v22_v10 = vld [vmem:[%s498_s0 + $0x28] sm:$0xff]  ;;  %v267_v14 = vpack.c.bf16 %v32_v13, %v31_v12  ;;  %v33_v15 = vld [vmem:[%s497_s1 + $0x40] sm:$0xff]  ;;  %v35_v18 = vld [vmem:[%s497_s1 + $0x50] sm:$0xff] }
   0x5   :  { %260 = vmatprep.subr.bf16.mxu0 %v314_v0  ;;  %285 = vmatprep.subr.bf16.mxu1 %v314_v0  ;;  %v34_v16 = vld [vmem:[%s497_s1 + $0x48] sm:$0xff]  ;;  %v36_v19 = vld [vmem:[%s497_s1 + $0x58] sm:$0xff]  ;;  %v37_v21 = vld [vmem:[%s497_s1 + $0x60] sm:$0xff] }
   0x6   :  { %253 = vmatprep.mubr.msk.f32.mxu0 %vm43_vm0, %v18_v9  ;;  %255 = vmatprep.mubr.msk.f32.mxu1 %vm43_vm0, %v22_v10  ;;  %v270_v17 = vpack.c.bf16 %v34_v16, %v33_v15  ;;  %v273_v20 = vpack.c.bf16 %v36_v19, %v35_v18  ;;  %v38_v22 = vld [vmem:[%s497_s1 + $0x68] sm:$0xff]  ;;  %v39_v24 = vld [vmem:[%s497_s1 + $0x70] sm:$0xff]  ;;  %v40_v25 = vld [vmem:[%s497_s1 + $0x78] sm:$0xff] }
   0x7   :  { %v276_v23 = vpack.c.bf16 %v38_v22, %v37_v21  ;;  %v279_v26 = vpack.c.bf16 %v40_v25, %v39_v24  ;;  %v41_v27 = vld [vmem:[%s497_s1 + $0x80] sm:$0xff]  ;;  %v42_v28 = vld [vmem:[%s497_s1 + $0x88] sm:$0xff]  ;;  %v20_v32 = vld [vmem:[%s498_s0 + $0x18] sm:$0xff] }
   0x8   :  { %262 = vmatpush1.bf16.msra.mxu0 %v261_v6  ;;  %294 = vmatpush1.bf16.msra.mxu1 %v261_v6  ;;  %v282_v29 = vpack.c.bf16 %v42_v28, %v41_v27  ;;  %v17_v30 = vld [vmem:[%s498_s0] sm:$0xff]  ;;  %v24_v33 = vld [vmem:[%s498_s0 + $0x38] sm:$0xff]  ;;  %v19_v34 = vld [vmem:[%s498_s0 + $0x10] sm:$0xff] }
   0x9   :  { %263 = vmatprep.subr.bf16.mxu0 %v314_v0  ;;  %286 = vmatprep.subr.bf16.mxu1 %v314_v0  ;;  %v21_v31 = vld [vmem:[%s498_s0 + $0x20] sm:$0xff]  ;;  %v23_v35 = vld [vmem:[%s498_s0 + $0x30] sm:$0xff]  ;;  %v146_v62 = vld [vmem:[%s499_s3 + $0x8] sm:$0xff] }
   0xa   :  { %v145_v61 = vld [vmem:[%s499_s3] sm:$0xff]  ;;  %v147_v63 = vld [vmem:[%s499_s3 + $0x10] sm:$0xff]  ;;  %v142_v19 = vld [vmem:[%s500_s2 + $0x8] sm:$0xff] }
   0xb   :  { %v141_v12 = vld [vmem:[%s500_s2] sm:$0xff]  ;;  %v143_v15 = vld [vmem:[%s500_s2 + $0x10] sm:$0xff]  ;;  %v144_v22 = vld [vmem:[%s500_s2 + $0x18] sm:$0xff] }
   0xc   :  { %265 = vmatpush1.bf16.msra.mxu0 %v264_v11  ;;  %295 = vmatpush1.bf16.msra.mxu1 %v264_v11  ;;  %v148_v24 = vld [vmem:[%s499_s3 + $0x18] sm:$0xff] }
   0xd   :  { %266 = vmatprep.subr.bf16.mxu0 %v314_v0  ;;  %287 = vmatprep.subr.bf16.mxu1 %v314_v0 }
  0x10   :  { %268 = vmatpush1.bf16.msra.mxu0 %v267_v14  ;;  %296 = vmatpush1.bf16.msra.mxu1 %v267_v14 }
  0x11   :  { %269 = vmatprep.subr.bf16.mxu0 %v314_v0  ;;  %288 = vmatprep.subr.bf16.mxu1 %v314_v0 }
  0x14   :  { %271 = vmatpush1.bf16.msra.mxu0 %v270_v17  ;;  %297 = vmatpush1.bf16.msra.mxu1 %v270_v17 }
  0x15   :  { %272 = vmatprep.subr.bf16.mxu0 %v314_v0  ;;  %289 = vmatprep.subr.bf16.mxu1 %v314_v0 }
  0x18   :  { %274 = vmatpush1.bf16.msra.mxu0 %v273_v20  ;;  %298 = vmatpush1.bf16.msra.mxu1 %v273_v20 }
  0x19   :  { %275 = vmatprep.subr.bf16.mxu0 %v314_v0  ;;  %290 = vmatprep.subr.bf16.mxu1 %v314_v0 }
  0x1c   :  { %277 = vmatpush1.bf16.msra.mxu0 %v276_v23  ;;  %299 = vmatpush1.bf16.msra.mxu1 %v276_v23 }
  0x1d   :  { %278 = vmatprep.subr.bf16.mxu0 %v314_v0  ;;  %291 = vmatprep.subr.bf16.mxu1 %v314_v0 }
  0x20   :  { %280 = vmatpush1.bf16.msra.mxu0 %v279_v26  ;;  %300 = vmatpush1.bf16.msra.mxu1 %v279_v26 }
  0x21   :  { %281 = vmatprep.subr.bf16.mxu0 %v314_v0  ;;  %292 = vmatprep.subr.bf16.mxu1 %v314_v0 }
  0x24   :  { %283 = vmatpush1.bf16.msra.mxu0 %v282_v29  ;;  %301 = vmatpush1.bf16.msra.mxu1 %v282_v29 }
  0x27   :  { %121 = vmatmul.mubr.f32.vlgmr.msra.gmra.mrb[0].mxu0 %v17_v30  ;;  %131 = vmatmul.mubr.f32.vlgmr.msra.gmra.mrb[0].mxu1 %v21_v31 }
  0x28   :  { %254 = vmatprep.mubr.msk.f32.mxu0 %vm43_vm0, %v20_v32  ;;  %256 = vmatprep.mubr.msk.f32.mxu1 %vm43_vm0, %v24_v33 }
  0x2b   :  { %126 = vmatmul.mubr.f32.gmra.mrb[2].mxu0 %v19_v34  ;;  %136 = vmatmul.mubr.f32.gmra.mrb[2].mxu1 %v23_v35 }
  0xfa   :  { %v122_v36 = vpop.f32.mrb[0].mxu0  ;;  %v132_v37 = vpop.f32.mrb[0].mxu1 }
  0xfb   :  { %153 = vadd.xlane.f32.xlu1 %v132_v37  ;;  %149 = vadd.xlane.f32.xlu0 %v122_v36  ;;  %v124_v38 = vpop.f32.mrb[1].mxu0  ;;  %v134_v39 = vpop.f32.mrb[1].mxu1 }
  0xfe   :  { %v127_v40 = vpop.f32.mrb[2].mxu0  ;;  %v137_v41 = vpop.f32.mrb[2].mxu1 }
  0xff   :  { %155 = vadd.xlane.f32.xlu1 %v137_v41  ;;  %151 = vadd.xlane.f32.xlu0 %v127_v40  ;;  %v129_v42 = vpop.f32.mrb[3].mxu0  ;;  %v139_v43 = vpop.f32.mrb[3].mxu1 }
 0x188   :  { %v154_v44 = vpop.xlane.xlu1 %153  ;;  %v150_v45 = vpop.xlane.xlu0 %149 }
 0x189   :  { %v159_v46 = vmul.f32 0.0078125, %v154_v44  ;;  %v157_v47 = vmul.f32 0.0078125, %v150_v45 }
 0x18b   :  { %v441_v48 = vsub.f32 %v122_v36, %v157_v47  ;;  %v443_v51 = vsub.f32 %v132_v37, %v159_v46 }
 0x18c   :  { %v156_v49 = vpop.xlane.xlu1 %155  ;;  %v152_v50 = vpop.xlane.xlu0 %151 }
 0x18d   :  { %v160_v52 = vmul.f32 0.0078125, %v156_v49  ;;  %v158_v53 = vmul.f32 0.0078125, %v152_v50  ;;  %v165_v54 = vmul.f32 %v441_v48, %v441_v48  ;;  %v167_v57 = vmul.f32 %v443_v51, %v443_v51 }
 0x18f   :  { %v447_v55 = vsub.f32 %v127_v40, %v158_v53  ;;  %169 = vadd.xlane.f32.xlu0 %v165_v54  ;;  %v449_v56 = vsub.f32 %v137_v41, %v160_v52 }
 0x191   :  { %v166_v58 = vmul.f32 %v447_v55, %v447_v55  ;;  %v168_v59 = vmul.f32 %v449_v56, %v449_v56 }
 0x193   :  { %173 = vadd.xlane.f32.xlu0 %v167_v57  ;;  %171 = vadd.xlane.f32.xlu1 %v166_v58 }
 0x197   :  { %175 = vadd.xlane.f32.xlu1 %v168_v59 }
 0x1a8   :  { %219 = vperm.xlu1 %305, %v145_v61  }
 0x1ac   :  { %224 = vperm.xlu1 %305, %v146_v62  }
 0x1b0   :  { %229 = vperm.xlu1 %305, %v147_v63  }
 0x21c   :  { %v170_v0 = vpop.xlane.xlu0 %169 }
 0x21d   :  { %v177_v1 = vmul.f32 0.0078125, %v170_v0 }
 0x21f   :  { %v181_v2 = vadd.f32 1e-05, %v177_v1 }
 0x220   :  { %v172_v3 = vpop.xlane.xlu1 %171  ;;  %v174_v4 = vpop.xlane.xlu0 %173 }
 0x221   :  { %306 = vrsqrt.f32 %v181_v2  ;;  %v178_v5 = vmul.f32 0.0078125, %v172_v3  ;;  %v179_v6 = vmul.f32 0.0078125, %v174_v4 }
 0x223   :  { %v183_v7 = vadd.f32 1e-05, %v179_v6  ;;  %v182_v8 = vadd.f32 1e-05, %v178_v5 }
 0x224   :  { %v176_v9 = vpop.xlane.xlu1 %175 }
 0x225   :  { %v180_v10 = vmul.f32 0.0078125, %v176_v9  ;;  %308 = vrsqrt.f32 %v183_v7 }
 0x226   :  { %310 = vrsqrt.f32 %v182_v8 }
 0x227   :  { %v184_v11 = vadd.f32 1e-05, %v180_v10 }
 0x228   :  { %v220_v25 = vpop.permute.xlu1 %219 }
 0x229   :  { %312 = vrsqrt.f32 %v184_v11 }
 0x22b   :  { %v307_v13 = vpop.eup %306 }
 0x22c   :  { %v189_v14 = vmul.f32 %v307_v13, %v141_v12  ;;  %v225_v26 = vpop.permute.xlu1 %224 }
 0x22e   :  { %195 = vperm.xlu0 %304, %v189_v14  }
 0x22f   :  { %v309_v16 = vpop.eup %308 }
 0x230   :  { %v191_v17 = vmul.f32 %v309_v16, %v143_v15  ;;  %v311_v18 = vpop.eup %310  ;;  %v230_v28 = vpop.permute.xlu1 %229 }
 0x231   :  { %v190_v20 = vmul.f32 %v311_v18, %v142_v19 }
 0x232   :  { %205 = vperm.xlu1 %305, %v191_v17  }
 0x233   :  { %v313_v21 = vpop.eup %312 }
 0x234   :  { %v192_v23 = vmul.f32 %v313_v21, %v144_v22 }
 0x236   :  { %200 = vperm.xlu1 %305, %v190_v20  }
 0x23a   :  { %210 = vperm.xlu1 %305, %v192_v23  }
 0x23e   :  { %234 = vperm.xlu1 %305, %v148_v24  }
 0x2ad   :  { %v196_v27 = vpop.permute.xlu0 %195 }
 0x2ae   :  { %v213_v29 = vmul.f32 %v196_v27, %v441_v48 }
 0x2b0   :  { %v237_v30 = vadd.f32 %v220_v25, %v213_v29 }
 0x2b1   :  { %v206_v32 = vpop.permute.xlu1 %205 }
 0x2b2   :  { %v241_v31 = vmax.f32 %v237_v30, 0.0  ;;  %v215_v33 = vmul.f32 %v206_v32, %v443_v51 }
 0x2b4   :  { %245 = vst [vmem:[%s501_s4] sm:$0xff] %v241_v31  ;;  %v239_v34 = vadd.f32 %v230_v28, %v215_v33 }
 0x2b5   :  { %v201_v35 = vpop.permute.xlu1 %200 }
 0x2b6   :  { %v243_v36 = vmax.f32 %v239_v34, 0.0  ;;  %v214_v37 = vmul.f32 %v201_v35, %v447_v55 }
 0x2b8   :  { %247 = vst [vmem:[%s501_s4 + $0x10] sm:$0xff] %v243_v36  ;;  %v238_v38 = vadd.f32 %v225_v26, %v214_v37 }
 0x2b9   :  { %v211_v39 = vpop.permute.xlu1 %210 }
 0x2ba   :  { %v242_v40 = vmax.f32 %v238_v38, 0.0  ;;  %v216_v41 = vmul.f32 %v211_v39, %v449_v56 }
 0x2bc   :  { %246 = vst [vmem:[%s501_s4 + $0x8] sm:$0xff] %v242_v40 }
 0x2bd   :  { %v235_v42 = vpop.permute.xlu1 %234 }
 0x2be   :  { %v240_v43 = vadd.f32 %v235_v42, %v216_v41 }
 0x2c0   :  { %v244_v44 = vmax.f32 %v240_v43, 0.0 }
 0x2c2   :  { %248 = vst [vmem:[%s501_s4 + $0x18] sm:$0xff] %v244_v44 }

// kernel: hyper_unet_forward.22
= control target key start
LH: loop header
LB: loop body
LE: loop exit
PB: predicated region body
PF: predicated region fallthrough
CT: control target
= control target key end

     0   :  { %v356_v0 = vmov 0.0|0.0   ;;  %vm67_vm0 = vcmask 130048   ;;  %s565_s3 = inlined_call_operand.vmem [shape: f32[144,128], index: 3, kind: input, shape index: {}]   ;;  %s566_s1 = inlined_call_operand.vmem [shape: f32[144,128], index: 1, kind: input, shape index: {}]   ;;  %s567_s2 = inlined_call_operand.vmem [shape: f32[16,144], index: 2, kind: input, shape index: {}]   ;;  %s568_s0 = inlined_call_operand.vmem [shape: f32[16,144], index: 0, kind: input, shape index: {}]   ;;  %s569_s5 = inlined_call_operand.vmem [shape: f32[16,1], index: 5, kind: input, shape index: {}]   ;;  %s570_s4 = inlined_call_operand.vmem [shape: f32[16,1], index: 4, kind: input, shape index: {}]   ;;  %s571_s6 = inlined_call_operand.vmem [shape: f32[16,128], index: 6, kind: output, shape index: {}]  }
   0x1   :  { %292 = vmatprep.subr.bf16.mxu1 %v356_v0  ;;  %319 = vmatprep.subr.bf16.mxu0 %v356_v0  ;;  %v49_v1 = vld [vmem:[%s565_s3] sm:$0xff]  ;;  %v50_v2 = vld [vmem:[%s565_s3 + $0x8] sm:$0xff]  ;;  %v51_v6 = vld [vmem:[%s565_s3 + $0x10] sm:$0xff] }
   0x2   :  { %v27_v3 = vld [vmem:[%s566_s1] sm:$0xff]  ;;  %v293_v4 = vpack.c.bf16 %v50_v2, %v49_v1  ;;  %v28_v5 = vld [vmem:[%s566_s1 + $0x8] sm:$0xff]  ;;  %v52_v7 = vld [vmem:[%s565_s3 + $0x18] sm:$0xff] }
   0x3   :  { %v320_v8 = vpack.c.bf16 %v28_v5, %v27_v3  ;;  %v29_v9 = vld [vmem:[%s566_s1 + $0x10] sm:$0xff]  ;;  %v30_v10 = vld [vmem:[%s566_s1 + $0x18] sm:$0xff]  ;;  %v296_v11 = vpack.c.bf16 %v52_v7, %v51_v6  ;;  %v53_v13 = vld [vmem:[%s565_s3 + $0x20] sm:$0xff] }
   0x4   :  { %294 = vmatpush1.bf16.msra.mxu1 %v293_v4  ;;  %v323_v12 = vpack.c.bf16 %v30_v10, %v29_v9  ;;  %v54_v14 = vld [vmem:[%s565_s3 + $0x28] sm:$0xff]  ;;  %v31_v15 = vld [vmem:[%s566_s1 + $0x20] sm:$0xff]  ;;  %v55_v19 = vld [vmem:[%s565_s3 + $0x30] sm:$0xff] }
   0x5   :  { %321 = vmatpush1.bf16.msra.mxu0 %v320_v8  ;;  %295 = vmatprep.subr.bf16.mxu1 %v356_v0  ;;  %v32_v16 = vld [vmem:[%s566_s1 + $0x28] sm:$0xff]  ;;  %v299_v17 = vpack.c.bf16 %v54_v14, %v53_v13  ;;  %v56_v20 = vld [vmem:[%s565_s3 + $0x38] sm:$0xff]  ;;  %v33_v21 = vld [vmem:[%s566_s1 + $0x30] sm:$0xff] }
   0x6   :  { %322 = vmatprep.subr.bf16.mxu0 %v356_v0  ;;  %v326_v18 = vpack.c.bf16 %v32_v16, %v31_v15  ;;  %v34_v22 = vld [vmem:[%s566_s1 + $0x38] sm:$0xff]  ;;  %v302_v23 = vpack.c.bf16 %v56_v20, %v55_v19  ;;  %v57_v24 = vld [vmem:[%s565_s3 + $0x40] sm:$0xff]  ;;  %v58_v26 = vld [vmem:[%s565_s3 + $0x48] sm:$0xff] }
   0x7   :  { %v329_v25 = vpack.c.bf16 %v34_v22, %v33_v21  ;;  %v46_v27 = vld [vmem:[%s567_s2 + $0x8] sm:$0xff]  ;;  %v35_v29 = vld [vmem:[%s566_s1 + $0x40] sm:$0xff]  ;;  %v305_v31 = vpack.c.bf16 %v58_v26, %v57_v24  ;;  %v59_v33 = vld [vmem:[%s565_s3 + $0x50] sm:$0xff] }
   0x8   :  { %297 = vmatpush1.bf16.msra.mxu1 %v296_v11  ;;  %v24_v28 = vld [vmem:[%s568_s0 + $0x8] sm:$0xff]  ;;  %288 = vmatprep.mubr.msk.f32.mxu1 %vm67_vm0, %v46_v27  ;;  %v60_v34 = vld [vmem:[%s565_s3 + $0x58] sm:$0xff]  ;;  %v37_v35 = vld [vmem:[%s566_s1 + $0x50] sm:$0xff] }
   0x9   :  { %324 = vmatpush1.bf16.msra.mxu0 %v323_v12  ;;  %298 = vmatprep.subr.bf16.mxu1 %v356_v0  ;;  %v36_v30 = vld [vmem:[%s566_s1 + $0x48] sm:$0xff]  ;;  %v38_v36 = vld [vmem:[%s566_s1 + $0x58] sm:$0xff]  ;;  %v308_v37 = vpack.c.bf16 %v60_v34, %v59_v33  ;;  %v61_v39 = vld [vmem:[%s565_s3 + $0x60] sm:$0xff] }
   0xa   :  { %325 = vmatprep.subr.bf16.mxu0 %v356_v0  ;;  %290 = vmatprep.mubr.msk.f32.mxu0 %vm67_vm0, %v24_v28  ;;  %v332_v32 = vpack.c.bf16 %v36_v30, %v35_v29  ;;  %v335_v38 = vpack.c.bf16 %v38_v36, %v37_v35  ;;  %v62_v40 = vld [vmem:[%s565_s3 + $0x68] sm:$0xff]  ;;  %v39_v41 = vld [vmem:[%s566_s1 + $0x60] sm:$0xff]  ;;  %v63_v45 = vld [vmem:[%s565_s3 + $0x70] sm:$0xff] }
   0xb   :  { %v40_v42 = vld [vmem:[%s566_s1 + $0x68] sm:$0xff]  ;;  %v311_v43 = vpack.c.bf16 %v62_v40, %v61_v39  ;;  %v64_v46 = vld [vmem:[%s565_s3 + $0x78] sm:$0xff]  ;;  %v41_v47 = vld [vmem:[%s566_s1 + $0x70] sm:$0xff] }
   0xc   :  { %300 = vmatpush1.bf16.msra.mxu1 %v299_v17  ;;  %v338_v44 = vpack.c.bf16 %v40_v42, %v39_v41  ;;  %v42_v48 = vld [vmem:[%s566_s1 + $0x78] sm:$0xff]  ;;  %v314_v49 = vpack.c.bf16 %v64_v46, %v63_v45  ;;  %v65_v51 = vld [vmem:[%s565_s3 + $0x80] sm:$0xff]  ;;  %v66_v52 = vld [vmem:[%s565_s3 + $0x88] sm:$0xff]  ;;  %v357_v17 = vmov 0  }
   0xd   :  { %327 = vmatpush1.bf16.msra.mxu0 %v326_v18  ;;  %301 = vmatprep.subr.bf16.mxu1 %v356_v0  ;;  %v341_v50 = vpack.c.bf16 %v42_v48, %v41_v47  ;;  %v43_v53 = vld [vmem:[%s566_s1 + $0x80] sm:$0xff]  ;;  %v44_v54 = vld [vmem:[%s566_s1 + $0x88] sm:$0xff]  ;;  %v317_v55 = vpack.c.bf16 %v66_v52, %v65_v51  ;;  %v48_v59 = vld [vmem:[%s567_s2 + $0x18] sm:$0xff] }
   0xe   :  { %328 = vmatprep.subr.bf16.mxu0 %v356_v0  ;;  %v344_v56 = vpack.c.bf16 %v44_v54, %v43_v53  ;;  %v45_v57 = vld [vmem:[%s567_s2] sm:$0xff]  ;;  %v26_v60 = vld [vmem:[%s568_s0 + $0x18] sm:$0xff]  ;;  %v47_v61 = vld [vmem:[%s567_s2 + $0x10] sm:$0xff]  ;;  %351 = vset.pattern.permute.xlu1 %v357_v17 }
   0xf   :  { %v23_v58 = vld [vmem:[%s568_s0] sm:$0xff]  ;;  %v25_v62 = vld [vmem:[%s568_s0 + $0x10] sm:$0xff]  ;;  %350 = vset.pattern.permute.xlu0 %v357_v17  ;;  %v231_v28 = vld [vmem:[%s570_s4 + $0x8] sm:$0xff] }
  0x10   :  { %303 = vmatpush1.bf16.msra.mxu1 %v302_v23  ;;  %v232_v18 = vld [vmem:[%s569_s5] sm:$0xff] }
  0x11   :  { %330 = vmatpush1.bf16.msra.mxu0 %v329_v25  ;;  %304 = vmatprep.subr.bf16.mxu1 %v356_v0  ;;  %v230_v25 = vld [vmem:[%s570_s4] sm:$0xff] }
  0x12   :  { %331 = vmatprep.subr.bf16.mxu0 %v356_v0 }
  0x14   :  { %306 = vmatpush1.bf16.msra.mxu1 %v305_v31  ;;  %v233_v31 = vld [vmem:[%s569_s5 + $0x8] sm:$0xff] }
  0x15   :  { %333 = vmatpush1.bf16.msra.mxu0 %v332_v32  ;;  %307 = vmatprep.subr.bf16.mxu1 %v356_v0 }
  0x16   :  { %334 = vmatprep.subr.bf16.mxu0 %v356_v0 }
  0x18   :  { %309 = vmatpush1.bf16.msra.mxu1 %v308_v37 }
  0x19   :  { %336 = vmatpush1.bf16.msra.mxu0 %v335_v38  ;;  %310 = vmatprep.subr.bf16.mxu1 %v356_v0 }
  0x1a   :  { %337 = vmatprep.subr.bf16.mxu0 %v356_v0 }
  0x1c   :  { %312 = vmatpush1.bf16.msra.mxu1 %v311_v43 }
  0x1d   :  { %339 = vmatpush1.bf16.msra.mxu0 %v338_v44  ;;  %313 = vmatprep.subr.bf16.mxu1 %v356_v0 }
  0x1e   :  { %340 = vmatprep.subr.bf16.mxu0 %v356_v0 }
  0x20   :  { %315 = vmatpush1.bf16.msra.mxu1 %v314_v49 }
  0x21   :  { %342 = vmatpush1.bf16.msra.mxu0 %v341_v50  ;;  %316 = vmatprep.subr.bf16.mxu1 %v356_v0 }
  0x22   :  { %343 = vmatprep.subr.bf16.mxu0 %v356_v0 }
  0x24   :  { %318 = vmatpush1.bf16.msra.mxu1 %v317_v55 }
  0x25   :  { %345 = vmatpush1.bf16.msra.mxu0 %v344_v56 }
  0x27   :  { %139 = vmatmul.mubr.f32.vlgmr.msra.gmra.mrb[0].mxu1 %v45_v57 }
  0x28   :  { %220 = vmatmul.mubr.f32.vlgmr.msra.gmra.mrb[0].mxu0 %v23_v58  ;;  %289 = vmatprep.mubr.msk.f32.mxu1 %vm67_vm0, %v48_v59 }
  0x29   :  { %291 = vmatprep.mubr.msk.f32.mxu0 %vm67_vm0, %v26_v60 }
  0x2b   :  { %144 = vmatmul.mubr.f32.gmra.mrb[2].mxu1 %v47_v61 }
  0x2c   :  { %225 = vmatmul.mubr.f32.gmra.mrb[2].mxu0 %v25_v62 }
  0xfa   :  { %v140_v63 = vpop.f32.mrb[0].mxu1 }
  0xfb   :  { %v221_v0 = vpop.f32.mrb[0].mxu0  ;;  %v142_v1 = vpop.f32.mrb[1].mxu1 }
  0xfc   :  { %v222_v2 = vadd.f32 %v221_v0, %v140_v63  ;;  %v223_v3 = vpop.f32.mrb[1].mxu0 }
  0xfe   :  { %234 = vadd.xlane.f32.xlu0 %v222_v2  ;;  %v145_v4 = vpop.f32.mrb[2].mxu1 }
  0xff   :  { %v226_v5 = vpop.f32.mrb[2].mxu0  ;;  %v147_v6 = vpop.f32.mrb[3].mxu1 }
 0x100   :  { %v227_v7 = vadd.f32 %v226_v5, %v145_v4  ;;  %v228_v8 = vpop.f32.mrb[3].mxu0 }
 0x102   :  { %236 = vadd.xlane.f32.xlu0 %v227_v7 }
 0x18b   :  { %v235_v9 = vpop.xlane.xlu0 %234 }
 0x18c   :  { %v238_v10 = vmul.f32 0.0078125, %v235_v9 }
 0x18e   :  { %v240_v11 = vsub.f32 %v222_v2, %v238_v10 }
 0x18f   :  { %v237_v12 = vpop.xlane.xlu0 %236 }
 0x190   :  { %v239_v13 = vmul.f32 0.0078125, %v237_v12  ;;  %v242_v14 = vmul.f32 %v240_v11, %v240_v11 }
 0x192   :  { %v241_v15 = vsub.f32 %v227_v7, %v239_v13  ;;  %244 = vadd.xlane.f32.xlu1 %v242_v14 }
 0x194   :  { %v243_v16 = vmul.f32 %v241_v15, %v241_v15 }
 0x196   :  { %246 = vadd.xlane.f32.xlu1 %v243_v16 }
 0x1a7   :  { %270 = vperm.xlu1 %351, %v232_v18  }
 0x21f   :  { %v245_v19 = vpop.xlane.xlu1 %244 }
 0x220   :  { %v248_v20 = vmul.f32 0.0078125, %v245_v19 }
 0x222   :  { %v250_v21 = vadd.f32 1e-05, %v248_v20 }
 0x223   :  { %v247_v22 = vpop.xlane.xlu1 %246 }
 0x224   :  { %352 = vrsqrt.f32 %v250_v21  ;;  %v249_v23 = vmul.f32 0.0078125, %v247_v22 }
 0x226   :  { %v251_v24 = vadd.f32 1e-05, %v249_v23 }
 0x227   :  { %v271_v32 = vpop.permute.xlu1 %270 }
 0x228   :  { %354 = vrsqrt.f32 %v251_v24 }
 0x22e   :  { %v353_v26 = vpop.eup %352 }
 0x22f   :  { %v254_v27 = vmul.f32 %v353_v26, %v230_v25 }
 0x231   :  { %258 = vperm.xlu0 %350, %v254_v27  }
 0x232   :  { %v355_v29 = vpop.eup %354 }
 0x233   :  { %v255_v30 = vmul.f32 %v355_v29, %v231_v28 }
 0x235   :  { %263 = vperm.xlu1 %351, %v255_v30  }
 0x239   :  { %275 = vperm.xlu1 %351, %v233_v31  }
 0x2b0   :  { %v259_v33 = vpop.permute.xlu0 %258 }
 0x2b1   :  { %v266_v34 = vmul.f32 %v259_v33, %v240_v11 }
 0x2b3   :  { %v278_v35 = vadd.f32 %v271_v32, %v266_v34 }
 0x2b4   :  { %v264_v36 = vpop.permute.xlu1 %263 }
 0x2b5   :  { %v280_v37 = vmax.f32 %v278_v35, 0.0  ;;  %v267_v38 = vmul.f32 %v264_v36, %v241_v15 }
 0x2b7   :  { %282 = vst [vmem:[%s571_s6] sm:$0xff] %v280_v37 }
 0x2b8   :  { %v276_v39 = vpop.permute.xlu1 %275 }
 0x2b9   :  { %v279_v40 = vadd.f32 %v276_v39, %v267_v38 }
 0x2bb   :  { %v281_v41 = vmax.f32 %v279_v40, 0.0 }
 0x2bd   :  { %283 = vst [vmem:[%s571_s6 + $0x8] sm:$0xff] %v281_v41 }

// kernel: hyper_unet_forward.21
= control target key start
LH: loop header
LB: loop body
LE: loop exit
PB: predicated region body
PF: predicated region fallthrough
CT: control target
= control target key end

     0   :  { %vm59_vm0 = vcmask 261120   ;;  %s550_s1 = inlined_call_operand.vmem [shape: f32[288,128], index: 1, kind: input, shape index: {}]   ;;  %s551_s0 = inlined_call_operand.vmem [shape: f32[16,288], index: 0, kind: input, shape index: {}]   ;;  %s552_s3 = inlined_call_operand.vmem [shape: f32[16,1], index: 3, kind: input, shape index: {}]   ;;  %s553_s2 = inlined_call_operand.vmem [shape: f32[16,1], index: 2, kind: input, shape index: {}]   ;;  %s554_s4 = inlined_call_operand.vmem [shape: f32[16,128], index: 4, kind: output, shape index: {}]  }
   0x1   :  { %v39_v0 = vld [vmem:[%s550_s1 + $0x80] sm:$0xff]  ;;  %v40_v1 = vld [vmem:[%s550_s1 + $0x88] sm:$0xff]  ;;  %v41_v5 = vld [vmem:[%s550_s1 + $0x90] sm:$0xff] }
   0x2   :  { %v23_v2 = vld [vmem:[%s550_s1] sm:$0xff]  ;;  %v331_v3 = vpack.c.bf16 %v40_v1, %v39_v0  ;;  %v24_v4 = vld [vmem:[%s550_s1 + $0x8] sm:$0xff]  ;;  %v42_v6 = vld [vmem:[%s550_s1 + $0x98] sm:$0xff] }
   0x3   :  { %v333_v7 = vpack.c.bf16 %v24_v4, %v23_v2  ;;  %v335_v8 = vpack.c.bf16 %v42_v6, %v41_v5  ;;  %v25_v9 = vld [vmem:[%s550_s1 + $0x10] sm:$0xff]  ;;  %v26_v10 = vld [vmem:[%s550_s1 + $0x18] sm:$0xff]  ;;  %v43_v11 = vld [vmem:[%s550_s1 + $0xa0] sm:$0xff] }
   0x4   :  { %332 = vmatprep.subr.bf16.mxu0 %v331_v3  ;;  %v44_v12 = vld [vmem:[%s550_s1 + $0xa8] sm:$0xff]  ;;  %v337_v13 = vpack.c.bf16 %v26_v10, %v25_v9  ;;  %v27_v15 = vld [vmem:[%s550_s1 + $0x20] sm:$0xff]  ;;  %v45_v17 = vld [vmem:[%s550_s1 + $0xb0] sm:$0xff] }
   0x5   :  { %334 = vmatpush3.bf16.msra.mxu0 %v333_v7  ;;  %v339_v14 = vpack.c.bf16 %v44_v12, %v43_v11  ;;  %v28_v16 = vld [vmem:[%s550_s1 + $0x28] sm:$0xff]  ;;  %v46_v18 = vld [vmem:[%s550_s1 + $0xb8] sm:$0xff]  ;;  %v29_v20 = vld [vmem:[%s550_s1 + $0x30] sm:$0xff] }
   0x6   :  { %336 = vmatprep.subr.bf16.mxu0 %v335_v8  ;;  %v341_v19 = vpack.c.bf16 %v28_v16, %v27_v15  ;;  %v343_v21 = vpack.c.bf16 %v46_v18, %v45_v17  ;;  %v30_v22 = vld [vmem:[%s550_s1 + $0x38] sm:$0xff]  ;;  %v55_v23 = vld [vmem:[%s550_s1 + $0x100] sm:$0xff]  ;;  %v56_v24 = vld [vmem:[%s550_s1 + $0x108] sm:$0xff] }
   0x7   :  { %v47_v25 = vld [vmem:[%s550_s1 + $0xc0] sm:$0xff]  ;;  %v48_v26 = vld [vmem:[%s550_s1 + $0xc8] sm:$0xff]  ;;  %v363_v27 = vpack.c.bf16 %v56_v24, %v55_v23  ;;  %v57_v28 = vld [vmem:[%s550_s1 + $0x110] sm:$0xff]  ;;  %v345_v30 = vpack.c.bf16 %v30_v22, %v29_v20 }
   0x8   :  { %v58_v29 = vld [vmem:[%s550_s1 + $0x118] sm:$0xff]  ;;  %v18_v32 = vld [vmem:[%s551_s0 + $0x8] sm:$0xff]  ;;  %v19_v33 = vld [vmem:[%s551_s0 + $0x10] sm:$0xff]  ;;  %v347_v34 = vpack.c.bf16 %v48_v26, %v47_v25 }
   0x9   :  { %338 = vmatpush3.bf16.msra.mxu0 %v337_v13  ;;  %364 = vmatprep.subr.bf16.mxu1 %v363_v27  ;;  %v367_v31 = vpack.c.bf16 %v58_v29, %v57_v28  ;;  %v31_v35 = vld [vmem:[%s550_s1 + $0x40] sm:$0xff]  ;;  %v32_v36 = vld [vmem:[%s550_s1 + $0x48] sm:$0xff]  ;;  %v49_v37 = vld [vmem:[%s550_s1 + $0xd0] sm:$0xff] }
   0xa   :  { %340 = vmatprep.subr.bf16.mxu0 %v339_v14  ;;  %366 = vmatpush3.bf16.msra.mxu1 %v363_v27  ;;  %v50_v38 = vld [vmem:[%s550_s1 + $0xd8] sm:$0xff]  ;;  %v349_v39 = vpack.c.bf16 %v32_v36, %v31_v35  ;;  %v33_v41 = vld [vmem:[%s550_s1 + $0x50] sm:$0xff]  ;;  %v22_v43 = vld [vmem:[%s551_s0 + $0x28] sm:$0xff]  ;;  %v378_v14 = vmov 0  }
   0xb   :  { %368 = vmatprep.subr.bf16.mxu1 %v367_v31  ;;  %130 = vmatprep.mubr.f32.mxu0 %v18_v32  ;;  %v351_v40 = vpack.c.bf16 %v50_v38, %v49_v37  ;;  %v34_v42 = vld [vmem:[%s550_s1 + $0x58] sm:$0xff]  ;;  %v51_v44 = vld [vmem:[%s550_s1 + $0xe0] sm:$0xff]  ;;  %v52_v45 = vld [vmem:[%s550_s1 + $0xe8] sm:$0xff] }
   0xc   :  { %328 = vmatprep.mubr.msk.f32.mxu1 %vm59_vm0, %v19_v33  ;;  %v353_v46 = vpack.c.bf16 %v34_v42, %v33_v41  ;;  %v355_v47 = vpack.c.bf16 %v52_v45, %v51_v44  ;;  %v35_v48 = vld [vmem:[%s550_s1 + $0x60] sm:$0xff]  ;;  %v36_v49 = vld [vmem:[%s550_s1 + $0x68] sm:$0xff]  ;;  %v53_v50 = vld [vmem:[%s550_s1 + $0xf0] sm:$0xff]  ;;  %373 = vset.pattern.permute.xlu1 %v378_v14 }
   0xd   :  { %342 = vmatpush3.bf16.msra.mxu0 %v341_v19  ;;  %v54_v51 = vld [vmem:[%s550_s1 + $0xf8] sm:$0xff]  ;;  %v357_v52 = vpack.c.bf16 %v36_v49, %v35_v48  ;;  %v37_v54 = vld [vmem:[%s550_s1 + $0x70] sm:$0xff]  ;;  %v17_v57 = vld [vmem:[%s551_s0] sm:$0xff]  ;;  %372 = vset.pattern.permute.xlu0 %v378_v14 }
   0xe   :  { %344 = vmatprep.subr.bf16.mxu0 %v343_v21  ;;  %370 = vmatpush3.bf16.msra.mxu1 %v367_v31  ;;  %v359_v53 = vpack.c.bf16 %v54_v51, %v53_v50  ;;  %v38_v55 = vld [vmem:[%s550_s1 + $0x78] sm:$0xff]  ;;  %v21_v58 = vld [vmem:[%s551_s0 + $0x20] sm:$0xff]  ;;  %v217_v25 = vld [vmem:[%s553_s2 + $0x8] sm:$0xff] }
   0xf   :  { %v361_v56 = vpack.c.bf16 %v38_v55, %v37_v54  ;;  %v20_v59 = vld [vmem:[%s551_s0 + $0x18] sm:$0xff]  ;;  %v218_v15 = vld [vmem:[%s552_s3] sm:$0xff]  ;;  %v219_v28 = vld [vmem:[%s552_s3 + $0x8] sm:$0xff] }
  0x10   :  { %v216_v22 = vld [vmem:[%s553_s2] sm:$0xff] }
  0x11   :  { %346 = vmatpush3.bf16.msra.mxu0 %v345_v30  ;;  %329 = vmatmul.mubr.msk.f32.vlgmr.msra.gmra.mrb[0].mxu1 %vm59_vm0, %v22_v43 }
  0x12   :  { %348 = vmatprep.subr.bf16.mxu0 %v347_v34 }
  0x15   :  { %350 = vmatpush3.bf16.msra.mxu0 %v349_v39 }
  0x16   :  { %352 = vmatprep.subr.bf16.mxu0 %v351_v40 }
  0x19   :  { %354 = vmatpush3.bf16.msra.mxu0 %v353_v46 }
  0x1a   :  { %356 = vmatprep.subr.bf16.mxu0 %v355_v47 }
  0x1d   :  { %358 = vmatpush3.bf16.msra.mxu0 %v357_v52 }
  0x1e   :  { %360 = vmatprep.subr.bf16.mxu0 %v359_v53 }
  0x21   :  { %362 = vmatpush3.bf16.msra.mxu0 %v361_v56 }
  0x24   :  { %131 = vmatmul.mubr.f32.vlgmr.msra.gmra.mrb[0].mxu0 %v17_v57 }
  0x25   :  { %135 = vmatprep.mubr.f32.mxu0 %v21_v58 }
  0x28   :  { %136 = vmatmul.mubr.f32.gmra.mrb[2].mxu0 %v20_v59 }
  0xe4   :  { %v330_v60 = vpop.f32.mrb[0].mxu1 }
  0xe5   :  { %v207_v61 = vpop.f32.mrb[1].mxu1 }
  0xf7   :  { %v308_v62 = vpop.f32.mrb[0].mxu0 }
  0xf8   :  { %v309_v63 = vpop.f32.mrb[1].mxu0 }
  0xf9   :  { %v310_v0 = vadd.f32 %v309_v63, %v308_v62 }
  0xfb   :  { %v208_v1 = vadd.f32 %v310_v0, %v207_v61  ;;  %v311_v2 = vpop.f32.mrb[2].mxu0 }
  0xfc   :  { %v312_v3 = vpop.f32.mrb[3].mxu0 }
  0xfd   :  { %v313_v4 = vadd.f32 %v312_v3, %v311_v2  ;;  %220 = vadd.xlane.f32.xlu0 %v208_v1 }
  0xff   :  { %v213_v5 = vadd.f32 %v330_v60, %v313_v4 }
 0x101   :  { %222 = vadd.xlane.f32.xlu0 %v213_v5 }
 0x18a   :  { %v221_v6 = vpop.xlane.xlu0 %220 }
 0x18b   :  { %v224_v7 = vmul.f32 0.0078125, %v221_v6 }
 0x18d   :  { %v226_v8 = vsub.f32 %v208_v1, %v224_v7 }
 0x18e   :  { %v223_v9 = vpop.xlane.xlu0 %222 }
 0x18f   :  { %v225_v10 = vmul.f32 0.0078125, %v223_v9  ;;  %v228_v11 = vmul.f32 %v226_v8, %v226_v8 }
 0x191   :  { %v227_v12 = vsub.f32 %v213_v5, %v225_v10  ;;  %230 = vadd.xlane.f32.xlu1 %v228_v11 }
 0x193   :  { %v229_v13 = vmul.f32 %v227_v12, %v227_v12 }
 0x195   :  { %232 = vadd.xlane.f32.xlu1 %v229_v13 }
 0x1a6   :  { %256 = vperm.xlu1 %373, %v218_v15  }
 0x21e   :  { %v231_v16 = vpop.xlane.xlu1 %230 }
 0x21f   :  { %v234_v17 = vmul.f32 0.0078125, %v231_v16 }
 0x221   :  { %v236_v18 = vadd.f32 1e-05, %v234_v17 }
 0x222   :  { %v233_v19 = vpop.xlane.xlu1 %232 }
 0x223   :  { %374 = vrsqrt.f32 %v236_v18  ;;  %v235_v20 = vmul.f32 0.0078125, %v233_v19 }
 0x225   :  { %v237_v21 = vadd.f32 1e-05, %v235_v20 }
 0x226   :  { %v257_v29 = vpop.permute.xlu1 %256 }
 0x227   :  { %376 = vrsqrt.f32 %v237_v21 }
 0x22d   :  { %v375_v23 = vpop.eup %374 }
 0x22e   :  { %v240_v24 = vmul.f32 %v375_v23, %v216_v22 }
 0x230   :  { %244 = vperm.xlu0 %372, %v240_v24  }
 0x231   :  { %v377_v26 = vpop.eup %376 }
 0x232   :  { %v241_v27 = vmul.f32 %v377_v26, %v217_v25 }
 0x234   :  { %249 = vperm.xlu1 %373, %v241_v27  }
 0x238   :  { %261 = vperm.xlu1 %373, %v219_v28  }
 0x2af   :  { %v245_v30 = vpop.permute.xlu0 %244 }
 0x2b0   :  { %v252_v31 = vmul.f32 %v245_v30, %v226_v8 }
 0x2b2   :  { %v264_v32 = vadd.f32 %v257_v29, %v252_v31 }
 0x2b3   :  { %v250_v33 = vpop.permute.xlu1 %249 }
 0x2b4   :  { %v266_v34 = vmax.f32 %v264_v32, 0.0  ;;  %v253_v35 = vmul.f32 %v250_v33, %v227_v12 }
 0x2b6   :  { %268 = vst [vmem:[%s554_s4] sm:$0xff] %v266_v34 }
 0x2b7   :  { %v262_v36 = vpop.permute.xlu1 %261 }
 0x2b8   :  { %v265_v37 = vadd.f32 %v262_v36, %v253_v35 }
 0x2ba   :  { %v267_v38 = vmax.f32 %v265_v37, 0.0 }
 0x2bc   :  { %269 = vst [vmem:[%s554_s4 + $0x8] sm:$0xff] %v267_v38 }

// kernel: hyper_unet_forward.23
= control target key start
LH: loop header
LB: loop body
LE: loop exit
PB: predicated region body
PF: predicated region fallthrough
CT: control target
= control target key end

     0   :  { %vm91_vm0 = vcmask 130048   ;;  %s639_s1 = inlined_call_operand.vmem [shape: f32[144,512], index: 1, kind: input, shape index: {}]   ;;  %s640_s0 = inlined_call_operand.vmem [shape: f32[8,144], index: 0, kind: input, shape index: {}]   ;;  %s641_s2 = inlined_call_operand.vmem [shape: f32[8,1], index: 2, kind: input, shape index: {}]   ;;  %s642_s3 = inlined_call_operand.vmem [shape: f32[8,1], index: 3, kind: input, shape index: {}]   ;;  %s643_s4 = inlined_call_operand.vmem [shape: f32[8,512], index: 4, kind: output, shape index: {}]  }
   0x1   :  { %v20_v0 = vld [vmem:[%s639_s1 + $0x8] sm:$0xff]  ;;  %v19_v2 = vld [vmem:[%s639_s1] sm:$0xff]  ;;  %v22_v5 = vld [vmem:[%s639_s1 + $0x18] sm:$0xff] }
   0x2   :  { %v24_v1 = vld [vmem:[%s639_s1 + $0x28] sm:$0xff]  ;;  %v23_v4 = vld [vmem:[%s639_s1 + $0x20] sm:$0xff]  ;;  %v26_v6 = vld [vmem:[%s639_s1 + $0x38] sm:$0xff] }
   0x3   :  { %v294_v3 = vpack.c.bf16 %v24_v1, %v20_v0  ;;  %v296_v7 = vpack.c.bf16 %v23_v4, %v19_v2  ;;  %v330_v8 = vpack.c.bf16 %v26_v6, %v22_v5  ;;  %v21_v9 = vld [vmem:[%s639_s1 + $0x10] sm:$0xff]  ;;  %v28_v11 = vld [vmem:[%s639_s1 + $0x48] sm:$0xff]  ;;  %v27_v14 = vld [vmem:[%s639_s1 + $0x40] sm:$0xff] }
   0x4   :  { %v25_v10 = vld [vmem:[%s639_s1 + $0x30] sm:$0xff]  ;;  %v32_v13 = vld [vmem:[%s639_s1 + $0x68] sm:$0xff]  ;;  %v31_v15 = vld [vmem:[%s639_s1 + $0x60] sm:$0xff] }
   0x5   :  { %295 = vmatprep.subr.bf16.mxu0 %v294_v3  ;;  %v332_v12 = vpack.c.bf16 %v25_v10, %v21_v9  ;;  %331 = vmatprep.subr.bf16.mxu1 %v330_v8  ;;  %v298_v16 = vpack.c.bf16 %v32_v13, %v28_v11  ;;  %v300_v17 = vpack.c.bf16 %v31_v15, %v27_v14  ;;  %v30_v18 = vld [vmem:[%s639_s1 + $0x58] sm:$0xff]  ;;  %v29_v20 = vld [vmem:[%s639_s1 + $0x50] sm:$0xff]  ;;  %v36_v23 = vld [vmem:[%s639_s1 + $0x88] sm:$0xff] }
   0x6   :  { %297 = vmatpush1.bf16.msra.mxu0 %v296_v7  ;;  %v34_v19 = vld [vmem:[%s639_s1 + $0x78] sm:$0xff]  ;;  %v33_v22 = vld [vmem:[%s639_s1 + $0x70] sm:$0xff]  ;;  %v40_v24 = vld [vmem:[%s639_s1 + $0xa8] sm:$0xff] }
   0x7   :  { %333 = vmatpush1.bf16.msra.mxu1 %v332_v12  ;;  %v334_v21 = vpack.c.bf16 %v34_v19, %v30_v18  ;;  %299 = vmatprep.subr.bf16.mxu0 %v298_v16  ;;  %v336_v25 = vpack.c.bf16 %v33_v22, %v29_v20  ;;  %v302_v26 = vpack.c.bf16 %v40_v24, %v36_v23  ;;  %v35_v27 = vld [vmem:[%s639_s1 + $0x80] sm:$0xff]  ;;  %v38_v29 = vld [vmem:[%s639_s1 + $0x98] sm:$0xff]  ;;  %v37_v31 = vld [vmem:[%s639_s1 + $0x90] sm:$0xff] }
   0x8   :  { %v39_v28 = vld [vmem:[%s639_s1 + $0xa0] sm:$0xff]  ;;  %v42_v30 = vld [vmem:[%s639_s1 + $0xb8] sm:$0xff]  ;;  %v41_v32 = vld [vmem:[%s639_s1 + $0xb0] sm:$0xff] }
   0x9   :  { %335 = vmatprep.subr.bf16.mxu1 %v334_v21  ;;  %v304_v33 = vpack.c.bf16 %v39_v28, %v35_v27  ;;  %v338_v34 = vpack.c.bf16 %v42_v30, %v38_v29  ;;  %v44_v35 = vld [vmem:[%s639_s1 + $0xc8] sm:$0xff]  ;;  %v43_v37 = vld [vmem:[%s639_s1 + $0xc0] sm:$0xff]  ;;  %v340_v38 = vpack.c.bf16 %v41_v32, %v37_v31  ;;  %v46_v41 = vld [vmem:[%s639_s1 + $0xd8] sm:$0xff] }
   0xa   :  { %301 = vmatpush1.bf16.msra.mxu0 %v300_v17  ;;  %v48_v36 = vld [vmem:[%s639_s1 + $0xe8] sm:$0xff]  ;;  %v47_v40 = vld [vmem:[%s639_s1 + $0xe0] sm:$0xff]  ;;  %v50_v42 = vld [vmem:[%s639_s1 + $0xf8] sm:$0xff] }
   0xb   :  { %337 = vmatpush1.bf16.msra.mxu1 %v336_v25  ;;  %303 = vmatprep.subr.bf16.mxu0 %v302_v26  ;;  %v306_v39 = vpack.c.bf16 %v48_v36, %v44_v35  ;;  %v342_v43 = vpack.c.bf16 %v50_v42, %v46_v41  ;;  %v45_v44 = vld [vmem:[%s639_s1 + $0xd0] sm:$0xff]  ;;  %v52_v46 = vld [vmem:[%s639_s1 + $0x108] sm:$0xff]  ;;  %v308_v48 = vpack.c.bf16 %v47_v40, %v43_v37  ;;  %v54_v49 = vld [vmem:[%s639_s1 + $0x118] sm:$0xff] }
   0xc   :  { %339 = vmatprep.subr.bf16.mxu1 %v338_v34  ;;  %v49_v45 = vld [vmem:[%s639_s1 + $0xf0] sm:$0xff]  ;;  %v56_v47 = vld [vmem:[%s639_s1 + $0x128] sm:$0xff]  ;;  %v58_v50 = vld [vmem:[%s639_s1 + $0x138] sm:$0xff] }
   0xd   :  { %v344_v51 = vpack.c.bf16 %v49_v45, %v45_v44  ;;  %v310_v52 = vpack.c.bf16 %v56_v47, %v52_v46  ;;  %v51_v53 = vld [vmem:[%s639_s1 + $0x100] sm:$0xff]  ;;  %v53_v55 = vld [vmem:[%s639_s1 + $0x110] sm:$0xff]  ;;  %v346_v56 = vpack.c.bf16 %v58_v50, %v54_v49  ;;  %v60_v58 = vld [vmem:[%s639_s1 + $0x148] sm:$0xff] }
   0xe   :  { %305 = vmatpush1.bf16.msra.mxu0 %v304_v33  ;;  %v55_v54 = vld [vmem:[%s639_s1 + $0x120] sm:$0xff]  ;;  %v57_v57 = vld [vmem:[%s639_s1 + $0x130] sm:$0xff]  ;;  %v64_v59 = vld [vmem:[%s639_s1 + $0x168] sm:$0xff] }
   0xf   :  { %341 = vmatpush1.bf16.msra.mxu1 %v340_v38  ;;  %307 = vmatprep.subr.bf16.mxu0 %v306_v39  ;;  %v62_v60 = vld [vmem:[%s639_s1 + $0x158] sm:$0xff]  ;;  %v312_v62 = vpack.c.bf16 %v55_v54, %v51_v53  ;;  %v348_v63 = vpack.c.bf16 %v57_v57, %v53_v55  ;;  %v314_v0 = vpack.c.bf16 %v64_v59, %v60_v58  ;;  %v59_v1 = vld [vmem:[%s639_s1 + $0x140] sm:$0xff]  ;;  %v61_v3 = vld [vmem:[%s639_s1 + $0x150] sm:$0xff] }
  0x10   :  { %343 = vmatprep.subr.bf16.mxu1 %v342_v43  ;;  %v66_v61 = vld [vmem:[%s639_s1 + $0x178] sm:$0xff]  ;;  %v63_v2 = vld [vmem:[%s639_s1 + $0x160] sm:$0xff]  ;;  %v65_v5 = vld [vmem:[%s639_s1 + $0x170] sm:$0xff] }
  0x11   :  { %v350_v4 = vpack.c.bf16 %v66_v61, %v62_v60  ;;  %v68_v6 = vld [vmem:[%s639_s1 + $0x188] sm:$0xff]  ;;  %v70_v8 = vld [vmem:[%s639_s1 + $0x198] sm:$0xff]  ;;  %v316_v10 = vpack.c.bf16 %v63_v2, %v59_v1  ;;  %v352_v11 = vpack.c.bf16 %v65_v5, %v61_v3  ;;  %v67_v13 = vld [vmem:[%s639_s1 + $0x180] sm:$0xff]  ;;  %v371_v2 = vmov 0  }
  0x12   :  { %309 = vmatpush1.bf16.msra.mxu0 %v308_v48  ;;  %v72_v7 = vld [vmem:[%s639_s1 + $0x1a8] sm:$0xff]  ;;  %v74_v9 = vld [vmem:[%s639_s1 + $0x1b8] sm:$0xff]  ;;  %v71_v14 = vld [vmem:[%s639_s1 + $0x1a0] sm:$0xff]  ;;  %367 = vset.pattern.permute.xlu1 %v371_v2 }
  0x13   :  { %345 = vmatpush1.bf16.msra.mxu1 %v344_v51  ;;  %311 = vmatprep.subr.bf16.mxu0 %v310_v52  ;;  %v318_v12 = vpack.c.bf16 %v72_v7, %v68_v6  ;;  %v69_v15 = vld [vmem:[%s639_s1 + $0x190] sm:$0xff]  ;;  %v354_v16 = vpack.c.bf16 %v74_v9, %v70_v8  ;;  %v76_v18 = vld [vmem:[%s639_s1 + $0x1c8] sm:$0xff]  ;;  %v78_v20 = vld [vmem:[%s639_s1 + $0x1d8] sm:$0xff]  ;;  %v320_v23 = vpack.c.bf16 %v71_v14, %v67_v13 }
  0x14   :  { %347 = vmatprep.subr.bf16.mxu1 %v346_v56  ;;  %v73_v17 = vld [vmem:[%s639_s1 + $0x1b0] sm:$0xff]  ;;  %v80_v19 = vld [vmem:[%s639_s1 + $0x1e8] sm:$0xff]  ;;  %v82_v21 = vld [vmem:[%s639_s1 + $0x1f8] sm:$0xff]  ;;  %368 = vset.pattern.permute.xlu0 %v371_v2 }
  0x15   :  { %v18_v22 = vld [vmem:[%s640_s0 + $0x8] sm:$0xff]  ;;  %v356_v24 = vpack.c.bf16 %v73_v17, %v69_v15  ;;  %v322_v25 = vpack.c.bf16 %v80_v19, %v76_v18  ;;  %v75_v26 = vld [vmem:[%s639_s1 + $0x1c0] sm:$0xff]  ;;  %v77_v28 = vld [vmem:[%s639_s1 + $0x1d0] sm:$0xff]  ;;  %v358_v29 = vpack.c.bf16 %v82_v21, %v78_v20 }
  0x16   :  { %313 = vmatpush1.bf16.msra.mxu0 %v312_v62  ;;  %292 = vmatprep.mubr.msk.f32.mxu0 %vm91_vm0, %v18_v22  ;;  %v79_v27 = vld [vmem:[%s639_s1 + $0x1e0] sm:$0xff]  ;;  %v81_v30 = vld [vmem:[%s639_s1 + $0x1f0] sm:$0xff]  ;;  %v84_v31 = vld [vmem:[%s639_s1 + $0x208] sm:$0xff] }
  0x17   :  { %349 = vmatpush1.bf16.msra.mxu1 %v348_v63  ;;  %315 = vmatprep.subr.bf16.mxu0 %v314_v0  ;;  %v88_v32 = vld [vmem:[%s639_s1 + $0x228] sm:$0xff]  ;;  %v86_v33 = vld [vmem:[%s639_s1 + $0x218] sm:$0xff]  ;;  %v324_v35 = vpack.c.bf16 %v79_v27, %v75_v26  ;;  %v360_v36 = vpack.c.bf16 %v81_v30, %v77_v28  ;;  %v83_v38 = vld [vmem:[%s639_s1 + $0x200] sm:$0xff] }
  0x18   :  { %351 = vmatprep.subr.bf16.mxu1 %v350_v4  ;;  %293 = vmatprep.mubr.msk.f32.mxu1 %vm91_vm0, %v18_v22  ;;  %v90_v34 = vld [vmem:[%s639_s1 + $0x238] sm:$0xff]  ;;  %v326_v37 = vpack.c.bf16 %v88_v32, %v84_v31  ;;  %v87_v39 = vld [vmem:[%s639_s1 + $0x220] sm:$0xff]  ;;  %v85_v41 = vld [vmem:[%s639_s1 + $0x210] sm:$0xff] }
  0x19   :  { %v362_v40 = vpack.c.bf16 %v90_v34, %v86_v33  ;;  %v89_v42 = vld [vmem:[%s639_s1 + $0x230] sm:$0xff]  ;;  %v328_v43 = vpack.c.bf16 %v87_v39, %v83_v38  ;;  %v17_v45 = vld [vmem:[%s640_s0] sm:$0xff] }
  0x1a   :  { %317 = vmatpush1.bf16.msra.mxu0 %v316_v10  ;;  %v364_v44 = vpack.c.bf16 %v89_v42, %v85_v41  ;;  %v237_v6 = vld [vmem:[%s641_s2] sm:$0xff] }
  0x1b   :  { %353 = vmatpush1.bf16.msra.mxu1 %v352_v11  ;;  %319 = vmatprep.subr.bf16.mxu0 %v318_v12  ;;  %v238_v9 = vld [vmem:[%s642_s3] sm:$0xff] }
  0x1c   :  { %355 = vmatprep.subr.bf16.mxu1 %v354_v16 }
  0x1e   :  { %321 = vmatpush1.bf16.msra.mxu0 %v320_v23 }
  0x1f   :  { %357 = vmatpush1.bf16.msra.mxu1 %v356_v24  ;;  %323 = vmatprep.subr.bf16.mxu0 %v322_v25 }
  0x20   :  { %359 = vmatprep.subr.bf16.mxu1 %v358_v29 }
  0x22   :  { %325 = vmatpush1.bf16.msra.mxu0 %v324_v35 }
  0x23   :  { %361 = vmatpush1.bf16.msra.mxu1 %v360_v36  ;;  %327 = vmatprep.subr.bf16.mxu0 %v326_v37 }
  0x24   :  { %363 = vmatprep.subr.bf16.mxu1 %v362_v40 }
  0x26   :  { %329 = vmatpush1.bf16.msra.mxu0 %v328_v43 }
  0x27   :  { %365 = vmatpush1.bf16.msra.mxu1 %v364_v44 }
  0x29   :  { %160 = vmatmul.mubr.f32.vlgmr.msra.gmra.mrb[0].mxu0 %v17_v45 }
  0x2a   :  { %231 = vmatmul.mubr.f32.vlgmr.msra.gmra.mrb[0].mxu1 %v17_v45 }
  0xfc   :  { %v161_v46 = vpop.f32.mrb[0].mxu0 }
  0xfd   :  { %v163_v47 = vpop.f32.mrb[1].mxu0  ;;  %v232_v48 = vpop.f32.mrb[0].mxu1 }
  0xfe   :  { %v239_v49 = vadd.f32 %v163_v47, %v161_v46  ;;  %v234_v50 = vpop.f32.mrb[1].mxu1 }
 0x100   :  { %v240_v51 = vadd.f32 %v239_v49, %v232_v48 }
 0x102   :  { %v241_v52 = vadd.f32 %v240_v51, %v234_v50 }
 0x104   :  { %242 = vadd.xlane.f32.xlu0 %v241_v52 }
 0x191   :  { %v243_v53 = vpop.xlane.xlu0 %242 }
 0x192   :  { %v244_v54 = vmul.f32 0.001953125, %v243_v53 }
 0x194   :  { %v245_v55 = vsub.f32 %v161_v46, %v244_v54  ;;  %v246_v56 = vsub.f32 %v163_v47, %v244_v54  ;;  %v247_v57 = vsub.f32 %v232_v48, %v244_v54  ;;  %v248_v58 = vsub.f32 %v234_v50, %v244_v54 }
 0x196   :  { %v249_v59 = vmul.f32 %v245_v55, %v245_v55  ;;  %v250_v60 = vmul.f32 %v246_v56, %v246_v56  ;;  %v251_v61 = vmul.f32 %v247_v57, %v247_v57  ;;  %v252_v63 = vmul.f32 %v248_v58, %v248_v58 }
 0x198   :  { %v253_v62 = vadd.f32 %v250_v60, %v249_v59 }
 0x19a   :  { %v254_v0 = vadd.f32 %v253_v62, %v251_v61 }
 0x19c   :  { %v255_v1 = vadd.f32 %v254_v0, %v252_v63 }
 0x19e   :  { %256 = vadd.xlane.f32.xlu0 %v255_v1 }
 0x22b   :  { %v257_v3 = vpop.xlane.xlu0 %256 }
 0x22c   :  { %v258_v4 = vmul.f32 0.001953125, %v257_v3 }
 0x22e   :  { %v259_v5 = vadd.f32 1e-05, %v258_v4 }
 0x230   :  { %369 = vrsqrt.f32 %v259_v5 }
 0x23a   :  { %v370_v7 = vpop.eup %369 }
 0x23b   :  { %v261_v8 = vmul.f32 %v370_v7, %v237_v6 }
 0x23d   :  { %264 = vperm.xlu1 %367, %v261_v8  }
 0x241   :  { %273 = vperm.xlu1 %367, %v238_v9  }
 0x2bc   :  { %v265_v10 = vpop.permute.xlu1 %264 }
 0x2bd   :  { %v267_v11 = vmul.f32 %v265_v10, %v245_v55  ;;  %v268_v12 = vmul.f32 %v265_v10, %v246_v56  ;;  %v269_v13 = vmul.f32 %v265_v10, %v247_v57  ;;  %v270_v14 = vmul.f32 %v265_v10, %v248_v58 }
 0x2c0   :  { %v274_v15 = vpop.permute.xlu1 %273 }
 0x2c1   :  { %v276_v16 = vadd.f32 %v274_v15, %v267_v11  ;;  %v277_v17 = vadd.f32 %v274_v15, %v268_v12  ;;  %v278_v18 = vadd.f32 %v274_v15, %v269_v13  ;;  %v279_v19 = vadd.f32 %v274_v15, %v270_v14 }
 0x2c3   :  { %v280_v20 = vmax.f32 %v276_v16, 0.0  ;;  %v281_v21 = vmax.f32 %v277_v17, 0.0  ;;  %v282_v22 = vmax.f32 %v278_v18, 0.0  ;;  %v283_v23 = vmax.f32 %v279_v19, 0.0 }
 0x2c5   :  { %284 = vst [vmem:[%s643_s4] sm:$0xff] %v280_v20  ;;  %285 = vst [vmem:[%s643_s4 + $0x8] sm:$0xff] %v281_v21 }
 0x2c6   :  { %286 = vst [vmem:[%s643_s4 + $0x10] sm:$0xff] %v282_v22  ;;  %287 = vst [vmem:[%s643_s4 + $0x18] sm:$0xff] %v283_v23 }

// kernel: hyper_unet_forward.24
= control target key start
LH: loop header
LB: loop body
LE: loop exit
PB: predicated region body
PF: predicated region fallthrough
CT: control target
= control target key end

     0   :  { %v521_v3 = vmov 0.0   ;;  %vm97_vm0 = vcmask 588800   ;;  %s806_s3 = inlined_call_operand.vmem [shape: f32[72,512], index: 3, kind: input, shape index: {}]   ;;  %s807_s1 = inlined_call_operand.vmem [shape: f32[72,512], index: 1, kind: input, shape index: {}]   ;;  %s808_s2 = inlined_call_operand.vmem [shape: f32[8,72], index: 2, kind: input, shape index: {}]   ;;  %s809_s0 = inlined_call_operand.vmem [shape: f32[8,72], index: 0, kind: input, shape index: {}]   ;;  %s810_s4 = inlined_call_operand.vmem [shape: f32[8,1], index: 4, kind: input, shape index: {}]   ;;  %s811_s5 = inlined_call_operand.vmem [shape: f32[8,1], index: 5, kind: input, shape index: {}]   ;;  %s812_s6 = inlined_call_operand.vmem [shape: f32[8,512], index: 6, kind: output, shape index: {}]  }
   0x1   :  { %v62_v0 = vld [vmem:[%s806_s3 + $0x8] sm:$0xff]  ;;  %v64_v2 = vld [vmem:[%s806_s3 + $0x18] sm:$0xff]  ;;  %165 = vmatprep.mubr.f32.mxu0 %v521_v3  ;;  %236 = vmatprep.mubr.f32.mxu1 %v521_v3  ;;  %v61_v6 = vld [vmem:[%s806_s3] sm:$0xff] }
   0x2   :  { %v66_v1 = vld [vmem:[%s806_s3 + $0x28] sm:$0xff]  ;;  %v68_v5 = vld [vmem:[%s806_s3 + $0x38] sm:$0xff]  ;;  %v65_v7 = vld [vmem:[%s806_s3 + $0x20] sm:$0xff] }
   0x3   :  { %v447_v4 = vpack.c.bf16 %v66_v1, %v62_v0  ;;  %v463_v8 = vpack.c.bf16 %v68_v5, %v64_v2  ;;  %v449_v9 = vpack.c.bf16 %v65_v7, %v61_v6  ;;  %v63_v10 = vld [vmem:[%s806_s3 + $0x10] sm:$0xff]  ;;  %v70_v12 = vld [vmem:[%s806_s3 + $0x48] sm:$0xff]  ;;  %v72_v15 = vld [vmem:[%s806_s3 + $0x58] sm:$0xff] }
   0x4   :  { %v67_v11 = vld [vmem:[%s806_s3 + $0x30] sm:$0xff]  ;;  %v74_v14 = vld [vmem:[%s806_s3 + $0x68] sm:$0xff]  ;;  %v76_v16 = vld [vmem:[%s806_s3 + $0x78] sm:$0xff] }
   0x5   :  { %448 = vmatprep.subr.bf16.mxu0 %v447_v4  ;;  %v465_v13 = vpack.c.bf16 %v67_v11, %v63_v10  ;;  %464 = vmatprep.subr.bf16.mxu1 %v463_v8  ;;  %v451_v17 = vpack.c.bf16 %v74_v14, %v70_v12  ;;  %v467_v18 = vpack.c.bf16 %v76_v16, %v72_v15  ;;  %v69_v19 = vld [vmem:[%s806_s3 + $0x40] sm:$0xff]  ;;  %v71_v21 = vld [vmem:[%s806_s3 + $0x50] sm:$0xff]  ;;  %v78_v24 = vld [vmem:[%s806_s3 + $0x88] sm:$0xff] }
   0x6   :  { %450 = vmatpush1.bf16.msra.mxu0 %v449_v9  ;;  %v73_v20 = vld [vmem:[%s806_s3 + $0x60] sm:$0xff]  ;;  %v75_v23 = vld [vmem:[%s806_s3 + $0x70] sm:$0xff]  ;;  %v82_v25 = vld [vmem:[%s806_s3 + $0xa8] sm:$0xff] }
   0x7   :  { %466 = vmatpush1.bf16.msra.mxu1 %v465_v13  ;;  %v453_v22 = vpack.c.bf16 %v73_v20, %v69_v19  ;;  %452 = vmatprep.subr.bf16.mxu0 %v451_v17  ;;  %v469_v26 = vpack.c.bf16 %v75_v23, %v71_v21  ;;  %v455_v27 = vpack.c.bf16 %v82_v25, %v78_v24  ;;  %v80_v28 = vld [vmem:[%s806_s3 + $0x98] sm:$0xff]  ;;  %v77_v30 = vld [vmem:[%s806_s3 + $0x80] sm:$0xff]  ;;  %v79_v33 = vld [vmem:[%s806_s3 + $0x90] sm:$0xff] }
   0x8   :  { %468 = vmatprep.subr.bf16.mxu1 %v467_v18  ;;  %v84_v29 = vld [vmem:[%s806_s3 + $0xb8] sm:$0xff]  ;;  %v81_v32 = vld [vmem:[%s806_s3 + $0xa0] sm:$0xff]  ;;  %v83_v34 = vld [vmem:[%s806_s3 + $0xb0] sm:$0xff] }
   0x9   :  { %v471_v31 = vpack.c.bf16 %v84_v29, %v80_v28  ;;  %v457_v35 = vpack.c.bf16 %v81_v32, %v77_v30  ;;  %v86_v36 = vld [vmem:[%s806_s3 + $0xc8] sm:$0xff]  ;;  %v88_v38 = vld [vmem:[%s806_s3 + $0xd8] sm:$0xff]  ;;  %v473_v39 = vpack.c.bf16 %v83_v34, %v79_v33  ;;  %v85_v42 = vld [vmem:[%s806_s3 + $0xc0] sm:$0xff] }
   0xa   :  { %454 = vmatpush1.bf16.msra.mxu0 %v453_v22  ;;  %v90_v37 = vld [vmem:[%s806_s3 + $0xe8] sm:$0xff]  ;;  %v92_v41 = vld [vmem:[%s806_s3 + $0xf8] sm:$0xff]  ;;  %v89_v43 = vld [vmem:[%s806_s3 + $0xe0] sm:$0xff] }
   0xb   :  { %470 = vmatpush1.bf16.msra.mxu1 %v469_v26  ;;  %456 = vmatprep.subr.bf16.mxu0 %v455_v27  ;;  %v459_v40 = vpack.c.bf16 %v90_v37, %v86_v36  ;;  %v475_v44 = vpack.c.bf16 %v92_v41, %v88_v38  ;;  %v87_v45 = vld [vmem:[%s806_s3 + $0xd0] sm:$0xff]  ;;  %v461_v47 = vpack.c.bf16 %v89_v43, %v85_v42  ;;  %v94_v49 = vld [vmem:[%s806_s3 + $0x108] sm:$0xff]  ;;  %v96_v50 = vld [vmem:[%s806_s3 + $0x118] sm:$0xff] }
   0xc   :  { %472 = vmatprep.subr.bf16.mxu1 %v471_v31  ;;  %v91_v46 = vld [vmem:[%s806_s3 + $0xf0] sm:$0xff]  ;;  %v25_v51 = vld [vmem:[%s807_s1 + $0x8] sm:$0xff]  ;;  %v93_v53 = vld [vmem:[%s806_s3 + $0x100] sm:$0xff] }
   0xd   :  { %v477_v48 = vpack.c.bf16 %v91_v46, %v87_v45  ;;  %v29_v52 = vld [vmem:[%s807_s1 + $0x28] sm:$0xff]  ;;  %v27_v54 = vld [vmem:[%s807_s1 + $0x18] sm:$0xff]  ;;  %v24_v56 = vld [vmem:[%s807_s1] sm:$0xff] }
   0xe   :  { %458 = vmatpush1.bf16.msra.mxu0 %v457_v35  ;;  %v31_v55 = vld [vmem:[%s807_s1 + $0x38] sm:$0xff]  ;;  %v28_v57 = vld [vmem:[%s807_s1 + $0x20] sm:$0xff]  ;;  %v26_v58 = vld [vmem:[%s807_s1 + $0x10] sm:$0xff]  ;;  %v479_v59 = vpack.c.bf16 %v29_v52, %v25_v51 }
   0xf   :  { %474 = vmatpush1.bf16.msra.mxu1 %v473_v39  ;;  %460 = vmatprep.subr.bf16.mxu0 %v459_v40  ;;  %v30_v60 = vld [vmem:[%s807_s1 + $0x30] sm:$0xff]  ;;  %v33_v61 = vld [vmem:[%s807_s1 + $0x48] sm:$0xff]  ;;  %v495_v0 = vpack.c.bf16 %v31_v55, %v27_v54  ;;  %v35_v1 = vld [vmem:[%s807_s1 + $0x58] sm:$0xff]  ;;  %v481_v5 = vpack.c.bf16 %v28_v57, %v24_v56 }
  0x10   :  { %476 = vmatprep.subr.bf16.mxu1 %v475_v44  ;;  %v37_v62 = vld [vmem:[%s807_s1 + $0x68] sm:$0xff]  ;;  %v95_v63 = vld [vmem:[%s806_s3 + $0x110] sm:$0xff]  ;;  %v39_v2 = vld [vmem:[%s807_s1 + $0x78] sm:$0xff]  ;;  %v497_v6 = vpack.c.bf16 %v30_v60, %v26_v58 }
  0x11   :  { %v60_v4 = vld [vmem:[%s808_s2] sm:$0xff]  ;;  %v483_v7 = vpack.c.bf16 %v37_v62, %v33_v61  ;;  %v34_v10 = vld [vmem:[%s807_s1 + $0x50] sm:$0xff]  ;;  %v499_v11 = vpack.c.bf16 %v39_v2, %v35_v1  ;;  %v41_v13 = vld [vmem:[%s807_s1 + $0x88] sm:$0xff] }
  0x12   :  { %462 = vmatpush1.bf16.msra.mxu0 %v461_v47  ;;  %v32_v8 = vld [vmem:[%s807_s1 + $0x40] sm:$0xff]  ;;  %v38_v12 = vld [vmem:[%s807_s1 + $0x70] sm:$0xff]  ;;  %v45_v14 = vld [vmem:[%s807_s1 + $0xa8] sm:$0xff] }
  0x13   :  { %478 = vmatpush1.bf16.msra.mxu1 %v477_v48  ;;  %117 = vmatprep.subr.mxu0 %v94_v49  ;;  %v36_v9 = vld [vmem:[%s807_s1 + $0x60] sm:$0xff]  ;;  %v43_v15 = vld [vmem:[%s807_s1 + $0x98] sm:$0xff]  ;;  %v501_v18 = vpack.c.bf16 %v38_v12, %v34_v10  ;;  %v487_v19 = vpack.c.bf16 %v45_v14, %v41_v13  ;;  %v42_v22 = vld [vmem:[%s807_s1 + $0x90] sm:$0xff] }
  0x14   :  { %188 = vmatprep.subr.mxu1 %v96_v50  ;;  %v47_v16 = vld [vmem:[%s807_s1 + $0xb8] sm:$0xff]  ;;  %v485_v17 = vpack.c.bf16 %v36_v9, %v32_v8  ;;  %v40_v20 = vld [vmem:[%s807_s1 + $0x80] sm:$0xff]  ;;  %v46_v24 = vld [vmem:[%s807_s1 + $0xb0] sm:$0xff] }
  0x15   :  { %v44_v21 = vld [vmem:[%s807_s1 + $0xa0] sm:$0xff]  ;;  %v503_v23 = vpack.c.bf16 %v47_v16, %v43_v15  ;;  %v49_v25 = vld [vmem:[%s807_s1 + $0xc8] sm:$0xff]  ;;  %v51_v27 = vld [vmem:[%s807_s1 + $0xd8] sm:$0xff]  ;;  %v505_v30 = vpack.c.bf16 %v46_v24, %v42_v22 }
  0x16   :  { %118 = vmatpush1.msra.mxu0 %v93_v53  ;;  %v53_v26 = vld [vmem:[%s807_s1 + $0xe8] sm:$0xff]  ;;  %v55_v28 = vld [vmem:[%s807_s1 + $0xf8] sm:$0xff]  ;;  %v489_v29 = vpack.c.bf16 %v44_v21, %v40_v20  ;;  %v48_v32 = vld [vmem:[%s807_s1 + $0xc0] sm:$0xff] }
  0x17   :  { %189 = vmatpush1.msra.mxu1 %v95_v63  ;;  %480 = vmatprep.subr.bf16.mxu0 %v479_v59  ;;  %v491_v31 = vpack.c.bf16 %v53_v26, %v49_v25  ;;  %v52_v33 = vld [vmem:[%s807_s1 + $0xe0] sm:$0xff]  ;;  %v507_v34 = vpack.c.bf16 %v55_v28, %v51_v27  ;;  %v54_v35 = vld [vmem:[%s807_s1 + $0xf0] sm:$0xff]  ;;  %v57_v38 = vld [vmem:[%s807_s1 + $0x108] sm:$0xff]  ;;  %v522_v63 = vmov 0  }
  0x18   :  { %496 = vmatprep.subr.bf16.mxu1 %v495_v0  ;;  %443 = vmatmul.mubr.msk.f32.vlgmr.msra.gmra.mrb[0].mxu0 %vm97_vm0, %v60_v4  ;;  %v493_v36 = vpack.c.bf16 %v52_v33, %v48_v32  ;;  %v59_v39 = vld [vmem:[%s807_s1 + $0x118] sm:$0xff]  ;;  %v56_v40 = vld [vmem:[%s807_s1 + $0x100] sm:$0xff]  ;;  %v58_v41 = vld [vmem:[%s807_s1 + $0x110] sm:$0xff] }
  0x19   :  { %444 = vmatmul.mubr.msk.f32.vlgmr.msra.gmra.mrb[0].mxu1 %vm97_vm0, %v60_v4  ;;  %482 = vmatpush1.bf16.msra.mxu0 %v481_v5  ;;  %v23_v42 = vld [vmem:[%s809_s0] sm:$0xff] }
  0x1a   :  { %498 = vmatpush1.bf16.msra.mxu1 %v497_v6  ;;  %484 = vmatprep.subr.bf16.mxu0 %v483_v7  ;;  %v388_v4 = vld [vmem:[%s810_s4] sm:$0xff] }
  0x1b   :  { %500 = vmatprep.subr.bf16.mxu1 %v499_v11  ;;  %310 = vmatprep.mubr.f32.mxu0 %v521_v3  ;;  %v389_v7 = vld [vmem:[%s811_s5] sm:$0xff] }
  0x1c   :  { %381 = vmatprep.mubr.f32.mxu1 %v521_v3  ;;  %v50_v3 = vld [vmem:[%s807_s1 + $0xd0] sm:$0xff]  ;;  %517 = vset.pattern.permute.xlu1 %v522_v63 }
  0x1d   :  { %486 = vmatpush1.bf16.msra.mxu0 %v485_v17  ;;  %v509_v37 = vpack.c.bf16 %v54_v35, %v50_v3  ;;  %518 = vset.pattern.permute.xlu0 %v522_v63 }
  0x1e   :  { %502 = vmatpush1.bf16.msra.mxu1 %v501_v18  ;;  %488 = vmatprep.subr.bf16.mxu0 %v487_v19 }
  0x1f   :  { %504 = vmatprep.subr.bf16.mxu1 %v503_v23 }
  0x21   :  { %490 = vmatpush1.bf16.msra.mxu0 %v489_v29 }
  0x22   :  { %506 = vmatpush1.bf16.msra.mxu1 %v505_v30  ;;  %492 = vmatprep.subr.bf16.mxu0 %v491_v31 }
  0x23   :  { %508 = vmatprep.subr.bf16.mxu1 %v507_v34 }
  0x25   :  { %494 = vmatpush1.bf16.msra.mxu0 %v493_v36 }
  0x26   :  { %510 = vmatpush1.bf16.msra.mxu1 %v509_v37  ;;  %262 = vmatprep.subr.mxu0 %v57_v38 }
  0x27   :  { %333 = vmatprep.subr.mxu1 %v59_v39 }
  0x29   :  { %263 = vmatpush1.msra.mxu0 %v56_v40 }
  0x2a   :  { %334 = vmatpush1.msra.mxu1 %v58_v41  ;;  %445 = vmatmul.mubr.msk.f32.vlgmr.msra.gmra.mrb[0].mxu0 %vm97_vm0, %v23_v42 }
  0x2b   :  { %446 = vmatmul.mubr.msk.f32.vlgmr.msra.gmra.mrb[0].mxu1 %vm97_vm0, %v23_v42 }
  0xfd   :  { %v312_v43 = vpop.f32.mrb[0].mxu0 }
  0xfe   :  { %v383_v44 = vpop.f32.mrb[0].mxu1  ;;  %v314_v45 = vpop.f32.mrb[1].mxu0 }
  0xff   :  { %v390_v46 = vadd.f32 %v314_v45, %v312_v43  ;;  %v385_v47 = vpop.f32.mrb[1].mxu1 }
 0x101   :  { %v391_v48 = vadd.f32 %v390_v46, %v383_v44 }
 0x103   :  { %v392_v49 = vadd.f32 %v391_v48, %v385_v47 }
 0x105   :  { %393 = vadd.xlane.f32.xlu0 %v392_v49 }
 0x192   :  { %v394_v50 = vpop.xlane.xlu0 %393 }
 0x193   :  { %v395_v51 = vmul.f32 0.001953125, %v394_v50 }
 0x195   :  { %v396_v52 = vsub.f32 %v312_v43, %v395_v51  ;;  %v397_v53 = vsub.f32 %v314_v45, %v395_v51  ;;  %v398_v54 = vsub.f32 %v383_v44, %v395_v51  ;;  %v399_v55 = vsub.f32 %v385_v47, %v395_v51 }
 0x197   :  { %v400_v56 = vmul.f32 %v396_v52, %v396_v52  ;;  %v401_v57 = vmul.f32 %v397_v53, %v397_v53  ;;  %v402_v58 = vmul.f32 %v398_v54, %v398_v54  ;;  %v403_v60 = vmul.f32 %v399_v55, %v399_v55 }
 0x199   :  { %v404_v59 = vadd.f32 %v401_v57, %v400_v56 }
 0x19b   :  { %v405_v61 = vadd.f32 %v404_v59, %v402_v58 }
 0x19d   :  { %v406_v62 = vadd.f32 %v405_v61, %v403_v60 }
 0x19f   :  { %407 = vadd.xlane.f32.xlu0 %v406_v62 }
 0x22c   :  { %v408_v0 = vpop.xlane.xlu0 %407 }
 0x22d   :  { %v409_v1 = vmul.f32 0.001953125, %v408_v0 }
 0x22f   :  { %v410_v2 = vadd.f32 1e-05, %v409_v1 }
 0x231   :  { %519 = vrsqrt.f32 %v410_v2 }
 0x23b   :  { %v520_v5 = vpop.eup %519 }
 0x23c   :  { %v412_v6 = vmul.f32 %v520_v5, %v388_v4 }
 0x23e   :  { %415 = vperm.xlu1 %517, %v412_v6  }
 0x242   :  { %424 = vperm.xlu1 %517, %v389_v7  }
 0x2bd   :  { %v416_v8 = vpop.permute.xlu1 %415 }
 0x2be   :  { %v418_v9 = vmul.f32 %v416_v8, %v396_v52  ;;  %v419_v10 = vmul.f32 %v416_v8, %v397_v53  ;;  %v420_v11 = vmul.f32 %v416_v8, %v398_v54  ;;  %v421_v12 = vmul.f32 %v416_v8, %v399_v55 }
 0x2c1   :  { %v425_v13 = vpop.permute.xlu1 %424 }
 0x2c2   :  { %v427_v14 = vadd.f32 %v425_v13, %v418_v9  ;;  %v428_v15 = vadd.f32 %v425_v13, %v419_v10  ;;  %v429_v16 = vadd.f32 %v425_v13, %v420_v11  ;;  %v430_v17 = vadd.f32 %v425_v13, %v421_v12 }
 0x2c4   :  { %v431_v18 = vmax.f32 %v427_v14, 0.0  ;;  %v432_v19 = vmax.f32 %v428_v15, 0.0  ;;  %v433_v20 = vmax.f32 %v429_v16, 0.0  ;;  %v434_v21 = vmax.f32 %v430_v17, 0.0 }
 0x2c6   :  { %435 = vst [vmem:[%s812_s6] sm:$0xff] %v431_v18  ;;  %436 = vst [vmem:[%s812_s6 + $0x8] sm:$0xff] %v432_v19 }
 0x2c7   :  { %437 = vst [vmem:[%s812_s6 + $0x10] sm:$0xff] %v433_v20  ;;  %438 = vst [vmem:[%s812_s6 + $0x18] sm:$0xff] %v434_v21 }

// kernel: hyper_unet_forward.25
= control target key start
LH: loop header
LB: loop body
LE: loop exit
PB: predicated region body
PF: predicated region fallthrough
CT: control target
= control target key end

     0   :  { %v1027_v3 = vmov 0.0   ;;  %vm162_vm0 = vcmask 588800   ;;  %s1584_s1 = inlined_call_operand.vmem [shape: f32[72,2048], index: 1, kind: input, shape index: {}]   ;;  %s1585_s0 = inlined_call_operand.vmem [shape: f32[8,72], index: 0, kind: input, shape index: {}]   ;;  %s1586_s2 = inlined_call_operand.vmem [shape: f32[8,1], index: 2, kind: input, shape index: {}]   ;;  %s1587_s3 = inlined_call_operand.vmem [shape: f32[8,1], index: 3, kind: input, shape index: {}]   ;;  %s1588_s4 = inlined_call_operand.vmem [shape: f32[8,2048], index: 4, kind: output, shape index: {}]  }
   0x1   :  { %v19_v0 = vld [vmem:[%s1584_s1 + $0x8] sm:$0xff]  ;;  %v18_v2 = vld [vmem:[%s1584_s1] sm:$0xff]  ;;  %230 = vmatprep.mubr.f32.mxu0 %v1027_v3  ;;  %301 = vmatprep.mubr.f32.mxu1 %v1027_v3  ;;  %v21_v6 = vld [vmem:[%s1584_s1 + $0x18] sm:$0xff] }
   0x2   :  { %v35_v1 = vld [vmem:[%s1584_s1 + $0x88] sm:$0xff]  ;;  %v34_v5 = vld [vmem:[%s1584_s1 + $0x80] sm:$0xff]  ;;  %v37_v7 = vld [vmem:[%s1584_s1 + $0x98] sm:$0xff] }
   0x3   :  { %v893_v4 = vpack.c.bf16 %v35_v1, %v19_v0  ;;  %v895_v8 = vpack.c.bf16 %v34_v5, %v18_v2  ;;  %v909_v9 = vpack.c.bf16 %v37_v7, %v21_v6  ;;  %v51_v10 = vld [vmem:[%s1584_s1 + $0x108] sm:$0xff]  ;;  %v20_v12 = vld [vmem:[%s1584_s1 + $0x10] sm:$0xff]  ;;  %v50_v15 = vld [vmem:[%s1584_s1 + $0x100] sm:$0xff] }
   0x4   :  { %v67_v11 = vld [vmem:[%s1584_s1 + $0x188] sm:$0xff]  ;;  %v36_v14 = vld [vmem:[%s1584_s1 + $0x90] sm:$0xff]  ;;  %v66_v16 = vld [vmem:[%s1584_s1 + $0x180] sm:$0xff] }
   0x5   :  { %894 = vmatprep.subr.bf16.mxu0 %v893_v4  ;;  %v897_v13 = vpack.c.bf16 %v67_v11, %v51_v10  ;;  %910 = vmatprep.subr.bf16.mxu1 %v909_v9  ;;  %v911_v17 = vpack.c.bf16 %v36_v14, %v20_v12  ;;  %v899_v18 = vpack.c.bf16 %v66_v16, %v50_v15  ;;  %v53_v19 = vld [vmem:[%s1584_s1 + $0x118] sm:$0xff]  ;;  %v83_v21 = vld [vmem:[%s1584_s1 + $0x208] sm:$0xff]  ;;  %v52_v24 = vld [vmem:[%s1584_s1 + $0x110] sm:$0xff] }
   0x6   :  { %896 = vmatpush1.bf16.msra.mxu0 %v895_v8  ;;  %v69_v20 = vld [vmem:[%s1584_s1 + $0x198] sm:$0xff]  ;;  %v99_v23 = vld [vmem:[%s1584_s1 + $0x288] sm:$0xff]  ;;  %v68_v25 = vld [vmem:[%s1584_s1 + $0x190] sm:$0xff] }
   0x7   :  { %898 = vmatprep.subr.bf16.mxu0 %v897_v13  ;;  %v913_v22 = vpack.c.bf16 %v69_v20, %v53_v19  ;;  %912 = vmatpush1.bf16.msra.mxu1 %v911_v17  ;;  %v901_v26 = vpack.c.bf16 %v99_v23, %v83_v21  ;;  %v915_v27 = vpack.c.bf16 %v68_v25, %v52_v24  ;;  %v82_v28 = vld [vmem:[%s1584_s1 + $0x200] sm:$0xff]  ;;  %v85_v30 = vld [vmem:[%s1584_s1 + $0x218] sm:$0xff]  ;;  %v115_v32 = vld [vmem:[%s1584_s1 + $0x308] sm:$0xff] }
   0x8   :  { %v98_v29 = vld [vmem:[%s1584_s1 + $0x280] sm:$0xff]  ;;  %v101_v31 = vld [vmem:[%s1584_s1 + $0x298] sm:$0xff]  ;;  %v131_v33 = vld [vmem:[%s1584_s1 + $0x388] sm:$0xff] }
   0x9   :  { %914 = vmatprep.subr.bf16.mxu1 %v913_v22  ;;  %v903_v34 = vpack.c.bf16 %v98_v29, %v82_v28  ;;  %v917_v35 = vpack.c.bf16 %v101_v31, %v85_v30  ;;  %v84_v36 = vld [vmem:[%s1584_s1 + $0x210] sm:$0xff]  ;;  %v114_v38 = vld [vmem:[%s1584_s1 + $0x300] sm:$0xff]  ;;  %v905_v39 = vpack.c.bf16 %v131_v33, %v115_v32  ;;  %v117_v41 = vld [vmem:[%s1584_s1 + $0x318] sm:$0xff] }
   0xa   :  { %900 = vmatpush1.bf16.msra.mxu0 %v899_v18  ;;  %v100_v37 = vld [vmem:[%s1584_s1 + $0x290] sm:$0xff]  ;;  %v130_v40 = vld [vmem:[%s1584_s1 + $0x380] sm:$0xff]  ;;  %v133_v42 = vld [vmem:[%s1584_s1 + $0x398] sm:$0xff] }
   0xb   :  { %902 = vmatprep.subr.bf16.mxu0 %v901_v26  ;;  %916 = vmatpush1.bf16.msra.mxu1 %v915_v27  ;;  %v919_v43 = vpack.c.bf16 %v100_v37, %v84_v36  ;;  %v921_v44 = vpack.c.bf16 %v133_v42, %v117_v41  ;;  %v116_v45 = vld [vmem:[%s1584_s1 + $0x310] sm:$0xff]  ;;  %v907_v47 = vpack.c.bf16 %v130_v40, %v114_v38  ;;  %v147_v48 = vld [vmem:[%s1584_s1 + $0x408] sm:$0xff]  ;;  %v146_v52 = vld [vmem:[%s1584_s1 + $0x400] sm:$0xff] }
   0xc   :  { %918 = vmatprep.subr.bf16.mxu1 %v917_v35  ;;  %v132_v46 = vld [vmem:[%s1584_s1 + $0x390] sm:$0xff]  ;;  %v23_v50 = vld [vmem:[%s1584_s1 + $0x28] sm:$0xff]  ;;  %v149_v53 = vld [vmem:[%s1584_s1 + $0x418] sm:$0xff] }
   0xd   :  { %v923_v49 = vpack.c.bf16 %v132_v46, %v116_v45  ;;  %v39_v51 = vld [vmem:[%s1584_s1 + $0xa8] sm:$0xff]  ;;  %v22_v54 = vld [vmem:[%s1584_s1 + $0x20] sm:$0xff]  ;;  %v25_v56 = vld [vmem:[%s1584_s1 + $0x38] sm:$0xff] }
   0xe   :  { %904 = vmatpush1.bf16.msra.mxu0 %v903_v34  ;;  %v38_v55 = vld [vmem:[%s1584_s1 + $0xa0] sm:$0xff]  ;;  %v41_v57 = vld [vmem:[%s1584_s1 + $0xb8] sm:$0xff]  ;;  %v55_v58 = vld [vmem:[%s1584_s1 + $0x128] sm:$0xff]  ;;  %v925_v59 = vpack.c.bf16 %v39_v51, %v23_v50 }
   0xf   :  { %906 = vmatprep.subr.bf16.mxu0 %v905_v39  ;;  %920 = vmatpush1.bf16.msra.mxu1 %v919_v43  ;;  %v71_v60 = vld [vmem:[%s1584_s1 + $0x1a8] sm:$0xff]  ;;  %v24_v61 = vld [vmem:[%s1584_s1 + $0x30] sm:$0xff]  ;;  %v1194_v63 = vld [vmem:[%s1585_s0] sm:$0xff]  ;;  %v927_v0 = vpack.c.bf16 %v38_v55, %v22_v54  ;;  %v941_v5 = vpack.c.bf16 %v41_v57, %v25_v56 }
  0x10   :  { %922 = vmatprep.subr.bf16.mxu1 %v921_v44  ;;  %v40_v62 = vld [vmem:[%s1584_s1 + $0xb0] sm:$0xff]  ;;  %v57_v1 = vld [vmem:[%s1584_s1 + $0x138] sm:$0xff]  ;;  %v54_v6 = vld [vmem:[%s1584_s1 + $0x120] sm:$0xff]  ;;  %v929_v8 = vpack.c.bf16 %v71_v60, %v55_v58 }
  0x11   :  { %v73_v2 = vld [vmem:[%s1584_s1 + $0x1b8] sm:$0xff]  ;;  %v148_v4 = vld [vmem:[%s1584_s1 + $0x410] sm:$0xff]  ;;  %v70_v7 = vld [vmem:[%s1584_s1 + $0x1a0] sm:$0xff]  ;;  %v943_v9 = vpack.c.bf16 %v40_v62, %v24_v61 }
  0x12   :  { %908 = vmatpush1.bf16.msra.mxu0 %v907_v47  ;;  %v87_v10 = vld [vmem:[%s1584_s1 + $0x228] sm:$0xff]  ;;  %v945_v12 = vpack.c.bf16 %v73_v2, %v57_v1  ;;  %v56_v13 = vld [vmem:[%s1584_s1 + $0x130] sm:$0xff]  ;;  %v931_v15 = vpack.c.bf16 %v70_v7, %v54_v6  ;;  %v89_v16 = vld [vmem:[%s1584_s1 + $0x238] sm:$0xff] }
  0x13   :  { %182 = vmatprep.subr.mxu0 %v147_v48  ;;  %924 = vmatpush1.bf16.msra.mxu1 %v923_v49  ;;  %v103_v11 = vld [vmem:[%s1584_s1 + $0x2a8] sm:$0xff]  ;;  %v72_v14 = vld [vmem:[%s1584_s1 + $0x1b0] sm:$0xff]  ;;  %v105_v17 = vld [vmem:[%s1584_s1 + $0x2b8] sm:$0xff] }
  0x14   :  { %253 = vmatprep.subr.mxu1 %v149_v53  ;;  %v933_v18 = vpack.c.bf16 %v103_v11, %v87_v10  ;;  %v86_v19 = vld [vmem:[%s1584_s1 + $0x220] sm:$0xff]  ;;  %v947_v21 = vpack.c.bf16 %v72_v14, %v56_v13  ;;  %v119_v22 = vld [vmem:[%s1584_s1 + $0x328] sm:$0xff]  ;;  %v949_v24 = vpack.c.bf16 %v105_v17, %v89_v16  ;;  %v88_v25 = vld [vmem:[%s1584_s1 + $0x230] sm:$0xff] }
  0x15   :  { %v102_v20 = vld [vmem:[%s1584_s1 + $0x2a0] sm:$0xff]  ;;  %v135_v23 = vld [vmem:[%s1584_s1 + $0x3a8] sm:$0xff]  ;;  %v104_v26 = vld [vmem:[%s1584_s1 + $0x2b0] sm:$0xff] }
  0x16   :  { %183 = vmatpush1.msra.mxu0 %v146_v52  ;;  %v935_v27 = vpack.c.bf16 %v102_v20, %v86_v19  ;;  %v121_v28 = vld [vmem:[%s1584_s1 + $0x338] sm:$0xff]  ;;  %v937_v30 = vpack.c.bf16 %v135_v23, %v119_v22  ;;  %v118_v31 = vld [vmem:[%s1584_s1 + $0x320] sm:$0xff]  ;;  %v951_v33 = vpack.c.bf16 %v104_v26, %v88_v25  ;;  %v120_v35 = vld [vmem:[%s1584_s1 + $0x330] sm:$0xff] }
  0x17   :  { %885 = vmatmul.mubr.msk.f32.vlgmr.msra.gmra.mrb[0].mxu0 %vm162_vm0, %v1194_v63  ;;  %926 = vmatprep.subr.bf16.mxu0 %v925_v59  ;;  %v137_v29 = vld [vmem:[%s1584_s1 + $0x3b8] sm:$0xff]  ;;  %v134_v32 = vld [vmem:[%s1584_s1 + $0x3a0] sm:$0xff]  ;;  %v136_v36 = vld [vmem:[%s1584_s1 + $0x3b0] sm:$0xff] }
  0x18   :  { %928 = vmatpush1.bf16.msra.mxu0 %v927_v0  ;;  %254 = vmatpush1.msra.mxu1 %v148_v4  ;;  %v953_v34 = vpack.c.bf16 %v137_v29, %v121_v28  ;;  %v939_v37 = vpack.c.bf16 %v134_v32, %v118_v31  ;;  %v151_v38 = vld [vmem:[%s1584_s1 + $0x428] sm:$0xff]  ;;  %v955_v39 = vpack.c.bf16 %v136_v36, %v120_v35  ;;  %v150_v42 = vld [vmem:[%s1584_s1 + $0x420] sm:$0xff]  ;;  %v153_v43 = vld [vmem:[%s1584_s1 + $0x438] sm:$0xff] }
  0x19   :  { %886 = vmatmul.mubr.msk.f32.vlgmr.msra.gmra.mrb[0].mxu1 %vm162_vm0, %v1194_v63  ;;  %942 = vmatprep.subr.bf16.mxu1 %v941_v5  ;;  %v27_v40 = vld [vmem:[%s1584_s1 + $0x48] sm:$0xff]  ;;  %v26_v44 = vld [vmem:[%s1584_s1 + $0x40] sm:$0xff]  ;;  %v29_v46 = vld [vmem:[%s1584_s1 + $0x58] sm:$0xff] }
  0x1a   :  { %930 = vmatprep.subr.bf16.mxu0 %v929_v8  ;;  %944 = vmatpush1.bf16.msra.mxu1 %v943_v9  ;;  %v43_v41 = vld [vmem:[%s1584_s1 + $0xc8] sm:$0xff]  ;;  %v42_v45 = vld [vmem:[%s1584_s1 + $0xc0] sm:$0xff]  ;;  %v45_v47 = vld [vmem:[%s1584_s1 + $0xd8] sm:$0xff] }
  0x1b   :  { %946 = vmatprep.subr.bf16.mxu1 %v945_v12  ;;  %372 = vmatprep.mubr.f32.mxu0 %v1027_v3  ;;  %v59_v48 = vld [vmem:[%s1584_s1 + $0x148] sm:$0xff]  ;;  %v957_v49 = vpack.c.bf16 %v43_v41, %v27_v40  ;;  %v28_v51 = vld [vmem:[%s1584_s1 + $0x50] sm:$0xff]  ;;  %v959_v53 = vpack.c.bf16 %v42_v45, %v26_v44  ;;  %v61_v54 = vld [vmem:[%s1584_s1 + $0x158] sm:$0xff]  ;;  %v973_v57 = vpack.c.bf16 %v45_v47, %v29_v46 }
  0x1c   :  { %932 = vmatpush1.bf16.msra.mxu0 %v931_v15  ;;  %443 = vmatprep.mubr.f32.mxu1 %v1027_v3  ;;  %v75_v50 = vld [vmem:[%s1584_s1 + $0x1c8] sm:$0xff]  ;;  %v44_v52 = vld [vmem:[%s1584_s1 + $0xd0] sm:$0xff]  ;;  %v77_v55 = vld [vmem:[%s1584_s1 + $0x1d8] sm:$0xff] }
  0x1d   :  { %934 = vmatprep.subr.bf16.mxu0 %v933_v18  ;;  %v152_v56 = vld [vmem:[%s1584_s1 + $0x430] sm:$0xff]  ;;  %v58_v58 = vld [vmem:[%s1584_s1 + $0x140] sm:$0xff]  ;;  %v961_v60 = vpack.c.bf16 %v75_v50, %v59_v48  ;;  %v975_v61 = vpack.c.bf16 %v44_v52, %v28_v51  ;;  %v91_v62 = vld [vmem:[%s1584_s1 + $0x248] sm:$0xff]  ;;  %v977_v1 = vpack.c.bf16 %v77_v55, %v61_v54 }
  0x1e   :  { %948 = vmatpush1.bf16.msra.mxu1 %v947_v21  ;;  %v74_v59 = vld [vmem:[%s1584_s1 + $0x1c0] sm:$0xff]  ;;  %v107_v0 = vld [vmem:[%s1584_s1 + $0x2c8] sm:$0xff]  ;;  %v60_v2 = vld [vmem:[%s1584_s1 + $0x150] sm:$0xff] }
  0x1f   :  { %950 = vmatprep.subr.bf16.mxu1 %v949_v24  ;;  %v76_v4 = vld [vmem:[%s1584_s1 + $0x1d0] sm:$0xff]  ;;  %v963_v5 = vpack.c.bf16 %v74_v59, %v58_v58  ;;  %v93_v6 = vld [vmem:[%s1584_s1 + $0x258] sm:$0xff]  ;;  %v965_v8 = vpack.c.bf16 %v107_v0, %v91_v62  ;;  %v90_v9 = vld [vmem:[%s1584_s1 + $0x240] sm:$0xff] }
  0x20   :  { %936 = vmatpush1.bf16.msra.mxu0 %v935_v27  ;;  %v109_v7 = vld [vmem:[%s1584_s1 + $0x2d8] sm:$0xff]  ;;  %v106_v10 = vld [vmem:[%s1584_s1 + $0x2c0] sm:$0xff]  ;;  %v979_v11 = vpack.c.bf16 %v76_v4, %v60_v2  ;;  %v123_v12 = vld [vmem:[%s1584_s1 + $0x348] sm:$0xff] }
  0x21   :  { %938 = vmatprep.subr.bf16.mxu0 %v937_v30  ;;  %v139_v13 = vld [vmem:[%s1584_s1 + $0x3c8] sm:$0xff]  ;;  %v981_v14 = vpack.c.bf16 %v109_v7, %v93_v6  ;;  %v92_v15 = vld [vmem:[%s1584_s1 + $0x250] sm:$0xff]  ;;  %v967_v17 = vpack.c.bf16 %v106_v10, %v90_v9  ;;  %v125_v18 = vld [vmem:[%s1584_s1 + $0x358] sm:$0xff] }
  0x22   :  { %952 = vmatpush1.bf16.msra.mxu1 %v951_v33  ;;  %v108_v16 = vld [vmem:[%s1584_s1 + $0x2d0] sm:$0xff]  ;;  %v141_v19 = vld [vmem:[%s1584_s1 + $0x3d8] sm:$0xff]  ;;  %v969_v20 = vpack.c.bf16 %v139_v13, %v123_v12  ;;  %v122_v21 = vld [vmem:[%s1584_s1 + $0x340] sm:$0xff] }
  0x23   :  { %954 = vmatprep.subr.bf16.mxu1 %v953_v34  ;;  %v138_v22 = vld [vmem:[%s1584_s1 + $0x3c0] sm:$0xff]  ;;  %v983_v23 = vpack.c.bf16 %v108_v16, %v92_v15  ;;  %v985_v24 = vpack.c.bf16 %v141_v19, %v125_v18  ;;  %v124_v25 = vld [vmem:[%s1584_s1 + $0x350] sm:$0xff]  ;;  %v155_v28 = vld [vmem:[%s1584_s1 + $0x448] sm:$0xff] }
  0x24   :  { %940 = vmatpush1.bf16.msra.mxu0 %v939_v37  ;;  %v140_v26 = vld [vmem:[%s1584_s1 + $0x3d0] sm:$0xff]  ;;  %v971_v27 = vpack.c.bf16 %v138_v22, %v122_v21  ;;  %v31_v30 = vld [vmem:[%s1584_s1 + $0x68] sm:$0xff]  ;;  %v154_v32 = vld [vmem:[%s1584_s1 + $0x440] sm:$0xff] }
  0x25   :  { %324 = vmatprep.subr.mxu0 %v151_v38  ;;  %v987_v29 = vpack.c.bf16 %v140_v26, %v124_v25  ;;  %v47_v31 = vld [vmem:[%s1584_s1 + $0xe8] sm:$0xff]  ;;  %v157_v33 = vld [vmem:[%s1584_s1 + $0x458] sm:$0xff]  ;;  %v30_v34 = vld [vmem:[%s1584_s1 + $0x60] sm:$0xff] }
  0x26   :  { %956 = vmatpush1.bf16.msra.mxu1 %v955_v39  ;;  %v46_v35 = vld [vmem:[%s1584_s1 + $0xe0] sm:$0xff]  ;;  %v33_v36 = vld [vmem:[%s1584_s1 + $0x78] sm:$0xff]  ;;  %v63_v38 = vld [vmem:[%s1584_s1 + $0x168] sm:$0xff]  ;;  %v989_v39 = vpack.c.bf16 %v47_v31, %v31_v30 }
  0x27   :  { %395 = vmatprep.subr.mxu1 %v153_v43  ;;  %v49_v37 = vld [vmem:[%s1584_s1 + $0xf8] sm:$0xff]  ;;  %v79_v40 = vld [vmem:[%s1584_s1 + $0x1e8] sm:$0xff]  ;;  %v32_v41 = vld [vmem:[%s1584_s1 + $0x70] sm:$0xff]  ;;  %v991_v43 = vpack.c.bf16 %v46_v35, %v30_v34 }
  0x28   :  { %325 = vmatpush1.msra.mxu0 %v150_v42  ;;  %v48_v42 = vld [vmem:[%s1584_s1 + $0xf0] sm:$0xff]  ;;  %v65_v44 = vld [vmem:[%s1584_s1 + $0x178] sm:$0xff]  ;;  %v1005_v47 = vpack.c.bf16 %v49_v37, %v33_v36  ;;  %v62_v48 = vld [vmem:[%s1584_s1 + $0x160] sm:$0xff]  ;;  %v993_v50 = vpack.c.bf16 %v79_v40, %v63_v38 }
  0x29   :  { %887 = vmatmul.mubr.msk.f32.vlgmr.msra.gmra.mrb[2].mxu0 %vm162_vm0, %v1194_v63  ;;  %958 = vmatprep.subr.bf16.mxu0 %v957_v49  ;;  %v81_v45 = vld [vmem:[%s1584_s1 + $0x1f8] sm:$0xff]  ;;  %v156_v46 = vld [vmem:[%s1584_s1 + $0x450] sm:$0xff]  ;;  %v78_v49 = vld [vmem:[%s1584_s1 + $0x1e0] sm:$0xff]  ;;  %v1007_v51 = vpack.c.bf16 %v48_v42, %v32_v41 }
  0x2a   :  { %960 = vmatpush1.bf16.msra.mxu0 %v959_v53  ;;  %396 = vmatpush1.msra.mxu1 %v152_v56  ;;  %v95_v52 = vld [vmem:[%s1584_s1 + $0x268] sm:$0xff]  ;;  %v1009_v54 = vpack.c.bf16 %v81_v45, %v65_v44  ;;  %v64_v55 = vld [vmem:[%s1584_s1 + $0x170] sm:$0xff]  ;;  %v97_v58 = vld [vmem:[%s1584_s1 + $0x278] sm:$0xff] }
  0x2b   :  { %974 = vmatprep.subr.bf16.mxu1 %v973_v57  ;;  %888 = vmatmul.mubr.msk.f32.vlgmr.msra.gmra.mrb[2].mxu1 %vm162_vm0, %v1194_v63  ;;  %v111_v53 = vld [vmem:[%s1584_s1 + $0x2e8] sm:$0xff]  ;;  %v80_v56 = vld [vmem:[%s1584_s1 + $0x1f0] sm:$0xff]  ;;  %v995_v57 = vpack.c.bf16 %v78_v49, %v62_v48  ;;  %v113_v59 = vld [vmem:[%s1584_s1 + $0x2f8] sm:$0xff] }
  0x2c   :  { %962 = vmatprep.subr.bf16.mxu0 %v961_v60  ;;  %976 = vmatpush1.bf16.msra.mxu1 %v975_v61  ;;  %v997_v60 = vpack.c.bf16 %v111_v53, %v95_v52  ;;  %v94_v61 = vld [vmem:[%s1584_s1 + $0x260] sm:$0xff]  ;;  %v1011_v0 = vpack.c.bf16 %v80_v56, %v64_v55  ;;  %v143_v2 = vld [vmem:[%s1584_s1 + $0x3e8] sm:$0xff]  ;;  %v1013_v4 = vpack.c.bf16 %v113_v59, %v97_v58  ;;  %v112_v6 = vld [vmem:[%s1584_s1 + $0x2f0] sm:$0xff] }
  0x2d   :  { %978 = vmatprep.subr.bf16.mxu1 %v977_v1  ;;  %514 = vmatprep.mubr.f32.mxu0 %v1027_v3  ;;  %v110_v62 = vld [vmem:[%s1584_s1 + $0x2e0] sm:$0xff]  ;;  %v127_v1 = vld [vmem:[%s1584_s1 + $0x368] sm:$0xff]  ;;  %v145_v9 = vld [vmem:[%s1584_s1 + $0x3f8] sm:$0xff] }
  0x2e   :  { %964 = vmatpush1.bf16.msra.mxu0 %v963_v5  ;;  %585 = vmatprep.mubr.f32.mxu1 %v1027_v3  ;;  %v96_v5 = vld [vmem:[%s1584_s1 + $0x270] sm:$0xff]  ;;  %v999_v7 = vpack.c.bf16 %v110_v62, %v94_v61  ;;  %v1001_v10 = vpack.c.bf16 %v143_v2, %v127_v1  ;;  %v142_v12 = vld [vmem:[%s1584_s1 + $0x3e0] sm:$0xff]  ;;  %v161_v19 = vld [vmem:[%s1584_s1 + $0x478] sm:$0xff] }
  0x2f   :  { %966 = vmatprep.subr.bf16.mxu0 %v965_v8  ;;  %v129_v8 = vld [vmem:[%s1584_s1 + $0x378] sm:$0xff]  ;;  %v1015_v13 = vpack.c.bf16 %v112_v6, %v96_v5  ;;  %v128_v15 = vld [vmem:[%s1584_s1 + $0x370] sm:$0xff] }
  0x30   :  { %980 = vmatpush1.bf16.msra.mxu1 %v979_v11  ;;  %v126_v11 = vld [vmem:[%s1584_s1 + $0x360] sm:$0xff]  ;;  %v160_v21 = vld [vmem:[%s1584_s1 + $0x470] sm:$0xff] }
  0x31   :  { %982 = vmatprep.subr.bf16.mxu1 %v981_v14  ;;  %v1017_v14 = vpack.c.bf16 %v145_v9, %v129_v8  ;;  %v1003_v16 = vpack.c.bf16 %v142_v12, %v126_v11 }
  0x32   :  { %968 = vmatpush1.bf16.msra.mxu0 %v967_v17  ;;  %v159_v17 = vld [vmem:[%s1584_s1 + $0x468] sm:$0xff] }
  0x33   :  { %970 = vmatprep.subr.bf16.mxu0 %v969_v20  ;;  %v158_v20 = vld [vmem:[%s1584_s1 + $0x460] sm:$0xff] }
  0x34   :  { %984 = vmatpush1.bf16.msra.mxu1 %v983_v23 }
  0x35   :  { %986 = vmatprep.subr.bf16.mxu1 %v985_v24 }
  0x36   :  { %972 = vmatpush1.bf16.msra.mxu0 %v971_v27 }
  0x37   :  { %466 = vmatprep.subr.mxu0 %v155_v28 }
  0x38   :  { %988 = vmatpush1.bf16.msra.mxu1 %v987_v29 }
  0x39   :  { %537 = vmatprep.subr.mxu1 %v157_v33 }
  0x3a   :  { %467 = vmatpush1.msra.mxu0 %v154_v32 }
  0x3b   :  { %889 = vmatmul.mubr.msk.f32.vlgmr.msra.gmra.mrb[4].mxu0 %vm162_vm0, %v1194_v63  ;;  %990 = vmatprep.subr.bf16.mxu0 %v989_v39 }
  0x3c   :  { %992 = vmatpush1.bf16.msra.mxu0 %v991_v43  ;;  %538 = vmatpush1.msra.mxu1 %v156_v46 }
  0x3d   :  { %1006 = vmatprep.subr.bf16.mxu1 %v1005_v47  ;;  %890 = vmatmul.mubr.msk.f32.vlgmr.msra.gmra.mrb[4].mxu1 %vm162_vm0, %v1194_v63 }
  0x3e   :  { %994 = vmatprep.subr.bf16.mxu0 %v993_v50  ;;  %1008 = vmatpush1.bf16.msra.mxu1 %v1007_v51 }
  0x3f   :  { %1010 = vmatprep.subr.bf16.mxu1 %v1009_v54  ;;  %656 = vmatprep.mubr.f32.mxu0 %v1027_v3 }
  0x40   :  { %996 = vmatpush1.bf16.msra.mxu0 %v995_v57  ;;  %727 = vmatprep.mubr.f32.mxu1 %v1027_v3  ;;  %v144_v3 = vld [vmem:[%s1584_s1 + $0x3f0] sm:$0xff] }
  0x41   :  { %998 = vmatprep.subr.bf16.mxu0 %v997_v60  ;;  %v1019_v18 = vpack.c.bf16 %v144_v3, %v128_v15 }
  0x42   :  { %1012 = vmatpush1.bf16.msra.mxu1 %v1011_v0 }
  0x43   :  { %1014 = vmatprep.subr.bf16.mxu1 %v1013_v4 }
  0x44   :  { %1000 = vmatpush1.bf16.msra.mxu0 %v999_v7 }
  0x45   :  { %1002 = vmatprep.subr.bf16.mxu0 %v1001_v10 }
  0x46   :  { %1016 = vmatpush1.bf16.msra.mxu1 %v1015_v13 }
  0x47   :  { %1018 = vmatprep.subr.bf16.mxu1 %v1017_v14 }
  0x48   :  { %1004 = vmatpush1.bf16.msra.mxu0 %v1003_v16 }
  0x49   :  { %608 = vmatprep.subr.mxu0 %v159_v17 }
  0x4a   :  { %1020 = vmatpush1.bf16.msra.mxu1 %v1019_v18 }
  0x4b   :  { %679 = vmatprep.subr.mxu1 %v161_v19 }
  0x4c   :  { %609 = vmatpush1.msra.mxu0 %v158_v20 }
  0x4d   :  { %891 = vmatmul.mubr.msk.f32.vlgmr.msra.gmra.mrb[6].mxu0 %vm162_vm0, %v1194_v63 }
  0x4e   :  { %680 = vmatpush1.msra.mxu1 %v160_v21 }
  0x4f   :  { %892 = vmatmul.mubr.msk.f32.vlgmr.msra.gmra.mrb[6].mxu1 %vm162_vm0, %v1194_v63 }
  0xea   :  { %v232_v22 = vpop.f32.mrb[0].mxu0 }
  0xeb   :  { %v234_v23 = vpop.f32.mrb[1].mxu0 }
  0xec   :  { %v736_v24 = vadd.f32 %v234_v23, %v232_v22  ;;  %v303_v25 = vpop.f32.mrb[0].mxu1 }
  0xed   :  { %v305_v26 = vpop.f32.mrb[1].mxu1 }
  0xee   :  { %v737_v27 = vadd.f32 %v736_v24, %v303_v25 }
  0xf0   :  { %v738_v28 = vadd.f32 %v737_v27, %v305_v26 }
  0xfc   :  { %v374_v29 = vpop.f32.mrb[2].mxu0 }
  0xfd   :  { %v739_v30 = vadd.f32 %v738_v28, %v374_v29  ;;  %v376_v31 = vpop.f32.mrb[3].mxu0 }
  0xfe   :  { %v445_v32 = vpop.f32.mrb[2].mxu1 }
  0xff   :  { %v740_v33 = vadd.f32 %v739_v30, %v376_v31  ;;  %v447_v34 = vpop.f32.mrb[3].mxu1 }
 0x101   :  { %v741_v35 = vadd.f32 %v740_v33, %v445_v32 }
 0x103   :  { %v742_v36 = vadd.f32 %v741_v35, %v447_v34 }
 0x10e   :  { %v516_v37 = vpop.f32.mrb[4].mxu0 }
 0x10f   :  { %v743_v38 = vadd.f32 %v742_v36, %v516_v37  ;;  %v518_v39 = vpop.f32.mrb[5].mxu0 }
 0x110   :  { %v587_v40 = vpop.f32.mrb[4].mxu1 }
 0x111   :  { %v744_v63 = vadd.f32 %v743_v38, %v518_v39  ;;  %v589_v41 = vpop.f32.mrb[5].mxu1  ;;  %v1028_v38 = vmov 0  }
 0x112   :  { %1023 = vset.pattern.permute.xlu1 %v1028_v38  ;;  %1024 = vset.pattern.permute.xlu0 %v1028_v38 }
 0x113   :  { %v745_v42 = vadd.f32 %v744_v63, %v587_v40 }
 0x115   :  { %v746_v43 = vadd.f32 %v745_v42, %v589_v41 }
 0x120   :  { %v658_v44 = vpop.f32.mrb[6].mxu0 }
 0x121   :  { %v747_v45 = vadd.f32 %v746_v43, %v658_v44  ;;  %v660_v46 = vpop.f32.mrb[7].mxu0 }
 0x122   :  { %v729_v47 = vpop.f32.mrb[6].mxu1 }
 0x123   :  { %v748_v48 = vadd.f32 %v747_v45, %v660_v46  ;;  %v731_v49 = vpop.f32.mrb[7].mxu1 }
 0x125   :  { %v749_v50 = vadd.f32 %v748_v48, %v729_v47 }
 0x127   :  { %v750_v51 = vadd.f32 %v749_v50, %v731_v49 }
 0x129   :  { %751 = vadd.xlane.f32.xlu0 %v750_v51 }
 0x1b6   :  { %v752_v52 = vpop.xlane.xlu0 %751 }
 0x1b7   :  { %v753_v53 = vmul.f32 0.00048828125, %v752_v52 }
 0x1b9   :  { %v1515_v54 = vsub.f32 %v232_v22, %v753_v53  ;;  %v1517_v55 = vsub.f32 %v234_v23, %v753_v53  ;;  %v1519_v56 = vsub.f32 %v303_v25, %v753_v53  ;;  %v757_v59 = vsub.f32 %v305_v26, %v753_v53 }
 0x1ba   :  { %v758_v60 = vsub.f32 %v374_v29, %v753_v53  ;;  %v759_v0 = vsub.f32 %v376_v31, %v753_v53  ;;  %v760_v4 = vsub.f32 %v445_v32, %v753_v53  ;;  %v761_v7 = vsub.f32 %v447_v34, %v753_v53 }
 0x1bb   :  { %v770_v57 = vmul.f32 %v1515_v54, %v1515_v54  ;;  %v771_v58 = vmul.f32 %v1517_v55, %v1517_v55  ;;  %v772_v61 = vmul.f32 %v1519_v56, %v1519_v56  ;;  %v773_v1 = vmul.f32 %v757_v59, %v757_v59 }
 0x1bc   :  { %v774_v5 = vmul.f32 %v758_v60, %v758_v60  ;;  %v775_v8 = vmul.f32 %v759_v0, %v759_v0  ;;  %v762_v10 = vsub.f32 %v516_v37, %v753_v53  ;;  %v776_v11 = vmul.f32 %v760_v4, %v760_v4 }
 0x1bd   :  { %v786_v62 = vadd.f32 %v771_v58, %v770_v57  ;;  %v763_v13 = vsub.f32 %v518_v39, %v753_v53  ;;  %v777_v14 = vmul.f32 %v761_v7, %v761_v7  ;;  %v764_v3 = vsub.f32 %v587_v40, %v753_v53 }
 0x1be   :  { %v778_v16 = vmul.f32 %v762_v10, %v762_v10  ;;  %v765_v18 = vsub.f32 %v589_v41, %v753_v53  ;;  %v766_v21 = vsub.f32 %v658_v44, %v753_v53  ;;  %v767_v24 = vsub.f32 %v660_v46, %v753_v53  ;;  %v734_v41 = vld [vmem:[%s1586_s2] sm:$0xff] }
 0x1bf   :  { %v787_v2 = vadd.f32 %v786_v62, %v772_v61  ;;  %v779_v19 = vmul.f32 %v763_v13, %v763_v13  ;;  %v780_v22 = vmul.f32 %v764_v3, %v764_v3  ;;  %v768_v27 = vsub.f32 %v729_v47, %v753_v53  ;;  %v735_v44 = vld [vmem:[%s1587_s3] sm:$0xff] }
 0x1c0   :  { %v781_v25 = vmul.f32 %v765_v18, %v765_v18  ;;  %v782_v28 = vmul.f32 %v766_v21, %v766_v21  ;;  %v769_v30 = vsub.f32 %v731_v49, %v753_v53  ;;  %v783_v31 = vmul.f32 %v767_v24, %v767_v24 }
 0x1c1   :  { %v788_v6 = vadd.f32 %v787_v2, %v773_v1  ;;  %v784_v33 = vmul.f32 %v768_v27, %v768_v27 }
 0x1c2   :  { %v785_v35 = vmul.f32 %v769_v30, %v769_v30 }
 0x1c3   :  { %v789_v9 = vadd.f32 %v788_v6, %v774_v5 }
 0x1c5   :  { %v790_v12 = vadd.f32 %v789_v9, %v775_v8 }
 0x1c7   :  { %v791_v15 = vadd.f32 %v790_v12, %v776_v11 }
 0x1c9   :  { %v792_v17 = vadd.f32 %v791_v15, %v777_v14 }
 0x1cb   :  { %v793_v20 = vadd.f32 %v792_v17, %v778_v16 }
 0x1cd   :  { %v794_v23 = vadd.f32 %v793_v20, %v779_v19 }
 0x1cf   :  { %v795_v26 = vadd.f32 %v794_v23, %v780_v22 }
 0x1d1   :  { %v796_v29 = vadd.f32 %v795_v26, %v781_v25 }
 0x1d3   :  { %v797_v32 = vadd.f32 %v796_v29, %v782_v28 }
 0x1d5   :  { %v798_v34 = vadd.f32 %v797_v32, %v783_v31 }
 0x1d7   :  { %v799_v36 = vadd.f32 %v798_v34, %v784_v33 }
 0x1d9   :  { %v800_v37 = vadd.f32 %v799_v36, %v785_v35 }
 0x1db   :  { %801 = vadd.xlane.f32.xlu0 %v800_v37 }
 0x268   :  { %v802_v39 = vpop.xlane.xlu0 %801 }
 0x269   :  { %v803_v40 = vmul.f32 0.00048828125, %v802_v39 }
 0x26b   :  { %v804_v63 = vadd.f32 1e-05, %v803_v40 }
 0x26d   :  { %1025 = vrsqrt.f32 %v804_v63 }
 0x277   :  { %v1026_v42 = vpop.eup %1025 }
 0x278   :  { %v806_v43 = vmul.f32 %v1026_v42, %v734_v41 }
 0x27a   :  { %809 = vperm.xlu1 %1023, %v806_v43  }
 0x27e   :  { %830 = vperm.xlu1 %1023, %v735_v44  }
 0x2f9   :  { %v810_v45 = vpop.permute.xlu1 %809 }
 0x2fa   :  { %v812_v46 = vmul.f32 %v810_v45, %v1515_v54  ;;  %v813_v47 = vmul.f32 %v810_v45, %v1517_v55  ;;  %v814_v48 = vmul.f32 %v810_v45, %v1519_v56  ;;  %v815_v49 = vmul.f32 %v810_v45, %v757_v59 }
 0x2fb   :  { %v816_v50 = vmul.f32 %v810_v45, %v758_v60  ;;  %v817_v51 = vmul.f32 %v810_v45, %v759_v0  ;;  %v818_v52 = vmul.f32 %v810_v45, %v760_v4  ;;  %v819_v53 = vmul.f32 %v810_v45, %v761_v7 }
 0x2fc   :  { %v820_v57 = vmul.f32 %v810_v45, %v762_v10  ;;  %v821_v58 = vmul.f32 %v810_v45, %v763_v13  ;;  %v822_v61 = vmul.f32 %v810_v45, %v764_v3  ;;  %v823_v62 = vmul.f32 %v810_v45, %v765_v18 }
 0x2fd   :  { %v824_v1 = vmul.f32 %v810_v45, %v766_v21  ;;  %v825_v2 = vmul.f32 %v810_v45, %v767_v24  ;;  %v826_v5 = vmul.f32 %v810_v45, %v768_v27  ;;  %v827_v6 = vmul.f32 %v810_v45, %v769_v30  ;;  %v831_v8 = vpop.permute.xlu1 %830 }
 0x2fe   :  { %v833_v9 = vadd.f32 %v831_v8, %v812_v46  ;;  %v834_v54 = vadd.f32 %v831_v8, %v813_v47  ;;  %v835_v11 = vadd.f32 %v831_v8, %v814_v48  ;;  %v836_v55 = vadd.f32 %v831_v8, %v815_v49 }
 0x2ff   :  { %v837_v12 = vadd.f32 %v831_v8, %v816_v50  ;;  %v838_v56 = vadd.f32 %v831_v8, %v817_v51  ;;  %v839_v59 = vadd.f32 %v831_v8, %v818_v52  ;;  %v840_v60 = vadd.f32 %v831_v8, %v819_v53 }
 0x300   :  { %v841_v0 = vadd.f32 %v831_v8, %v820_v57  ;;  %v842_v4 = vadd.f32 %v831_v8, %v821_v58  ;;  %v843_v7 = vadd.f32 %v831_v8, %v822_v61  ;;  %v844_v10 = vadd.f32 %v831_v8, %v823_v62 }
 0x301   :  { %v845_v13 = vadd.f32 %v831_v8, %v824_v1  ;;  %v846_v14 = vadd.f32 %v831_v8, %v825_v2  ;;  %v847_v15 = vadd.f32 %v831_v8, %v826_v5  ;;  %v848_v3 = vadd.f32 %v831_v8, %v827_v6 }
 0x302   :  { %v849_v16 = vmax.f32 %v833_v9, 0.0  ;;  %v850_v17 = vmax.f32 %v834_v54, 0.0  ;;  %v851_v18 = vmax.f32 %v835_v11, 0.0  ;;  %v852_v19 = vmax.f32 %v836_v55, 0.0 }
 0x303   :  { %v853_v20 = vmax.f32 %v837_v12, 0.0  ;;  %v854_v21 = vmax.f32 %v838_v56, 0.0  ;;  %v855_v22 = vmax.f32 %v839_v59, 0.0  ;;  %v856_v23 = vmax.f32 %v840_v60, 0.0 }
 0x304   :  { %v857_v24 = vmax.f32 %v841_v0, 0.0  ;;  %v858_v25 = vmax.f32 %v842_v4, 0.0  ;;  %v859_v26 = vmax.f32 %v843_v7, 0.0  ;;  %v860_v27 = vmax.f32 %v844_v10, 0.0  ;;  %865 = vst [vmem:[%s1588_s4] sm:$0xff] %v849_v16  ;;  %866 = vst [vmem:[%s1588_s4 + $0x8] sm:$0xff] %v850_v17 }
 0x305   :  { %867 = vst [vmem:[%s1588_s4 + $0x10] sm:$0xff] %v851_v18  ;;  %868 = vst [vmem:[%s1588_s4 + $0x18] sm:$0xff] %v852_v19  ;;  %v861_v28 = vmax.f32 %v845_v13, 0.0  ;;  %v862_v29 = vmax.f32 %v846_v14, 0.0  ;;  %v863_v30 = vmax.f32 %v847_v15, 0.0  ;;  %v864_v31 = vmax.f32 %v848_v3, 0.0 }
 0x306   :  { %869 = vst [vmem:[%s1588_s4 + $0x20] sm:$0xff] %v853_v20  ;;  %870 = vst [vmem:[%s1588_s4 + $0x28] sm:$0xff] %v854_v21 }
 0x307   :  { %871 = vst [vmem:[%s1588_s4 + $0x30] sm:$0xff] %v855_v22  ;;  %872 = vst [vmem:[%s1588_s4 + $0x38] sm:$0xff] %v856_v23 }
 0x308   :  { %873 = vst [vmem:[%s1588_s4 + $0x40] sm:$0xff] %v857_v24  ;;  %874 = vst [vmem:[%s1588_s4 + $0x48] sm:$0xff] %v858_v25 }
 0x309   :  { %875 = vst [vmem:[%s1588_s4 + $0x50] sm:$0xff] %v859_v26  ;;  %876 = vst [vmem:[%s1588_s4 + $0x58] sm:$0xff] %v860_v27 }
 0x30a   :  { %877 = vst [vmem:[%s1588_s4 + $0x60] sm:$0xff] %v861_v28  ;;  %878 = vst [vmem:[%s1588_s4 + $0x68] sm:$0xff] %v862_v29 }
 0x30b   :  { %879 = vst [vmem:[%s1588_s4 + $0x70] sm:$0xff] %v863_v30  ;;  %880 = vst [vmem:[%s1588_s4 + $0x78] sm:$0xff] %v864_v31 }

// kernel: hyper_unet_forward.27
= control target key start
LH: loop header
LB: loop body
LE: loop exit
PB: predicated region body
PF: predicated region fallthrough
CT: control target
= control target key end

     0   :  { %v281_v3 = vmov 0.0   ;;  %vm48_vm0 = vcmask 588800   ;;  %s420_s1 = inlined_call_operand.vmem [shape: f32[72,512], index: 1, kind: input, shape index: {}]   ;;  %s421_s0 = inlined_call_operand.vmem [shape: f32[8,72], index: 0, kind: input, shape index: {}]   ;;  %s422_s2 = inlined_call_operand.vmem [shape: f32[8,512], index: 2, kind: output, shape index: {}]  }
   0x1   :  { %v13_v0 = vld [vmem:[%s420_s1 + $0x8] sm:$0xff]  ;;  %v15_v2 = vld [vmem:[%s420_s1 + $0x18] sm:$0xff]  ;;  %116 = vmatprep.mubr.f32.mxu0 %v281_v3  ;;  %187 = vmatprep.mubr.f32.mxu1 %v281_v3  ;;  %v12_v6 = vld [vmem:[%s420_s1] sm:$0xff] }
   0x2   :  { %v17_v1 = vld [vmem:[%s420_s1 + $0x28] sm:$0xff]  ;;  %v19_v5 = vld [vmem:[%s420_s1 + $0x38] sm:$0xff]  ;;  %v16_v7 = vld [vmem:[%s420_s1 + $0x20] sm:$0xff] }
   0x3   :  { %v232_v4 = vpack.c.bf16 %v17_v1, %v13_v0  ;;  %v248_v8 = vpack.c.bf16 %v19_v5, %v15_v2  ;;  %v234_v9 = vpack.c.bf16 %v16_v7, %v12_v6  ;;  %v14_v10 = vld [vmem:[%s420_s1 + $0x10] sm:$0xff]  ;;  %v21_v12 = vld [vmem:[%s420_s1 + $0x48] sm:$0xff]  ;;  %v23_v15 = vld [vmem:[%s420_s1 + $0x58] sm:$0xff] }
   0x4   :  { %v18_v11 = vld [vmem:[%s420_s1 + $0x30] sm:$0xff]  ;;  %v25_v14 = vld [vmem:[%s420_s1 + $0x68] sm:$0xff]  ;;  %v27_v16 = vld [vmem:[%s420_s1 + $0x78] sm:$0xff] }
   0x5   :  { %233 = vmatprep.subr.bf16.mxu0 %v232_v4  ;;  %v250_v13 = vpack.c.bf16 %v18_v11, %v14_v10  ;;  %249 = vmatprep.subr.bf16.mxu1 %v248_v8  ;;  %v236_v17 = vpack.c.bf16 %v25_v14, %v21_v12  ;;  %v252_v18 = vpack.c.bf16 %v27_v16, %v23_v15  ;;  %v20_v19 = vld [vmem:[%s420_s1 + $0x40] sm:$0xff]  ;;  %v22_v21 = vld [vmem:[%s420_s1 + $0x50] sm:$0xff]  ;;  %v29_v24 = vld [vmem:[%s420_s1 + $0x88] sm:$0xff] }
   0x6   :  { %235 = vmatpush1.bf16.msra.mxu0 %v234_v9  ;;  %v24_v20 = vld [vmem:[%s420_s1 + $0x60] sm:$0xff]  ;;  %v26_v23 = vld [vmem:[%s420_s1 + $0x70] sm:$0xff]  ;;  %v33_v25 = vld [vmem:[%s420_s1 + $0xa8] sm:$0xff] }
   0x7   :  { %251 = vmatpush1.bf16.msra.mxu1 %v250_v13  ;;  %v238_v22 = vpack.c.bf16 %v24_v20, %v20_v19  ;;  %237 = vmatprep.subr.bf16.mxu0 %v236_v17  ;;  %v254_v26 = vpack.c.bf16 %v26_v23, %v22_v21  ;;  %v240_v27 = vpack.c.bf16 %v33_v25, %v29_v24  ;;  %v31_v28 = vld [vmem:[%s420_s1 + $0x98] sm:$0xff]  ;;  %v28_v30 = vld [vmem:[%s420_s1 + $0x80] sm:$0xff]  ;;  %v30_v33 = vld [vmem:[%s420_s1 + $0x90] sm:$0xff] }
   0x8   :  { %253 = vmatprep.subr.bf16.mxu1 %v252_v18  ;;  %v35_v29 = vld [vmem:[%s420_s1 + $0xb8] sm:$0xff]  ;;  %v32_v32 = vld [vmem:[%s420_s1 + $0xa0] sm:$0xff]  ;;  %v34_v34 = vld [vmem:[%s420_s1 + $0xb0] sm:$0xff] }
   0x9   :  { %v256_v31 = vpack.c.bf16 %v35_v29, %v31_v28  ;;  %v242_v35 = vpack.c.bf16 %v32_v32, %v28_v30  ;;  %v37_v36 = vld [vmem:[%s420_s1 + $0xc8] sm:$0xff]  ;;  %v39_v38 = vld [vmem:[%s420_s1 + $0xd8] sm:$0xff]  ;;  %v258_v39 = vpack.c.bf16 %v34_v34, %v30_v33  ;;  %v36_v42 = vld [vmem:[%s420_s1 + $0xc0] sm:$0xff] }
   0xa   :  { %239 = vmatpush1.bf16.msra.mxu0 %v238_v22  ;;  %v41_v37 = vld [vmem:[%s420_s1 + $0xe8] sm:$0xff]  ;;  %v43_v41 = vld [vmem:[%s420_s1 + $0xf8] sm:$0xff]  ;;  %v40_v43 = vld [vmem:[%s420_s1 + $0xe0] sm:$0xff] }
   0xb   :  { %255 = vmatpush1.bf16.msra.mxu1 %v254_v26  ;;  %241 = vmatprep.subr.bf16.mxu0 %v240_v27  ;;  %v244_v40 = vpack.c.bf16 %v41_v37, %v37_v36  ;;  %v260_v44 = vpack.c.bf16 %v43_v41, %v39_v38  ;;  %v38_v45 = vld [vmem:[%s420_s1 + $0xd0] sm:$0xff]  ;;  %v246_v47 = vpack.c.bf16 %v40_v43, %v36_v42  ;;  %v45_v49 = vld [vmem:[%s420_s1 + $0x108] sm:$0xff]  ;;  %v47_v50 = vld [vmem:[%s420_s1 + $0x118] sm:$0xff] }
   0xc   :  { %257 = vmatprep.subr.bf16.mxu1 %v256_v31  ;;  %v42_v46 = vld [vmem:[%s420_s1 + $0xf0] sm:$0xff]  ;;  %v44_v51 = vld [vmem:[%s420_s1 + $0x100] sm:$0xff] }
   0xd   :  { %v262_v48 = vpack.c.bf16 %v42_v46, %v38_v45  ;;  %v46_v52 = vld [vmem:[%s420_s1 + $0x110] sm:$0xff]  ;;  %v11_v53 = vld [vmem:[%s421_s0] sm:$0xff] }
   0xe   :  { %243 = vmatpush1.bf16.msra.mxu0 %v242_v35 }
   0xf   :  { %259 = vmatpush1.bf16.msra.mxu1 %v258_v39  ;;  %245 = vmatprep.subr.bf16.mxu0 %v244_v40 }
  0x10   :  { %261 = vmatprep.subr.bf16.mxu1 %v260_v44 }
  0x12   :  { %247 = vmatpush1.bf16.msra.mxu0 %v246_v47 }
  0x13   :  { %263 = vmatpush1.bf16.msra.mxu1 %v262_v48  ;;  %68 = vmatprep.subr.mxu0 %v45_v49 }
  0x14   :  { %139 = vmatprep.subr.mxu1 %v47_v50 }
  0x16   :  { %69 = vmatpush1.msra.mxu0 %v44_v51 }
  0x17   :  { %140 = vmatpush1.msra.mxu1 %v46_v52  ;;  %226 = vmatmul.mubr.msk.f32.vlgmr.msra.gmra.mrb[0].mxu0 %vm48_vm0, %v11_v53 }
  0x18   :  { %227 = vmatmul.mubr.msk.f32.vlgmr.msra.gmra.mrb[0].mxu1 %vm48_vm0, %v11_v53 }
  0xea   :  { %v118_v54 = vpop.f32.mrb[0].mxu0 }
  0xeb   :  { %v228_v55 = vmul.f32 -1.442695, %v118_v54  ;;  %v189_v56 = vpop.f32.mrb[0].mxu1  ;;  %v120_v57 = vpop.f32.mrb[1].mxu0 }
  0xec   :  { %v230_v58 = vmul.f32 -1.442695, %v189_v56  ;;  %v229_v59 = vmul.f32 -1.442695, %v120_v57  ;;  %v191_v60 = vpop.f32.mrb[1].mxu1 }
  0xed   :  { %265 = vpow2.f32 %v228_v55  ;;  %v231_v61 = vmul.f32 -1.442695, %v191_v60 }
  0xee   :  { %267 = vpow2.f32 %v230_v58 }
  0xef   :  { %269 = vpow2.f32 %v229_v59 }
  0xf0   :  { %271 = vpow2.f32 %v231_v61 }
  0xf7   :  { %v266_v62 = vpop.eup %265 }
  0xf8   :  { %v268_v63 = vpop.eup %267  ;;  %v206_v0 = vadd.f32 1.0, %v266_v62 }
  0xf9   :  { %v270_v1 = vpop.eup %269  ;;  %v208_v2 = vadd.f32 1.0, %v268_v63 }
  0xfa   :  { %v272_v3 = vpop.eup %271  ;;  %273 = vrcp.f32 %v206_v0  ;;  %v207_v4 = vadd.f32 1.0, %v270_v1 }
  0xfb   :  { %275 = vrcp.f32 %v208_v2  ;;  %v209_v5 = vadd.f32 1.0, %v272_v3 }
  0xfc   :  { %277 = vrcp.f32 %v207_v4 }
  0xfd   :  { %279 = vrcp.f32 %v209_v5 }
 0x104   :  { %v274_v6 = vpop.eup %273 }
 0x105   :  { %v276_v7 = vpop.eup %275  ;;  %218 = vst [vmem:[%s422_s2] sm:$0xff] %v274_v6 }
 0x106   :  { %v278_v8 = vpop.eup %277  ;;  %220 = vst [vmem:[%s422_s2 + $0x10] sm:$0xff] %v276_v7 }
 0x107   :  { %v280_v9 = vpop.eup %279  ;;  %219 = vst [vmem:[%s422_s2 + $0x8] sm:$0xff] %v278_v8 }
 0x108   :  { %221 = vst [vmem:[%s422_s2 + $0x18] sm:$0xff] %v280_v9 }

</bundles_post_ra>
